<compile_context>
chip_gen: v6e
topology: v6e:2x2x1
jax: 0.10.0
libtpu: 0.0.40
codegen_flags: <defaults>
</compile_context>

<pallas_src>
import functools

import numpy as np

import jax
import jax.numpy as jnp
from jax.experimental import pallas as pl
from jax.experimental.pallas import tpu as pltpu

LANE = 128
_VMEM_LIMIT = 48 * 1024 * 1024   # <= v7x physical 64 MiB; well under v5e/v6e 128 MiB


def _round_up(x, m):
    return ((x + m - 1) // m) * m


# ------------------------------------------------------------------
# Plain-JAX positional encoding (matches the PyTorch helper exactly).
# Used by the reference and by the masked fallback path.
# ------------------------------------------------------------------
def positional_encoding(positions, freqs):
    freq_bands = 2.0 ** jnp.arange(freqs, dtype=jnp.float32)            # (freqs,)
    pts = positions[..., None] * freq_bands                             # (..., C, freqs)
    pts = pts.reshape(positions.shape[:-1] + (freqs * positions.shape[-1],))
    return jnp.concatenate([jnp.sin(pts), jnp.cos(pts)], axis=-1)


# ------------------------------------------------------------------
# Kernel-internal row layout.
#
# raw = [features (inChanel), viewdirs (3), pts (3)]  (the kernel input, rawC rows).
# Kernel x^T rows (length c_pad):
#   [passthrough raw rows 0..n_pass-1]                       (n_pass = inChanel+3)
#   then per SOURCE channel (features ch, viewdir ch, pts ch in that order):
#     sin(2^0 v) .. sin(2^{F-1} v), cos(2^0 v) .. cos(2^{F-1} v)   (2F rows)
#   then zero-pad rows to c_pad.
# W1's rows are permuted (perm[kernel_row] = original mlp_in column) so that
# W1t @ x^T reproduces the original layer exactly.
# ------------------------------------------------------------------
def _build_layout(inChanel, viewpe, pospe, feape, c_pad):
    n_pass = inChanel + 3
    pe_groups = []                                  # (source raw row, freqs)
    if feape > 0:
        pe_groups += [(c, feape) for c in range(inChanel)]
    if viewpe > 0:
        pe_groups += [(inChanel + c, viewpe) for c in range(3)]
    if pospe > 0:
        pe_groups += [(inChanel + 3 + c, pospe) for c in range(3)]

    # Offsets of each PE block in the ORIGINAL (PyTorch) mlp_in column order.
    off_pts = n_pass
    off_view = off_pts + (2 * 3 * pospe if pospe > 0 else 0)
    off_fea = off_view + (2 * 3 * viewpe if viewpe > 0 else 0)

    def orig_block(off, nch, F, c):
        # original PE layout: [sin(c0 f0..fF-1, c1 ..., ...), cos(...)]
        return [off + trig * nch * F + c * F + f
                for trig in range(2) for f in range(F)]

    perm = list(range(n_pass))
    if feape > 0:
        for c in range(inChanel):
            perm += orig_block(off_fea, inChanel, feape, c)
    if viewpe > 0:
        for c in range(3):
            perm += orig_block(off_view, 3, viewpe, c)
    if pospe > 0:
        for c in range(3):
            perm += orig_block(off_pts, 3, pospe, c)

    in_mlpC = 2 * pospe * 3 + 2 * viewpe * 3 + 2 * feape * inChanel + inChanel + 3
    assert len(perm) == in_mlpC

    # Per-kernel-row scale (2^f) and phase (0 for sin rows, pi/2 for cos rows).
    scale = np.zeros((c_pad, 1), np.float32)
    phase = np.zeros((c_pad, 1), np.float32)
    scale[:n_pass] = 1.0
    r = n_pass
    for _, F in pe_groups:
        for trig in range(2):
            for f in range(F):
                scale[r, 0] = float(2.0 ** f)
                phase[r, 0] = 0.0 if trig == 0 else float(np.pi / 2.0)
                r += 1
    assert r == in_mlpC
    return pe_groups, np.asarray(perm, np.int32), scale, phase, n_pass, in_mlpC


# ------------------------------------------------------------------
# Kernel bodies (feature-major: rays in lanes)
# ------------------------------------------------------------------
def _mlp_tail(x_bf16, w1, b1, w2, b2, w3, b3):
    """x: (c_pad, T) bf16.  Weights pre-transposed bf16, biases f32 columns.
    bf16 MXU matmuls with f32 accumulation; ReLU/sigmoid in f32."""
    h1 = jnp.dot(w1, x_bf16, preferred_element_type=jnp.float32) + b1
    h1 = jnp.maximum(h1, 0.0)
    h2 = jnp.dot(w2, h1.astype(jnp.bfloat16), preferred_element_type=jnp.float32) + b2
    h2 = jnp.maximum(h2, 0.0)
    logits = jnp.dot(w3, h2.astype(jnp.bfloat16), preferred_element_type=jnp.float32) + b3
    return jax.nn.sigmoid(logits)                                       # (8, T)


def _fused_kernel(raw_ref, scale_ref, phase_ref, w1_ref, b1_ref, w2_ref, b2_ref,
                  w3_ref, b3_ref, o_ref, *, n_pass, pe_groups, n_zero):
    tn = raw_ref.shape[1]
    # Positional encoding on the VPU/EUP in exact f32 (no MXU passes, no bf16
    # truncation before sin): per source channel, broadcast its row along
    # sublanes, scale by 2^f, add phase, sin.
    blocks = [raw_ref[0:n_pass, :]]                        # passthrough rows (f32)
    r = n_pass
    for src, F in pe_groups:
        sc = scale_ref[r:r + 2 * F, :]                     # (2F, 1) static slice
        ph = phase_ref[r:r + 2 * F, :]
        blocks.append(jnp.sin(raw_ref[src:src + 1, :] * sc + ph))   # (2F, tn)
        r += 2 * F
    if n_zero:
        blocks.append(jnp.zeros((n_zero, tn), jnp.float32))
    x = jnp.concatenate(blocks, axis=0)                    # (c_pad, tn) f32
    o_ref[...] = _mlp_tail(x.astype(jnp.bfloat16), w1_ref[...], b1_ref[...],
                           w2_ref[...], b2_ref[...], w3_ref[...], b3_ref[...])


def _prebuilt_kernel(x_ref, w1_ref, b1_ref, w2_ref, b2_ref, w3_ref, b3_ref, o_ref):
    o_ref[...] = _mlp_tail(x_ref[...], w1_ref[...], b1_ref[...], w2_ref[...],
                           b2_ref[...], w3_ref[...], b3_ref[...])


# ------------------------------------------------------------------
# Tiling helper: big ray tiles, but >= 2 grid steps when there is enough work
# so the v7x megacore ("parallel" axis) can actually split the grid.
# ------------------------------------------------------------------
def _choose_tile(N, tile_n):
    n_lane = _round_up(max(N, 1), LANE)
    tn = min(_round_up(tile_n, LANE), n_lane)
    if tn >= n_lane and n_lane >= 2 * LANE:
        tn = max(LANE, (n_lane // 2 // LANE) * LANE)
    n_pad = _round_up(N, tn)
    return tn, n_pad


# ------------------------------------------------------------------
# pallas_call wrappers
# ------------------------------------------------------------------
def mlp_forward_fused(raw_t, scale, phase, kp, *, n_pass, pe_groups, in_mlpC,
                      tile_n=4096):
    """raw_t: (rawC, N) f32 = concat([features, viewdirs, pts], -1).T"""
    rawC, N = raw_t.shape
    featureC, c_pad = kp["W1t"].shape
    tn, n_pad = _choose_tile(N, tile_n)
    if n_pad != N:
        raw_t = jnp.pad(raw_t, ((0, 0), (0, n_pad - N)))

    full = lambda i: (0, 0)
    cols = lambda i: (0, i)

    flops = (2 * n_pad * (c_pad * featureC + featureC * featureC + featureC * 8)
             + 2 * n_pad * in_mlpC)
    cost = pl.CostEstimate(
        flops=int(flops),
        transcendentals=int(n_pad * (in_mlpC - n_pass + 8)),
        bytes_accessed=int(n_pad * (rawC + 8) * 4
                           + 2 * (c_pad * featureC + featureC * featureC + 8 * featureC)
                           + 4 * (2 * c_pad + 2 * featureC + 8)))

    kernel = functools.partial(_fused_kernel, n_pass=n_pass,
                               pe_groups=tuple(pe_groups), n_zero=c_pad - in_mlpC)
    out = pl.pallas_call(
        kernel,
        out_shape=jax.ShapeDtypeStruct((8, n_pad), jnp.float32),
        grid_spec=pltpu.PrefetchScalarGridSpec(
            num_scalar_prefetch=0,
            grid=(n_pad // tn,),
            in_specs=[
                pl.BlockSpec((rawC, tn), cols),             # raw^T ray tile
                pl.BlockSpec((c_pad, 1), full),             # per-row PE scale (2^f)
                pl.BlockSpec((c_pad, 1), full),             # per-row PE phase
                pl.BlockSpec((featureC, c_pad), full),      # W1^T (rows permuted, bf16)
                pl.BlockSpec((featureC, 1), full),          # b1
                pl.BlockSpec((featureC, featureC), full),   # W2^T (bf16)
                pl.BlockSpec((featureC, 1), full),          # b2
                pl.BlockSpec((8, featureC), full),          # W3^T (padded to 8 rows, bf16)
                pl.BlockSpec((8, 1), full),                 # b3 (padded)
            ],
            out_specs=pl.BlockSpec((8, tn), cols),
        ),
        compiler_params=pltpu.CompilerParams(
            dimension_semantics=("parallel",),
            vmem_limit_bytes=_VMEM_LIMIT,
        ),
        cost_estimate=cost,
    )(raw_t, scale, phase, kp["W1t"], kp["b1c"], kp["W2t"], kp["b2c"],
      kp["W3t"], kp["b3c"])
    return out[:3, :N].T                                    # (N, 3)


def mlp_forward_from_x(mlp_in, kp_orig, *, tile_n=4096):
    """Fallback: feature-major MLP over a prebuilt (N, in_mlpC) input."""
    N, C = mlp_in.shape
    featureC, c_pad = kp_orig["W1t"].shape
    tn, n_pad = _choose_tile(N, tile_n)
    x_t = jnp.pad(mlp_in, ((0, n_pad - N), (0, c_pad - C))).T.astype(jnp.bfloat16)

    full = lambda i: (0, 0)
    cols = lambda i: (0, i)

    out = pl.pallas_call(
        _prebuilt_kernel,
        out_shape=jax.ShapeDtypeStruct((8, n_pad), jnp.float32),
        grid_spec=pltpu.PrefetchScalarGridSpec(
            num_scalar_prefetch=0,
            grid=(n_pad // tn,),
            in_specs=[
                pl.BlockSpec((c_pad, tn), cols),            # x^T ray tile (bf16)
                pl.BlockSpec((featureC, c_pad), full),
                pl.BlockSpec((featureC, 1), full),
                pl.BlockSpec((featureC, featureC), full),
                pl.BlockSpec((featureC, 1), full),
                pl.BlockSpec((8, featureC), full),
                pl.BlockSpec((8, 1), full),
            ],
            out_specs=pl.BlockSpec((8, tn), cols),
        ),
        compiler_params=pltpu.CompilerParams(
            dimension_semantics=("parallel",),
            vmem_limit_bytes=_VMEM_LIMIT,
        ),
    )(x_t, kp_orig["W1t"], kp_orig["b1c"], kp_orig["W2t"], kp_orig["b2c"],
      kp_orig["W3t"], kp_orig["b3c"])
    return out[:3, :N].T


# ------------------------------------------------------------------
# MLPRender wrapper (mirrors the PyTorch module's forward)
# ------------------------------------------------------------------
class MLPRender:
    def __init__(self, inChanel, viewpe=6, pospe=6, feape=6, featureC=128, key=None):
        self.inChanel = inChanel
        self.viewpe, self.pospe, self.feape = viewpe, pospe, feape
        self.featureC = featureC
        self.in_mlpC = 2 * pospe * 3 + 2 * viewpe * 3 + 2 * feape * inChanel + inChanel + 3
        self.c_pad = _round_up(self.in_mlpC, LANE)

        (self.pe_groups, self.perm, scale, phase,
         self.n_pass, in_mlpC) = _build_layout(inChanel, viewpe, pospe, feape, self.c_pad)
        assert in_mlpC == self.in_mlpC
        self.scale = jnp.asarray(scale)
        self.phase = jnp.asarray(phase)

        key = jax.random.PRNGKey(0) if key is None else key
        ks = jax.random.split(key, 5)

        def linear_init(kw, kb, fan_in, fan_out):
            bound = 1.0 / float(np.sqrt(fan_in))
            W = jax.random.uniform(kw, (fan_in, fan_out), jnp.float32, -bound, bound)
            b = jax.random.uniform(kb, (1, fan_out), jnp.float32, -bound, bound)
            return W, b

        W1, b1 = linear_init(ks[0], ks[1], self.in_mlpC, featureC)
        W2, b2 = linear_init(ks[2], ks[3], featureC, featureC)
        bound3 = 1.0 / float(np.sqrt(featureC))
        W3 = jax.random.uniform(ks[4], (featureC, 3), jnp.float32, -bound3, bound3)
        b3 = jnp.zeros((1, 3), jnp.float32)          # torch.nn.init.constant_(bias, 0)
        self.params = dict(W1=W1, b1=b1, W2=W2, b2=b2, W3=W3, b3=b3)

        # Kernel-format weights (feature-major, pre-transposed, bf16 for the MXU).
        def pack(W1_rows):
            W1t = jnp.pad(W1_rows.T, ((0, 0), (0, self.c_pad - self.in_mlpC)))
            return dict(
                W1t=W1t.astype(jnp.bfloat16),
                b1c=b1.reshape(featureC, 1),
                W2t=W2.T.astype(jnp.bfloat16),
                b2c=b2.reshape(featureC, 1),
                W3t=jnp.pad(W3.T, ((0, 8 - 3), (0, 0))).astype(jnp.bfloat16),
                b3c=jnp.pad(b3.reshape(3, 1), ((0, 8 - 3), (0, 0))),
            )

        self.kparams = pack(W1[jnp.asarray(self.perm), :])   # kernel row order (fused)
        self.kparams_orig = pack(W1)                          # original order (fallback)

    # plain-JAX input builder (reference & masked fallback)
    def _build_input(self, pts, viewdirs, features, mask):
        indata = [features, viewdirs]
        if self.pospe > 0:
            enc = positional_encoding(pts, self.pospe)
            indata.append(enc if mask.get("pos") is None else enc * mask["pos"])
        if self.viewpe > 0:
            enc = positional_encoding(viewdirs, self.viewpe)
            indata.append(enc if mask.get("view") is None else enc * mask["view"])
        if self.feape > 0:
            enc = positional_encoding(features, self.feape)
            indata.append(enc if mask.get("fea") is None else enc * mask["fea"])
        return jnp.concatenate(indata, axis=-1)

    def __call__(self, pts, viewdirs, features, mask, tile_n=4096):
        if all(mask.get(k) is None for k in ("pos", "view", "fea")):
            raw_t = jnp.concatenate([features, viewdirs, pts], axis=-1).T  # (rawC, N)
            return mlp_forward_fused(raw_t, self.scale, self.phase, self.kparams,
                                     n_pass=self.n_pass, pe_groups=self.pe_groups,
                                     in_mlpC=self.in_mlpC, tile_n=tile_n)
        # TODO(synk): masked positional encodes stay in XLA glue; only the
        # None-mask fast path fuses the encode into the Pallas kernel.
        mlp_in = self._build_input(pts, viewdirs, features, mask)
        assert mlp_in.shape[-1] == self.in_mlpC
        return mlp_forward_from_x(mlp_in, self.kparams_orig, tile_n=tile_n)

    # pure-JAX f32 reference (matches PyTorch semantics exactly)
    def reference(self, pts, viewdirs, features, mask):
        x = self._build_input(pts, viewdirs, features, mask)
        p = self.params
        h1 = jnp.maximum(x @ p["W1"] + p["b1"], 0.0)
        h2 = jnp.maximum(h1 @ p["W2"] + p["b2"], 0.0)
        return jax.nn.sigmoid(h2 @ p["W3"] + p["b3"])


# ------------------------------------------------------------------
if __name__ == "__main__":
    inChanel = 4
    N = 200   # not a multiple of 128: exercises lane padding and the 2-step grid

    model = MLPRender(inChanel, viewpe=6, pospe=6, feape=6, featureC=128,
                      key=jax.random.PRNGKey(0))

    key = jax.random.PRNGKey(0)
    kp, kv, kf = jax.random.split(key, 3)
    pts = jax.random.normal(kp, (N, 3), jnp.float32)
    viewdirs = jax.random.normal(kv, (N, 3), jnp.float32)
    viewdirs = viewdirs / jnp.linalg.norm(viewdirs, axis=-1, keepdims=True)
    features = jax.random.normal(kf, (N, inChanel), jnp.float32)

    # --- fused path (all masks None) ---
    mask = {"pos": None, "view": None, "fea": None}
    rgb = jax.block_until_ready(model(pts, viewdirs, features, mask))
    ref = model.reference(pts, viewdirs, features, mask)
    assert rgb.shape == (N, 3)
    assert bool(jnp.all(jnp.isfinite(rgb)))
    err = float(jnp.max(jnp.abs(rgb - ref)))
    # bf16 matmuls with f32 accumulation -> loosened tolerance vs f32 reference
    assert err < 2e-2, err

    # --- masked fallback path ---
    mask2 = {"pos": 0.5 * jnp.ones((N, 2 * model.pospe * 3), jnp.float32),
             "view": None, "fea": None}
    rgb2 = jax.block_until_ready(model(pts, viewdirs, features, mask2))
    ref2 = model.reference(pts, viewdirs, features, mask2)
    assert rgb2.shape == (N, 3)
    err2 = float(jnp.max(jnp.abs(rgb2 - ref2)))
    assert err2 < 2e-2, err2

    print("KERNEL_OK")
</pallas_src>

<mosaic_0001>
module attributes {stable_mosaic.version = 11 : i64} {
  func.func @_fused_kernel(%arg0: i32, %arg1: memref<10x128xf32, #tpu.memory_space<vmem>>, %arg2: memref<128x1xf32, #tpu.memory_space<vmem>>, %arg3: memref<128x1xf32, #tpu.memory_space<vmem>>, %arg4: memref<128x128xbf16, #tpu.memory_space<vmem>>, %arg5: memref<128x1xf32, #tpu.memory_space<vmem>>, %arg6: memref<128x128xbf16, #tpu.memory_space<vmem>>, %arg7: memref<128x1xf32, #tpu.memory_space<vmem>>, %arg8: memref<8x128xbf16, #tpu.memory_space<vmem>>, %arg9: memref<8x1xf32, #tpu.memory_space<vmem>>, %arg10: memref<8x128xf32, #tpu.memory_space<vmem>>) attributes {dimension_semantics = [#tpu.dimension_semantics<parallel>], iteration_bounds = array<i64: 2>, scalar_prefetch = 0 : i64, scratch_operands = 0 : i64, tpu.core_type = #tpu.core_type<tc>, window_params = [{transform_indices = @transform_0, window_bounds = array<i64: 10, 128>}, {pipeline_mode = #tpu.pipeline_mode<synchronous>, transform_indices = @transform_1, window_bounds = array<i64: 128, 1>}, {pipeline_mode = #tpu.pipeline_mode<synchronous>, transform_indices = @transform_2, window_bounds = array<i64: 128, 1>}, {pipeline_mode = #tpu.pipeline_mode<synchronous>, transform_indices = @transform_3, window_bounds = array<i64: 128, 128>}, {pipeline_mode = #tpu.pipeline_mode<synchronous>, transform_indices = @transform_4, window_bounds = array<i64: 128, 1>}, {pipeline_mode = #tpu.pipeline_mode<synchronous>, transform_indices = @transform_5, window_bounds = array<i64: 128, 128>}, {pipeline_mode = #tpu.pipeline_mode<synchronous>, transform_indices = @transform_6, window_bounds = array<i64: 128, 1>}, {pipeline_mode = #tpu.pipeline_mode<synchronous>, transform_indices = @transform_7, window_bounds = array<i64: 8, 128>}, {pipeline_mode = #tpu.pipeline_mode<synchronous>, transform_indices = @transform_8, window_bounds = array<i64: 8, 1>}, {transform_indices = @transform_9, window_bounds = array<i64: 8, 128>}]} {
    %c0 = arith.constant 0 : index
    %c0_0 = arith.constant 0 : index
    %0 = vector.load %arg1[%c0, %c0_0] : memref<10x128xf32, #tpu.memory_space<vmem>>, vector<7x128xf32>
    %c7 = arith.constant 7 : index
    %c0_1 = arith.constant 0 : index
    %1 = vector.load %arg2[%c7, %c0_1] : memref<128x1xf32, #tpu.memory_space<vmem>>, vector<12x1xf32>
    %c7_2 = arith.constant 7 : index
    %c0_3 = arith.constant 0 : index
    %2 = vector.load %arg3[%c7_2, %c0_3] : memref<128x1xf32, #tpu.memory_space<vmem>>, vector<12x1xf32>
    %c0_4 = arith.constant 0 : index
    %c0_5 = arith.constant 0 : index
    %3 = vector.load %arg1[%c0_4, %c0_5] : memref<10x128xf32, #tpu.memory_space<vmem>>, vector<1x128xf32>
    %4 = vector.broadcast %3 : vector<1x128xf32> to vector<12x128xf32>
    %5 = vector.broadcast %1 : vector<12x1xf32> to vector<12x128xf32>
    %6 = arith.mulf %4, %5 : vector<12x128xf32>
    %7 = vector.broadcast %2 : vector<12x1xf32> to vector<12x128xf32>
    %8 = arith.addf %6, %7 : vector<12x128xf32>
    %9 = math.sin %8 : vector<12x128xf32>
    %c19 = arith.constant 19 : index
    %c0_6 = arith.constant 0 : index
    %10 = vector.load %arg2[%c19, %c0_6] : memref<128x1xf32, #tpu.memory_space<vmem>>, vector<12x1xf32>
    %c19_7 = arith.constant 19 : index
    %c0_8 = arith.constant 0 : index
    %11 = vector.load %arg3[%c19_7, %c0_8] : memref<128x1xf32, #tpu.memory_space<vmem>>, vector<12x1xf32>
    %c1 = arith.constant 1 : index
    %c0_9 = arith.constant 0 : index
    %12 = vector.load %arg1[%c1, %c0_9] : memref<10x128xf32, #tpu.memory_space<vmem>>, vector<1x128xf32>
    %13 = vector.broadcast %12 : vector<1x128xf32> to vector<12x128xf32>
    %14 = vector.broadcast %10 : vector<12x1xf32> to vector<12x128xf32>
    %15 = arith.mulf %13, %14 : vector<12x128xf32>
    %16 = vector.broadcast %11 : vector<12x1xf32> to vector<12x128xf32>
    %17 = arith.addf %15, %16 : vector<12x128xf32>
    %18 = math.sin %17 : vector<12x128xf32>
    %c31 = arith.constant 31 : index
    %c0_10 = arith.constant 0 : index
    %19 = vector.load %arg2[%c31, %c0_10] : memref<128x1xf32, #tpu.memory_space<vmem>>, vector<12x1xf32>
    %c31_11 = arith.constant 31 : index
    %c0_12 = arith.constant 0 : index
    %20 = vector.load %arg3[%c31_11, %c0_12] : memref<128x1xf32, #tpu.memory_space<vmem>>, vector<12x1xf32>
    %c2 = arith.constant 2 : index
    %c0_13 = arith.constant 0 : index
    %21 = vector.load %arg1[%c2, %c0_13] : memref<10x128xf32, #tpu.memory_space<vmem>>, vector<1x128xf32>
    %22 = vector.broadcast %21 : vector<1x128xf32> to vector<12x128xf32>
    %23 = vector.broadcast %19 : vector<12x1xf32> to vector<12x128xf32>
    %24 = arith.mulf %22, %23 : vector<12x128xf32>
    %25 = vector.broadcast %20 : vector<12x1xf32> to vector<12x128xf32>
    %26 = arith.addf %24, %25 : vector<12x128xf32>
    %27 = math.sin %26 : vector<12x128xf32>
    %c43 = arith.constant 43 : index
    %c0_14 = arith.constant 0 : index
    %28 = vector.load %arg2[%c43, %c0_14] : memref<128x1xf32, #tpu.memory_space<vmem>>, vector<12x1xf32>
    %c43_15 = arith.constant 43 : index
    %c0_16 = arith.constant 0 : index
    %29 = vector.load %arg3[%c43_15, %c0_16] : memref<128x1xf32, #tpu.memory_space<vmem>>, vector<12x1xf32>
    %c3 = arith.constant 3 : index
    %c0_17 = arith.constant 0 : index
    %30 = vector.load %arg1[%c3, %c0_17] : memref<10x128xf32, #tpu.memory_space<vmem>>, vector<1x128xf32>
    %31 = vector.broadcast %30 : vector<1x128xf32> to vector<12x128xf32>
    %32 = vector.broadcast %28 : vector<12x1xf32> to vector<12x128xf32>
    %33 = arith.mulf %31, %32 : vector<12x128xf32>
    %34 = vector.broadcast %29 : vector<12x1xf32> to vector<12x128xf32>
    %35 = arith.addf %33, %34 : vector<12x128xf32>
    %36 = math.sin %35 : vector<12x128xf32>
    %c55 = arith.constant 55 : index
    %c0_18 = arith.constant 0 : index
    %37 = vector.load %arg2[%c55, %c0_18] : memref<128x1xf32, #tpu.memory_space<vmem>>, vector<12x1xf32>
    %c55_19 = arith.constant 55 : index
    %c0_20 = arith.constant 0 : index
    %38 = vector.load %arg3[%c55_19, %c0_20] : memref<128x1xf32, #tpu.memory_space<vmem>>, vector<12x1xf32>
    %c4 = arith.constant 4 : index
    %c0_21 = arith.constant 0 : index
    %39 = vector.load %arg1[%c4, %c0_21] : memref<10x128xf32, #tpu.memory_space<vmem>>, vector<1x128xf32>
    %40 = vector.broadcast %39 : vector<1x128xf32> to vector<12x128xf32>
    %41 = vector.broadcast %37 : vector<12x1xf32> to vector<12x128xf32>
    %42 = arith.mulf %40, %41 : vector<12x128xf32>
    %43 = vector.broadcast %38 : vector<12x1xf32> to vector<12x128xf32>
    %44 = arith.addf %42, %43 : vector<12x128xf32>
    %45 = math.sin %44 : vector<12x128xf32>
    %c67 = arith.constant 67 : index
    %c0_22 = arith.constant 0 : index
    %46 = vector.load %arg2[%c67, %c0_22] : memref<128x1xf32, #tpu.memory_space<vmem>>, vector<12x1xf32>
    %c67_23 = arith.constant 67 : index
    %c0_24 = arith.constant 0 : index
    %47 = vector.load %arg3[%c67_23, %c0_24] : memref<128x1xf32, #tpu.memory_space<vmem>>, vector<12x1xf32>
    %c5 = arith.constant 5 : index
    %c0_25 = arith.constant 0 : index
    %48 = vector.load %arg1[%c5, %c0_25] : memref<10x128xf32, #tpu.memory_space<vmem>>, vector<1x128xf32>
    %49 = vector.broadcast %48 : vector<1x128xf32> to vector<12x128xf32>
    %50 = vector.broadcast %46 : vector<12x1xf32> to vector<12x128xf32>
    %51 = arith.mulf %49, %50 : vector<12x128xf32>
    %52 = vector.broadcast %47 : vector<12x1xf32> to vector<12x128xf32>
    %53 = arith.addf %51, %52 : vector<12x128xf32>
    %54 = math.sin %53 : vector<12x128xf32>
    %c79 = arith.constant 79 : index
    %c0_26 = arith.constant 0 : index
    %55 = vector.load %arg2[%c79, %c0_26] : memref<128x1xf32, #tpu.memory_space<vmem>>, vector<12x1xf32>
    %c79_27 = arith.constant 79 : index
    %c0_28 = arith.constant 0 : index
    %56 = vector.load %arg3[%c79_27, %c0_28] : memref<128x1xf32, #tpu.memory_space<vmem>>, vector<12x1xf32>
    %c6 = arith.constant 6 : index
    %c0_29 = arith.constant 0 : index
    %57 = vector.load %arg1[%c6, %c0_29] : memref<10x128xf32, #tpu.memory_space<vmem>>, vector<1x128xf32>
    %58 = vector.broadcast %57 : vector<1x128xf32> to vector<12x128xf32>
    %59 = vector.broadcast %55 : vector<12x1xf32> to vector<12x128xf32>
    %60 = arith.mulf %58, %59 : vector<12x128xf32>
    %61 = vector.broadcast %56 : vector<12x1xf32> to vector<12x128xf32>
    %62 = arith.addf %60, %61 : vector<12x128xf32>
    %63 = math.sin %62 : vector<12x128xf32>
    %c91 = arith.constant 91 : index
    %c0_30 = arith.constant 0 : index
    %64 = vector.load %arg2[%c91, %c0_30] : memref<128x1xf32, #tpu.memory_space<vmem>>, vector<12x1xf32>
    %c91_31 = arith.constant 91 : index
    %c0_32 = arith.constant 0 : index
    %65 = vector.load %arg3[%c91_31, %c0_32] : memref<128x1xf32, #tpu.memory_space<vmem>>, vector<12x1xf32>
    %c7_33 = arith.constant 7 : index
    %c0_34 = arith.constant 0 : index
    %66 = vector.load %arg1[%c7_33, %c0_34] : memref<10x128xf32, #tpu.memory_space<vmem>>, vector<1x128xf32>
    %67 = vector.broadcast %66 : vector<1x128xf32> to vector<12x128xf32>
    %68 = vector.broadcast %64 : vector<12x1xf32> to vector<12x128xf32>
    %69 = arith.mulf %67, %68 : vector<12x128xf32>
    %70 = vector.broadcast %65 : vector<12x1xf32> to vector<12x128xf32>
    %71 = arith.addf %69, %70 : vector<12x128xf32>
    %72 = math.sin %71 : vector<12x128xf32>
    %c103 = arith.constant 103 : index
    %c0_35 = arith.constant 0 : index
    %73 = vector.load %arg2[%c103, %c0_35] : memref<128x1xf32, #tpu.memory_space<vmem>>, vector<12x1xf32>
    %c103_36 = arith.constant 103 : index
    %c0_37 = arith.constant 0 : index
    %74 = vector.load %arg3[%c103_36, %c0_37] : memref<128x1xf32, #tpu.memory_space<vmem>>, vector<12x1xf32>
    %c8 = arith.constant 8 : index
    %c0_38 = arith.constant 0 : index
    %75 = vector.load %arg1[%c8, %c0_38] : memref<10x128xf32, #tpu.memory_space<vmem>>, vector<1x128xf32>
    %76 = vector.broadcast %75 : vector<1x128xf32> to vector<12x128xf32>
    %77 = vector.broadcast %73 : vector<12x1xf32> to vector<12x128xf32>
    %78 = arith.mulf %76, %77 : vector<12x128xf32>
    %79 = vector.broadcast %74 : vector<12x1xf32> to vector<12x128xf32>
    %80 = arith.addf %78, %79 : vector<12x128xf32>
    %81 = math.sin %80 : vector<12x128xf32>
    %c115 = arith.constant 115 : index
    %c0_39 = arith.constant 0 : index
    %82 = vector.load %arg2[%c115, %c0_39] : memref<128x1xf32, #tpu.memory_space<vmem>>, vector<12x1xf32>
    %c115_40 = arith.constant 115 : index
    %c0_41 = arith.constant 0 : index
    %83 = vector.load %arg3[%c115_40, %c0_41] : memref<128x1xf32, #tpu.memory_space<vmem>>, vector<12x1xf32>
    %c9 = arith.constant 9 : index
    %c0_42 = arith.constant 0 : index
    %84 = vector.load %arg1[%c9, %c0_42] : memref<10x128xf32, #tpu.memory_space<vmem>>, vector<1x128xf32>
    %85 = vector.broadcast %84 : vector<1x128xf32> to vector<12x128xf32>
    %86 = vector.broadcast %82 : vector<12x1xf32> to vector<12x128xf32>
    %87 = arith.mulf %85, %86 : vector<12x128xf32>
    %88 = vector.broadcast %83 : vector<12x1xf32> to vector<12x128xf32>
    %89 = arith.addf %87, %88 : vector<12x128xf32>
    %90 = math.sin %89 : vector<12x128xf32>
    %cst = arith.constant 0.000000e+00 : f32
    %91 = vector.broadcast %cst : f32 to vector<1x128xf32>
    %92 = tpu.concatenate %0, %9, %18, %27, %36, %45, %54, %63, %72, %81, %90, %91 in 0 : vector<7x128xf32>, vector<12x128xf32>, vector<12x128xf32>, vector<12x128xf32>, vector<12x128xf32>, vector<12x128xf32>, vector<12x128xf32>, vector<12x128xf32>, vector<12x128xf32>, vector<12x128xf32>, vector<12x128xf32>, vector<1x128xf32> -> vector<128x128xf32>
    %93 = arith.truncf %92 : vector<128x128xf32> to vector<128x128xbf16>
    %c0_43 = arith.constant 0 : index
    %c0_44 = arith.constant 0 : index
    %94 = vector.load %arg4[%c0_43, %c0_44] : memref<128x128xbf16, #tpu.memory_space<vmem>>, vector<128x128xbf16>
    %c0_45 = arith.constant 0 : index
    %c0_46 = arith.constant 0 : index
    %95 = vector.load %arg5[%c0_45, %c0_46] : memref<128x1xf32, #tpu.memory_space<vmem>>, vector<128x1xf32>
    %c0_47 = arith.constant 0 : index
    %c0_48 = arith.constant 0 : index
    %96 = vector.load %arg6[%c0_47, %c0_48] : memref<128x128xbf16, #tpu.memory_space<vmem>>, vector<128x128xbf16>
    %c0_49 = arith.constant 0 : index
    %c0_50 = arith.constant 0 : index
    %97 = vector.load %arg7[%c0_49, %c0_50] : memref<128x1xf32, #tpu.memory_space<vmem>>, vector<128x1xf32>
    %c0_51 = arith.constant 0 : index
    %c0_52 = arith.constant 0 : index
    %98 = vector.load %arg8[%c0_51, %c0_52] : memref<8x128xbf16, #tpu.memory_space<vmem>>, vector<8x128xbf16>
    %c0_53 = arith.constant 0 : index
    %c0_54 = arith.constant 0 : index
    %99 = vector.load %arg9[%c0_53, %c0_54] : memref<8x1xf32, #tpu.memory_space<vmem>>, vector<8x1xf32>
    %cst_55 = arith.constant dense<0.000000e+00> : vector<128x128xf32>
    %100 = tpu.matmul %94, %93, %cst_55 {dimension_numbers = #tpu.dot_dimension_numbers<[1], [0], [0], [1], [0, 0, 1, 1], [], []>} : vector<128x128xbf16>, vector<128x128xbf16>, vector<128x128xf32> -> vector<128x128xf32>
    %101 = vector.broadcast %95 : vector<128x1xf32> to vector<128x128xf32>
    %102 = arith.addf %100, %101 : vector<128x128xf32>
    %cst_56 = arith.constant 0.000000e+00 : f32
    %103 = vector.broadcast %cst_56 : f32 to vector<128x128xf32>
    %104 = arith.maximumf %102, %103 : vector<128x128xf32>
    %105 = arith.truncf %104 : vector<128x128xf32> to vector<128x128xbf16>
    %cst_57 = arith.constant dense<0.000000e+00> : vector<128x128xf32>
    %106 = tpu.matmul %96, %105, %cst_57 {dimension_numbers = #tpu.dot_dimension_numbers<[1], [0], [0], [1], [0, 0, 1, 1], [], []>} : vector<128x128xbf16>, vector<128x128xbf16>, vector<128x128xf32> -> vector<128x128xf32>
    %107 = vector.broadcast %97 : vector<128x1xf32> to vector<128x128xf32>
    %108 = arith.addf %106, %107 : vector<128x128xf32>
    %cst_58 = arith.constant 0.000000e+00 : f32
    %109 = vector.broadcast %cst_58 : f32 to vector<128x128xf32>
    %110 = arith.maximumf %108, %109 : vector<128x128xf32>
    %111 = arith.truncf %110 : vector<128x128xf32> to vector<128x128xbf16>
    %cst_59 = arith.constant dense<0.000000e+00> : vector<8x128xf32>
    %112 = tpu.matmul %98, %111, %cst_59 {dimension_numbers = #tpu.dot_dimension_numbers<[1], [0], [0], [1], [0, 0, 1, 1], [], []>} : vector<8x128xbf16>, vector<128x128xbf16>, vector<8x128xf32> -> vector<8x128xf32>
    %113 = vector.broadcast %99 : vector<8x1xf32> to vector<8x128xf32>
    %114 = arith.addf %112, %113 : vector<8x128xf32>
    %115 = arith.negf %114 : vector<8x128xf32>
    %116 = math.exp %115 : vector<8x128xf32>
    %cst_60 = arith.constant 1.000000e+00 : f32
    %117 = vector.broadcast %cst_60 : f32 to vector<8x128xf32>
    %118 = arith.addf %117, %116 : vector<8x128xf32>
    %119 = arith.divf %117, %118 : vector<8x128xf32>
    %c0_61 = arith.constant 0 : index
    %c0_62 = arith.constant 0 : index
    %120 = vector.load %arg10[%c0_61, %c0_62] : memref<8x128xf32, #tpu.memory_space<vmem>>, vector<8x128xf32>
    tpu.vector_store %arg10[%c0_61, %c0_62], %119 {strides = array<i32>} : memref<8x128xf32, #tpu.memory_space<vmem>>, vector<8x128xf32>,
    return
  }
  func.func @transform_0(%arg0: i32) -> (i32, i32) {
    %c0_i32 = arith.constant 0 : i32
    %c0_i32_0 = arith.constant 0 : i32
    return %c0_i32, %arg0 : i32, i32
  }
  func.func @transform_1(%arg0: i32) -> (i32, i32) {
    %c0_i32 = arith.constant 0 : i32
    %c0_i32_0 = arith.constant 0 : i32
    %c0_i32_1 = arith.constant 0 : i32
    return %c0_i32, %c0_i32_0 : i32, i32
  }
  func.func @transform_2(%arg0: i32) -> (i32, i32) {
    %c0_i32 = arith.constant 0 : i32
    %c0_i32_0 = arith.constant 0 : i32
    %c0_i32_1 = arith.constant 0 : i32
    return %c0_i32, %c0_i32_0 : i32, i32
  }
  func.func @transform_3(%arg0: i32) -> (i32, i32) {
    %c0_i32 = arith.constant 0 : i32
    %c0_i32_0 = arith.constant 0 : i32
    %c0_i32_1 = arith.constant 0 : i32
    return %c0_i32, %c0_i32_0 : i32, i32
  }
  func.func @transform_4(%arg0: i32) -> (i32, i32) {
    %c0_i32 = arith.constant 0 : i32
    %c0_i32_0 = arith.constant 0 : i32
    %c0_i32_1 = arith.constant 0 : i32
    return %c0_i32, %c0_i32_0 : i32, i32
  }
  func.func @transform_5(%arg0: i32) -> (i32, i32) {
    %c0_i32 = arith.constant 0 : i32
    %c0_i32_0 = arith.constant 0 : i32
    %c0_i32_1 = arith.constant 0 : i32
    return %c0_i32, %c0_i32_0 : i32, i32
  }
  func.func @transform_6(%arg0: i32) -> (i32, i32) {
    %c0_i32 = arith.constant 0 : i32
    %c0_i32_0 = arith.constant 0 : i32
    %c0_i32_1 = arith.constant 0 : i32
    return %c0_i32, %c0_i32_0 : i32, i32
  }
  func.func @transform_7(%arg0: i32) -> (i32, i32) {
    %c0_i32 = arith.constant 0 : i32
    %c0_i32_0 = arith.constant 0 : i32
    %c0_i32_1 = arith.constant 0 : i32
    return %c0_i32, %c0_i32_0 : i32, i32
  }
  func.func @transform_8(%arg0: i32) -> (i32, i32) {
    %c0_i32 = arith.constant 0 : i32
    %c0_i32_0 = arith.constant 0 : i32
    %c0_i32_1 = arith.constant 0 : i32
    return %c0_i32, %c0_i32_0 : i32, i32
  }
  func.func @transform_9(%arg0: i32) -> (i32, i32) {
    %c0_i32 = arith.constant 0 : i32
    %c0_i32_0 = arith.constant 0 : i32
    return %c0_i32, %arg0 : i32, i32
  }
}

</mosaic_0001>

<bundles_post_ra>
// kernel: tpu_custom_call.1
= control target key start
LH: loop header
LB: loop body
LE: loop exit
PB: predicated region body
PF: predicated region fallthrough
CT: control target
= control target key end

     0   :  { %14 = vsyncpa [#allocation4], 0  ;;  %s6531_s0 = inlined_call_operand.vmem [shape: f32[10,256], index: 0, kind: input, shape index: {}]   ;;  %s6532_s1 = inlined_call_operand.vmem [shape: f32[128,1], index: 1, kind: input, shape index: {}]   ;;  %s6533_s2 = inlined_call_operand.vmem [shape: f32[128,1], index: 2, kind: input, shape index: {}]   ;;  %s6534_s3 = inlined_call_operand.vmem [shape: bf16[128,128], index: 3, kind: input, shape index: {}]   ;;  %s6535_s4 = inlined_call_operand.vmem [shape: f32[128,1], index: 4, kind: input, shape index: {}]   ;;  %s6536_s5 = inlined_call_operand.vmem [shape: bf16[128,128], index: 5, kind: input, shape index: {}]   ;;  %s6537_s6 = inlined_call_operand.vmem [shape: f32[128,1], index: 6, kind: input, shape index: {}]   ;;  %s6538_s7 = inlined_call_operand.vmem [shape: bf16[8,128], index: 7, kind: input, shape index: {}]   ;;  %s6539_s8 = inlined_call_operand.vmem [shape: f32[8,1], index: 8, kind: input, shape index: {}]   ;;  %s6540_s9 = inlined_call_operand.hbm [shape: f32[8,256], index: 9, kind: output, shape index: {}]  }
   0x1   :  { %16 = vsyncpa [#allocation4 + $0x1], 0  ;;  %s4174_s30 = smov 0   ;;  %s4176_s10 = smov 0  }
   0x2   :  { %s4178_s11 = smov 0   ;;  %s4180_s12 = smov 0  }
   0x3 LB: > { %s3572_s13 = sadd.s32 4294967295, %s4111_s12   ;;  %s3573_s14 = sadd.s32 4294967294, %s4111_s12   ;;  %s4111_s12 = sphi %s4180_s12, %s6791_s12   ;;  %s4107_s11 = sphi %s4178_s11, %s6790_s11   ;;  %s4103_s10 = sphi %s4176_s10, %s6789_s10   ;;  %s4099_s30 = sphi %s4174_s30, %s6788_s30  }
   0x4   : > { %s4197_s15 = sadd.s32 1, %s4111_s12   ;;  %s29_s16 = sadd.s32 1, %s4107_s11 }
   0x5   : > { %s26_s17 = ssub.s32 %s4111_s12, %s4197_s15  ;;  %p36_p0 = scmp.ne.s32.totalorder %s4107_s11, %s4103_s10 }
   0x6   : > { %p27_p1 = scmp.eq.s32.totalorder %s26_s17, 0  ;;  %p37_p2 = scmp.eq.s32.totalorder %s4111_s12, 0 }
   0x7   : > { %p234_p3 = scmp.eq.s32.totalorder %s3572_s13, 1  ;;  %p239_p4 = scmp.ne.s32.totalorder %s4103_s10, %s4099_s30 }
   0x8   : > { %s4210_s18 = scalar_select %p27_p1, %s4107_s11, %s29_s16  }
   0x9   : > { %p38_p5 = por %p37_p2, %p36_p0  ;;  %p4212_p6 = por %p234_p3, %p36_p0 }
   0xa   : > { %p240_p7 = scmp.eq.s32.totalorder %s3573_s14, 1  ;;  %p3575_p9 = scmp.ge.s32.totalorder %s4111_s12, 2 }
   0xc   : > { %p4216_p8 = por %p240_p7, %p239_p4  ;;  %280 = sbr.rel (%p3575_p9) target bundleno = 22 (0x16), region = 48 }
  0x11   : > { %283 = sbr.rel (!%p38_p5) target bundleno = 22 (0x16), region = 52  ;;  %s285_s21 = sand.u32 (%p38_p5), 1, %s4107_s11  }
  0x12   : > { %s3577_s22 = sshll.u32 (%p38_p5), %s4111_s12, 3  ;;  %s3576_s23 = sshll.u32 (%p38_p5), %s285_s21, 4 }
  0x13   : > { %s289_s26 = scalar_lea.vmem (%p38_p5), %s6531_s0, %s3577_s22  ;;  %s287_s27 = scalar_lea.vmem (%p38_p5), [#allocation2], %s3576_s23 }
  0x14   : > { %v320_v0 = vld [vmem:[%s289_s26] sm:$0xff] (%p38_p5)  ;;  %v322_v1 = vld [vmem:[%s289_s26 + $0x10] sm:$0xff] (%p38_p5) }
  0x15   : > { %321 = vst [vmem:[%s287_s27] sm:$0xff] (%p38_p5), %v320_v0  ;;  %323 = vst [vmem:[%s287_s27 + $0x8] sm:$0xff] (%p38_p5), %v322_v1 }
  0x16 PF: > { %p3578_p10 = scmp.ge.s32.totalorder %s4111_s12, 1  ;;  %p328_p11 = scmp.lt.s32.totalorder %s4111_s12, 3 }
  0x18   : > { %p329_p12 = pnand %p3578_p10, %p328_p11 }
  0x1a   : > { %332 = sbr.rel (%p329_p12) target bundleno = 1453 (0x5ad), region = 90 }
  0x1f   : > { %v2542_v2 = vld [vmem:[%s6532_s1 + $0x7b] sm:$0xf]  ;;  %v2301_v3 = vld [vmem:[%s6532_s1 + $0x6f] sm:$0xf]  ;;  %v4113_v4 = vmov 0   ;;  %v2541_v6 = vld [vmem:[%s6532_s1 + $0x73] sm:$0xff] }
  0x20   : > { %3950 = vset.pattern.permute.xlu1 %v4113_v4  ;;  %3949 = vset.pattern.permute.xlu0 %v4113_v4  ;;  %v2303_v5 = vld [vmem:[%s6533_s2 + $0x6f] sm:$0xf]  ;;  %v2544_v7 = vld [vmem:[%s6533_s2 + $0x7b] sm:$0xf]  ;;  %v2543_v8 = vld [vmem:[%s6533_s2 + $0x73] sm:$0xff]  ;;  %s4411_s28 = sand.u32 1, %s4103_s10  }
  0x21   : > { %2557 = vperm.xlu1 %3950, %v2542_v2   ;;  %2316 = vperm.xlu0 %3949, %v2301_v3   ;;  %v2060_v9 = vld [vmem:[%s6532_s1 + $0x63] sm:$0xf]  ;;  %v2059_v10 = vld [vmem:[%s6532_s1 + $0x5b] sm:$0xff]  ;;  %v2300_v12 = vld [vmem:[%s6532_s1 + $0x67] sm:$0xff]  ;;  %s3579_s21 = sshll.u32 %s4411_s28, 4  ;;  %s3580_s25 = sshll.u32 %s4411_s28, 3 }
  0x22   : > { %v2061_v11 = vld [vmem:[%s6533_s2 + $0x5b] sm:$0xff]  ;;  %v2302_v13 = vld [vmem:[%s6533_s2 + $0x67] sm:$0xff]  ;;  %v2062_v14 = vld [vmem:[%s6533_s2 + $0x63] sm:$0xf]  ;;  %s4426_s26 = scalar_lea.vmem [#allocation2], %s3579_s21  ;;  %s3692_s27 = sshll.u32 %s3572_s13, 7 }
  0x23   : > { %v1819_v15 = vld [vmem:[%s6532_s1 + $0x57] sm:$0xf]  ;;  %v1818_v16 = vld [vmem:[%s6532_s1 + $0x4f] sm:$0xff]  ;;  %v1578_v19 = vld [vmem:[%s6532_s1 + $0x4b] sm:$0xf]  ;;  %s369_s29 = scalar_lea.vmem [#allocation3], %s3580_s25  ;;  %s6494_s17 = scalar_lea.hbm %s6540_s9, %s3692_s27 }
  0x24   : > { %v1821_v17 = vld [vmem:[%s6533_s2 + $0x57] sm:$0xf]  ;;  %v1820_v18 = vld [vmem:[%s6533_s2 + $0x4f] sm:$0xff]  ;;  %v1577_v20 = vld [vmem:[%s6532_s1 + $0x43] sm:$0xff]  ;;  %s3508_s14 = sshll.u32 %s369_s29, 4  ;;  %s3495_s21 = scalar_lea.sflag [#allocation4], %s4411_s28  ;;  %s3509_s14 = int_to_ptr.vmem [resolvable:$true] %s3508_s14 }
  0x25   : > { %2328 = vperm.xlu1 %3950, %v2303_v5   ;;  %2552 = vperm.xlu0 %3949, %v2541_v6   ;;  %v1579_v21 = vld [vmem:[%s6533_s2 + $0x43] sm:$0xff]  ;;  %v1337_v22 = vld [vmem:[%s6532_s1 + $0x3f] sm:$0xf]  ;;  %v1580_v24 = vld [vmem:[%s6533_s2 + $0x4b] sm:$0xf]  ;;  %s4051_s22 = scalar_lea.vmem %s3509_s14, 128 }
  0x26   : > { %v1339_v23 = vld [vmem:[%s6533_s2 + $0x3f] sm:$0xf]  ;;  %v1096_v25 = vld [vmem:[%s6532_s1 + $0x33] sm:$0xf]  ;;  %v1095_v26 = vld [vmem:[%s6532_s1 + $0x2b] sm:$0xff]  ;;  %p4052_p13 = scmp.ne.s32.totalorder %s3509_s14, %s4051_s22  ;;  %s4123_s23 = smov [#allocation3]  }
  0x27   : > { %v1097_v27 = vld [vmem:[%s6533_s2 + $0x2b] sm:$0xff]  ;;  %v1336_v28 = vld [vmem:[%s6532_s1 + $0x37] sm:$0xff]  ;;  %v1098_v30 = vld [vmem:[%s6533_s2 + $0x33] sm:$0xf]  ;;  %s4055_s24 = sshll.u32 %s4123_s23, 4  ;;  %s4056_s24 = int_to_ptr.vmem [resolvable:$false] %s4055_s24 }
  0x28   : > { %v1338_v29 = vld [vmem:[%s6533_s2 + $0x37] sm:$0xff]  ;;  %v855_v31 = vld [vmem:[%s6532_s1 + $0x27] sm:$0xf]  ;;  %v854_v32 = vld [vmem:[%s6532_s1 + $0x1f] sm:$0xff]  ;;  %p4053_p0 = pnand %p4052_p13, %p4212_p6  ;;  %s4057_s13 = scalar_lea.vmem %s4056_s24, 256 }
  0x29   : > { %2569 = vperm.xlu1 %3950, %v2544_v7   ;;  %2564 = vperm.xlu0 %3949, %v2543_v8   ;;  %v857_v33 = vld [vmem:[%s6533_s2 + $0x27] sm:$0xf]  ;;  %v856_v34 = vld [vmem:[%s6533_s2 + $0x1f] sm:$0xff]  ;;  %v614_v35 = vld [vmem:[%s6532_s1 + $0x1b] sm:$0xf]  ;;  %p4058_p2 = scmp.lt.s32.totalorder %s3509_s14, %s4056_s24  ;;  %p4059_p3 = scmp.lt.s32.totalorder %s4057_s13, %s4051_s22 }
  0x2a   : > { %v613_v36 = vld [vmem:[%s6532_s1 + $0x13] sm:$0xff]  ;;  %v373_v38 = vld [vmem:[%s6532_s1 + $0xf] sm:$0xf]  ;;  %v616_v40 = vld [vmem:[%s6533_s2 + $0x1b] sm:$0xf]  ;;  %p4054_p1 = pneg %p4053_p0 }
  0x2b   : > { %v615_v37 = vld [vmem:[%s6533_s2 + $0x13] sm:$0xff]  ;;  %v375_v39 = vld [vmem:[%s6533_s2 + $0xf] sm:$0xf]  ;;  %v374_v41 = vld [vmem:[%s6533_s2 + $0x7] sm:$0xff]  ;;  %p4060_p4 = por %p4059_p3, %p4058_p2 }
  0x2c   : > { %v372_v42 = vld [vmem:[%s6532_s1 + $0x7] sm:$0xff]  ;;  %v2909_v43 = vld [vmem:[%s6535_s4 + $0x78] sm:$0xff]  ;;  %v2908_v44 = vld [vmem:[%s6535_s4 + $0x70] sm:$0xff] }
  0x2d   : > { %2075 = vperm.xlu1 %3950, %v2060_v9   ;;  %2070 = vperm.xlu0 %3949, %v2059_v10   ;;  %v2907_v45 = vld [vmem:[%s6535_s4 + $0x68] sm:$0xff]  ;;  %v2906_v46 = vld [vmem:[%s6535_s4 + $0x60] sm:$0xff]  ;;  %v2905_v47 = vld [vmem:[%s6535_s4 + $0x58] sm:$0xff]  ;;  %p4061_p5 = pnand %p4060_p4, %p4054_p1 }
  0x2e   : > { %v2904_v48 = vld [vmem:[%s6535_s4 + $0x50] sm:$0xff]  ;;  %v2903_v49 = vld [vmem:[%s6535_s4 + $0x48] sm:$0xff]  ;;  %v2902_v50 = vld [vmem:[%s6535_s4 + $0x40] sm:$0xff] }
  0x2f   : > { %v2901_v51 = vld [vmem:[%s6535_s4 + $0x38] sm:$0xff]  ;;  %v2900_v52 = vld [vmem:[%s6535_s4 + $0x30] sm:$0xff]  ;;  %v2899_v53 = vld [vmem:[%s6535_s4 + $0x28] sm:$0xff] }
  0x30   : > { %v2898_v54 = vld [vmem:[%s6535_s4 + $0x20] sm:$0xff]  ;;  %v2897_v55 = vld [vmem:[%s6535_s4 + $0x18] sm:$0xff]  ;;  %v2896_v56 = vld [vmem:[%s6535_s4 + $0x10] sm:$0xff] }
  0x31   : > { %2082 = vperm.xlu1 %3950, %v2061_v11   ;;  %2311 = vperm.xlu0 %3949, %v2300_v12   ;;  %v2895_v57 = vld [vmem:[%s6535_s4 + $0x8] sm:$0xff]  ;;  %v2894_v58 = vld [vmem:[%s6535_s4] sm:$0xff]  ;;  %v2941_v59 = vld [vmem:[%s6537_s6 + $0x78] sm:$0xff] }
  0x32   : > { %v2940_v60 = vld [vmem:[%s6537_s6 + $0x70] sm:$0xff]  ;;  %v2939_v61 = vld [vmem:[%s6537_s6 + $0x68] sm:$0xff]  ;;  %v2938_v62 = vld [vmem:[%s6537_s6 + $0x60] sm:$0xff] }
  0x33   : > { %v2937_v63 = vld [vmem:[%s6537_s6 + $0x58] sm:$0xff]  ;;  %v2936_v0 = vld [vmem:[%s6537_s6 + $0x50] sm:$0xff]  ;;  %v2935_v1 = vld [vmem:[%s6537_s6 + $0x48] sm:$0xff] }
  0x34   : > { %v2934_v2 = vld [vmem:[%s6537_s6 + $0x40] sm:$0xff]  ;;  %v4429_v5 = vld [vmem:[%s4426_s26 + $0x8] ss:$0 sm:$0xff]  ;;  %v2932_v7 = vld [vmem:[%s6537_s6 + $0x30] sm:$0xff] }
  0x35   : > { %2323 = vperm.xlu1 %3950, %v2302_v13   ;;  %2087 = vperm.xlu0 %3949, %v2062_v14   ;;  %v2933_v6 = vld [vmem:[%s6537_s6 + $0x38] sm:$0xff]  ;;  %v2931_v13 = vld [vmem:[%s6537_s6 + $0x28] sm:$0xff]  ;;  %v2930_v14 = vld [vmem:[%s6537_s6 + $0x20] sm:$0xff] }
  0x36   : > { %v3662_v9 = vld [vmem:[%s4426_s26 + $0x9] ss:$0 sm:$0xff] }
  0x39   : > { %1834 = vperm.xlu1 %3950, %v1819_v15   ;;  %1829 = vperm.xlu0 %3949, %v1818_v16  }
  0x3d   : > { %1846 = vperm.xlu1 %3950, %v1821_v17   ;;  %1841 = vperm.xlu0 %3949, %v1820_v18  }
  0x41   : > { %1593 = vperm.xlu1 %3950, %v1578_v19   ;;  %1588 = vperm.xlu0 %3949, %v1577_v20  }
  0x45   : > { %1600 = vperm.xlu1 %3950, %v1579_v21   ;;  %1352 = vperm.xlu0 %3949, %v1337_v22  }
  0x49   : > { %1364 = vperm.xlu1 %3950, %v1339_v23   ;;  %1605 = vperm.xlu0 %3949, %v1580_v24  }
  0x4d   : > { %1111 = vperm.xlu1 %3950, %v1096_v25   ;;  %1106 = vperm.xlu0 %3949, %v1095_v26   ;;  %v2929_v25 = vld [vmem:[%s6537_s6 + $0x18] sm:$0xff]  ;;  %v2928_v26 = vld [vmem:[%s6537_s6 + $0x10] sm:$0xff] }
  0x51   : > { %1118 = vperm.xlu1 %3950, %v1097_v27   ;;  %1347 = vperm.xlu0 %3949, %v1336_v28  }
  0x55   : > { %1359 = vperm.xlu1 %3950, %v1338_v29   ;;  %1123 = vperm.xlu0 %3949, %v1098_v30  }
  0x59   : > { %870 = vperm.xlu1 %3950, %v855_v31   ;;  %865 = vperm.xlu0 %3949, %v854_v32  }
  0x5d   : > { %882 = vperm.xlu1 %3950, %v857_v33   ;;  %877 = vperm.xlu0 %3949, %v856_v34   ;;  %v2927_v34 = vld [vmem:[%s6537_s6 + $0x8] sm:$0xff] }
  0x61   : > { %629 = vperm.xlu1 %3950, %v614_v35   ;;  %624 = vperm.xlu0 %3949, %v613_v36   ;;  %v2926_v35 = vld [vmem:[%s6537_s6] sm:$0xff] }
  0x65   : > { %636 = vperm.xlu1 %3950, %v615_v37   ;;  %388 = vperm.xlu0 %3949, %v373_v38  }
  0x69   : > { %400 = vperm.xlu1 %3950, %v375_v39   ;;  %641 = vperm.xlu0 %3949, %v616_v40  }
  0x6d   : > { %395 = vperm.xlu1 %3950, %v374_v41   ;;  %383 = vperm.xlu0 %3949, %v372_v42  }
  0x71   : > { %3021 = vperm.xlu1 %3950, %v2909_v43   ;;  %3016 = vperm.xlu0 %3949, %v2908_v44  }
  0x75   : > { %3011 = vperm.xlu1 %3950, %v2907_v45   ;;  %3006 = vperm.xlu0 %3949, %v2906_v46  }
  0x79   : > { %3001 = vperm.xlu1 %3950, %v2905_v47   ;;  %2996 = vperm.xlu0 %3949, %v2904_v48  }
  0x7d   : > { %2991 = vperm.xlu1 %3950, %v2903_v49   ;;  %2986 = vperm.xlu0 %3949, %v2902_v50   ;;  %v2943_v49 = vld [vmem:[%s6539_s8] sm:$0xff] }
  0x81   : > { %2981 = vperm.xlu1 %3950, %v2901_v51   ;;  %2976 = vperm.xlu0 %3949, %v2900_v52   ;;  %v6551_v51 = vmov 683565275  }
  0x85   : > { %2971 = vperm.xlu1 %3950, %v2899_v53   ;;  %2966 = vperm.xlu0 %3949, %v2898_v54   ;;  %v6553_v53 = vmov 2475754826  }
  0x89   : > { %2961 = vperm.xlu1 %3950, %v2897_v55   ;;  %2956 = vperm.xlu0 %3949, %v2896_v56   ;;  %v6543_v56 = vmov 2131351028  }
  0x8d   : > { %2951 = vperm.xlu1 %3950, %v2895_v57   ;;  %2946 = vperm.xlu0 %3949, %v2894_v58   ;;  %v6545_v58 = vmov 2102212464  }
  0x91   : > { %3270 = vperm.xlu1 %3950, %v2941_v59   ;;  %3265 = vperm.xlu0 %3949, %v2940_v60   ;;  %v6547_v60 = vmov 920167782  }
  0x95   : > { %3260 = vperm.xlu1 %3950, %v2939_v61   ;;  %3255 = vperm.xlu0 %3949, %v2938_v62  }
  0x99   : > { %3250 = vperm.xlu1 %3950, %v2937_v63   ;;  %3245 = vperm.xlu0 %3949, %v2936_v0  }
  0x9c   : > { %v2558_v3 = vpop.permute.xlu1 %2557  ;;  %v2317_v4 = vpop.permute.xlu0 %2316 }
  0x9d   : > { %3240 = vperm.xlu1 %3950, %v2935_v1   ;;  %3235 = vperm.xlu0 %3949, %v2934_v2   ;;  %v2320_v8 = vmul.f32 %v4429_v5, %v2317_v4  ;;  %v2561_v15 = vmul.f32 %v3662_v9, %v2558_v3  ;;  %v6549_v3 = vmov 1326507024  }
  0xa0   : > { %v2329_v10 = vpop.permute.xlu1 %2328  ;;  %v2553_v11 = vpop.permute.xlu0 %2552 }
  0xa1   : > { %v4439_v12 = vadd.f32 %v2329_v10, %v2320_v8  ;;  %3230 = vperm.xlu1 %3950, %v2933_v6   ;;  %3225 = vperm.xlu0 %3949, %v2932_v7   ;;  %v2560_v18 = vmul.f32 %v3662_v9, %v2553_v11 }
  0xa3   : > { %v2437_v16 = vand.u32 2147483647, %v4439_v12  ;;  %v2440_v17 = vand.u32 2139095040, %v4439_v12 }
  0xa4   : > { %v2570_v19 = vpop.permute.xlu1 %2569  ;;  %v2565_v20 = vpop.permute.xlu0 %2564 }
  0xa5   : > { %v2441_v21 = vshrl.u32 %v2440_v17, 23  ;;  %v2444_v22 = vand.u32 8388607, %v2437_v16  ;;  %v4451_v23 = vadd.f32 %v2570_v19, %v2561_v15  ;;  %3220 = vperm.xlu1 %3950, %v2931_v13   ;;  %3215 = vperm.xlu0 %3949, %v2930_v14   ;;  %v4453_v24 = vadd.f32 %v2565_v20, %v2560_v18 }
  0xa7   : > { %6620 = vst [vmem:[#allocation6_spill] sm:$0xff] %v4451_v23  ;;  %v3658_v27 = vadd.s32 4294967169, %v2441_v21  ;;  %v2678_v28 = vand.u32 2147483647, %v4451_v23  ;;  %v2681_v29 = vand.u32 2139095040, %v4451_v23  ;;  %v2577_v31 = vand.u32 2139095040, %v4453_v24 }
  0xa8   : > { %v2574_v30 = vand.u32 2147483647, %v4453_v24  ;;  %v2445_v32 = vor.u32 8388608, %v2444_v22 }
  0xa9   : > { %v2447_v33 = vadd.s32 1, %v3658_v27  ;;  %3210 = vperm.xlu1 %3950, %v2929_v25   ;;  %3205 = vperm.xlu0 %3949, %v2928_v26   ;;  %v2682_v36 = vshrl.u32 %v2681_v29, 23  ;;  %v2685_v37 = vand.u32 8388607, %v2678_v28  ;;  %v2578_v38 = vshrl.u32 %v2577_v31, 23 }
  0xaa   : > { %v4475_v39 = vand.u32 8388607, %v2574_v30  ;;  %v4477_v45 = vshll.u32 %v2445_v32, 8 }
  0xab   : > { %vm2448_vm0 = vcmp.gt.s32.totalorder %v2447_v33, 0  ;;  %v3667_v41 = vadd.s32 4294967169, %v2682_v36  ;;  %v3663_v42 = vadd.s32 4294967169, %v2578_v38  ;;  %v2686_v46 = vor.u32 8388608, %v2685_v37 }
  0xac   : > { %v2449_v40 = vsel %vm2448_vm0, %v2447_v33, 0  ;;  %v2582_v48 = vor.u32 8388608, %v4475_v39 }
  0xad   : > { %v2450_v43 = vshrl.u32 %v2449_v40, 5  ;;  %v2451_v44 = vand.u32 31, %v2449_v40  ;;  %3200 = vperm.xlu1 %3950, %v2927_v34   ;;  %3195 = vperm.xlu0 %3949, %v2926_v35   ;;  %v2688_v47 = vadd.s32 1, %v3667_v41  ;;  %v4485_v55 = vadd.s32 1, %v3663_v42 }
  0xae   : > { %v4505_v32 = vshll.u32 %v2686_v46, 8 }
  0xaf   : > { %v2452_v50 = vsub.s32 32, %v2451_v44  ;;  %v2454_v52 = vshll.u32 %v6551_v51, %v2451_v44  ;;  %v2457_v54 = vshll.u32 %v6553_v53, %v2451_v44  ;;  %v2460_v57 = vshll.u32 %v6543_v56, %v2451_v44 }
  0xb0   : > { %v2463_v59 = vshll.u32 %v6545_v58, %v2451_v44  ;;  %v2466_v61 = vshll.u32 %v6547_v60, %v2451_v44  ;;  %vm2469_vm1 = vcmp.lt.s32.totalorder %v2450_v43, 1  ;;  %vm2470_vm2 = vcmp.lt.s32.totalorder %v2450_v43, 2 }
  0xb1   : > { %v2455_v62 = vshrl.u32 %v6553_v53, %v2452_v50  ;;  %v2458_v63 = vshrl.u32 %v6543_v56, %v2452_v50  ;;  %v2461_v0 = vshrl.u32 %v6545_v58, %v2452_v50  ;;  %3444 = vperm.xlu0 %3949, %v2943_v49   ;;  %v2453_v1 = vshrl.u32 %v6551_v51, %v2452_v50 }
  0xb2   : > { %v2464_v2 = vshrl.u32 %v6547_v60, %v2452_v50  ;;  %v2467_v4 = vshrl.u32 %v6549_v3, %v2452_v50  ;;  %vm2471_vm3 = vcmp.lt.s32.totalorder %v2450_v43, 3  ;;  %vm2689_vm4 = vcmp.gt.s32.totalorder %v2688_v47, 0 }
  0xb3   : > { %v2456_v6 = vor.u32 %v2455_v62, %v2454_v52  ;;  %v2459_v7 = vor.u32 %v2458_v63, %v2457_v54  ;;  %v2462_v8 = vor.u32 %v2461_v0, %v2460_v57  ;;  %vm2472_vm5 = vcmp.lt.s32.totalorder %v2450_v43, 4 }
  0xb4   : > { %v2465_v9 = vor.u32 %v2464_v2, %v2463_v59  ;;  %v2468_v10 = vor.u32 %v2467_v4, %v2466_v61  ;;  %v2690_v11 = vsel %vm2689_vm4, %v2688_v47, 0  ;;  %vm2585_vm6 = vcmp.gt.s32.totalorder %v4485_v55, 0 }
  0xb5   : > { %v2473_v13 = vsel %vm2469_vm1, %v2453_v1, %v2456_v6  ;;  %v2474_v14 = vsel %vm2472_vm5, %v2462_v8, 2102212464  ;;  %v2477_v15 = vsel %vm2469_vm1, %v2456_v6, %v2459_v7  ;;  %v2481_v17 = vsel %vm2469_vm1, %v2459_v7, %v2462_v8 }
  0xb6   : > { %v2475_v18 = vsel %vm2471_vm3, %v2459_v7, %v2474_v14  ;;  %v2478_v19 = vsel %vm2472_vm5, %v2465_v9, 920167782  ;;  %v2482_v20 = vsel %vm2472_vm5, %v2468_v10, 1326507024  ;;  %v2691_v21 = vshrl.u32 %v2690_v11, 5 }
  0xb7   : > { %v2476_v22 = vsel %vm2470_vm2, %v2473_v13, %v2475_v18  ;;  %v2479_v25 = vsel %vm2471_vm3, %v2462_v8, %v2478_v19  ;;  %v2483_v26 = vsel %vm2471_vm3, %v2465_v9, %v2482_v20  ;;  %v2692_v27 = vand.u32 31, %v2690_v11  ;;  %v4545_v19 = vld [vmem:[%s4426_s26 + $0x7] ss:$0 sm:$0xff]  ;;  %v2071_v20 = vpop.permute.xlu0 %2070 }
  0xb8   : > { %v2480_v29 = vsel %vm2470_vm2, %v2477_v15, %v2479_v25  ;;  %v2484_v31 = vsel %vm2470_vm2, %v2481_v17, %v2483_v26  ;;  %v2492_v37 = vmul.u32 %v4477_v45, %v2476_v22  ;;  %vm2710_vm7 = vcmp.lt.s32.totalorder %v2691_v21, 1 }
  0xb9   : > { %v4509_v33 = vmul.u32.u64.low %v4477_v45, %v2484_v31  ;;  %v4510_v34 = vmul.u32.u64.high %v4477_v45, %v2484_v31, %v4509_v33  ;;  %v4513_v35 = vmul.u32.u64.low %v4477_v45, %v2480_v29  ;;  %v4514_v36 = vmul.u32.u64.high %v4477_v45, %v2480_v29, %v4513_v35 }
  0xba   : > { %v2693_v38 = vsub.s32 32, %v2692_v27  ;;  %v2695_v40 = vshll.u32 %v6551_v51, %v2692_v27  ;;  %v2698_v41 = vshll.u32 %v6553_v53, %v2692_v27  ;;  %v2701_v42 = vshll.u32 %v6543_v56, %v2692_v27 }
  0xbb   : > { %v2704_v43 = vshll.u32 %v6545_v58, %v2692_v27  ;;  %v2707_v44 = vshll.u32 %v6547_v60, %v2692_v27  ;;  %vm2712_vm8 = vcmp.lt.s32.totalorder %v2691_v21, 3  ;;  %vm2494_vm9 = vc.u32 %v4510_v34, %v4513_v35 }
  0xbc   : > { %v2696_v46 = vshrl.u32 %v6553_v53, %v2693_v38  ;;  %v2699_v47 = vshrl.u32 %v6543_v56, %v2693_v38  ;;  %v2702_v49 = vshrl.u32 %v6545_v58, %v2693_v38  ;;  %v2495_v45 = vadd.s32 1, %v4514_v36 }
  0xbd   : > { %v2694_v50 = vshrl.u32 %v6551_v51, %v2693_v38  ;;  %v2705_v52 = vshrl.u32 %v6547_v60, %v2693_v38  ;;  %v2708_v61 = vshrl.u32 %v6549_v3, %v2693_v38  ;;  %vm2713_vm10 = vcmp.lt.s32.totalorder %v2691_v21, 4 }
  0xbe   : > { %v2697_v54 = vor.u32 %v2696_v46, %v2695_v40  ;;  %v2700_v57 = vor.u32 %v2699_v47, %v2698_v41  ;;  %v2703_v59 = vor.u32 %v2702_v49, %v2701_v42  ;;  %v2496_v62 = vsel %vm2494_vm9, %v2495_v45, %v4514_v36 }
  0xbf   : > { %v2706_v63 = vor.u32 %v2705_v52, %v2704_v43  ;;  %v2586_v0 = vsel %vm2585_vm6, %v4485_v55, 0  ;;  %v2497_v1 = vadd.s32 %v2496_v62, %v2492_v37  ;;  %v2709_v2 = vor.u32 %v2708_v61, %v2707_v44 }
  0xc0   : > { %v2714_v4 = vsel %vm2710_vm7, %v2694_v50, %v2697_v54  ;;  %v2715_v6 = vsel %vm2713_vm10, %v2703_v59, 2102212464  ;;  %v2718_v8 = vsel %vm2710_vm7, %v2697_v54, %v2700_v57  ;;  %v2722_v10 = vsel %vm2710_vm7, %v2700_v57, %v2703_v59  ;;  %v4581_v50 = vpop.permute.xlu1 %2075 }
  0xc1   : > { %v2716_v7 = vsel %vm2712_vm8, %v2700_v57, %v2715_v6  ;;  %v2719_v9 = vsel %vm2713_vm10, %v2706_v63, 920167782  ;;  %v2498_v11 = vadd.s32 536870912, %v2497_v1  ;;  %vm2711_vm11 = vcmp.lt.s32.totalorder %v2691_v21, 2 }
  0xc2   : > { %v2720_v13 = vsel %vm2712_vm8, %v2703_v59, %v2719_v9  ;;  %v2723_v14 = vsel %vm2713_vm10, %v2709_v2, 1326507024  ;;  %v2717_v15 = vsel %vm2711_vm11, %v2714_v4, %v2716_v7  ;;  %v4542_v18 = vshrl.u32 %v2586_v0, 5 }
  0xc3   : > { %v2721_v55 = vsel %vm2711_vm11, %v2718_v8, %v2720_v13  ;;  %v2724_v17 = vsel %vm2712_vm8, %v2706_v63, %v2723_v14  ;;  %v4547_v22 = vshrl.u32 %v2498_v11, 30  ;;  %v2588_v33 = vand.u32 31, %v2586_v0 }
  0xc4   : > { %v2725_v25 = vsel %vm2711_vm11, %v2722_v10, %v2724_v17  ;;  %v4550_v26 = vmul.u32.u64.low %v4505_v32, %v2721_v55  ;;  %v4551_v27 = vmul.u32.u64.high %v4505_v32, %v2721_v55, %v4550_v26  ;;  %v2078_v36 = vmul.f32 %v4545_v19, %v2071_v20  ;;  %v2083_v20 = vpop.permute.xlu1 %2082 }
  0xc5   : > { %v4555_v29 = vmul.u32.u64.low %v4505_v32, %v2725_v25  ;;  %v4556_v31 = vmul.u32.u64.high %v4505_v32, %v2725_v25, %v4555_v29  ;;  %v2500_v21 = vshll.u32 %v4547_v22, 30  ;;  %v2733_v37 = vmul.u32 %v4505_v32, %v2717_v15 }
  0xc6   : > { %v2589_v38 = vsub.s32 32, %v2588_v33  ;;  %vm2606_vm12 = vcmp.lt.s32.totalorder %v4542_v18, 1  ;;  %v4564_v40 = vshll.u32 %v2582_v48, 8  ;;  %v2736_v42 = vadd.s32 1, %v4551_v27 }
  0xc7   : > { %v4566_v41 = vsub.s32 %v2497_v1, %v2500_v21  ;;  %v2591_v43 = vshll.u32 %v6551_v51, %v2588_v33  ;;  %v2594_v44 = vshll.u32 %v6553_v53, %v2588_v33  ;;  %vm2607_vm13 = vcmp.lt.s32.totalorder %v4542_v18, 2 }
  0xc8   : > { %vm2735_vm14 = vc.u32 %v4556_v31, %v4550_v26  ;;  %v2592_v32 = vshrl.u32 %v6553_v53, %v2589_v38  ;;  %v2597_v46 = vshll.u32 %v6543_v56, %v2588_v33  ;;  %v2600_v39 = vshll.u32 %v6545_v58, %v2588_v33 }
  0xc9   : > { %v2503_v48 = vsub.s32 0, %v4566_v41  ;;  %v2737_v47 = vsel %vm2735_vm14, %v2736_v42, %v4551_v27  ;;  %v2595_v49 = vshrl.u32 %v6543_v56, %v2589_v38  ;;  %v2598_v45 = vshrl.u32 %v6545_v58, %v2589_v38 }
  0xca   : > { %v2738_v52 = vadd.s32 %v2737_v47, %v2733_v37  ;;  %v2593_v54 = vor.u32 %v2592_v32, %v2591_v43  ;;  %v2601_v57 = vshrl.u32 %v6547_v60, %v2589_v38  ;;  %v2603_v59 = vshll.u32 %v6547_v60, %v2588_v33 }
  0xcb   : > { %v3659_v61 = vmin.u32 %v2503_v48, %v4566_v41  ;;  %v2596_v62 = vor.u32 %v2595_v49, %v2594_v44  ;;  %v2599_v63 = vor.u32 %v2598_v45, %v2597_v46  ;;  %v2604_v0 = vshrl.u32 %v6549_v3, %v2589_v38 }
  0xcc   : > { %v2739_v1 = vadd.s32 536870912, %v2738_v52  ;;  %v2590_v2 = vshrl.u32 %v6551_v51, %v2589_v38  ;;  %v2602_v4 = vor.u32 %v2601_v57, %v2600_v39  ;;  %vm2609_vm15 = vcmp.lt.s32.totalorder %v4542_v18, 4 }
  0xcd   : > { %v2505_v6 = vclz %v3659_v61  ;;  %v2605_v7 = vor.u32 %v2604_v0, %v2603_v59  ;;  %v2611_v8 = vsel %vm2609_vm15, %v2599_v63, 2102212464  ;;  %v2614_v9 = vsel %vm2606_vm12, %v2593_v54, %v2596_v62  ;;  %v2312_v61 = vpop.permute.xlu0 %2311 }
  0xce   : > { %v4591_v10 = vshrl.u32 %v2739_v1, 30  ;;  %vm2608_vm0 = vcmp.lt.s32.totalorder %v4542_v18, 3  ;;  %v2615_v11 = vsel %vm2609_vm15, %v2602_v4, 920167782  ;;  %v2618_v13 = vsel %vm2606_vm12, %v2596_v62, %v2599_v63 }
  0xcf   : > { %v3660_v14 = vadd.s32 4294967294, %v2505_v6  ;;  %v2610_v15 = vsel %vm2606_vm12, %v2590_v2, %v2593_v54  ;;  %v2616_v55 = vsel %vm2608_vm0, %v2599_v63, %v2615_v11  ;;  %v2619_v17 = vsel %vm2609_vm15, %v2605_v7, 1326507024 }
  0xd0   : > { %v2741_v25 = vshll.u32 %v4591_v10, 30  ;;  %v2612_v27 = vsel %vm2608_vm0, %v2596_v62, %v2611_v8  ;;  %v2617_v29 = vsel %vm2607_vm13, %v2614_v9, %v2616_v55  ;;  %v2620_v33 = vsel %vm2608_vm0, %v2602_v4, %v2619_v17  ;;  %v2324_v4 = vpop.permute.xlu1 %2323 }
  0xd1   : > { %vm3661_vm1 = vcmp.lt.s32.totalorder %v3660_v14, 0  ;;  %v2621_v21 = vsel %vm2607_vm13, %v2618_v13, %v2620_v33  ;;  %v4604_v37 = vmul.u32.u64.low %v4564_v40, %v2617_v29  ;;  %v4605_v38 = vmul.u32.u64.high %v4564_v40, %v2617_v29, %v4604_v37 }
  0xd2   : > { %v2508_v42 = vsel %vm3661_vm1, 0, %v3660_v14  ;;  %v4608_v43 = vsub.s32 %v2738_v52, %v2741_v25  ;;  %v4610_v44 = vadd.f32 %v2083_v20, %v2078_v36  ;;  %v2613_v32 = vsel %vm2607_vm13, %v2610_v15, %v2612_v27 }
  0xd3   : > { %v2513_v46 = vsub.s32 4294967266, %v2508_v42  ;;  %v4616_v48 = vmul.u32.u64.low %v4564_v40, %v2621_v21  ;;  %v4617_v47 = vmul.u32.u64.high %v4564_v40, %v2621_v21, %v4616_v48  ;;  %v2632_v49 = vadd.s32 1, %v4605_v38 }
  0xd4   : > { %6621 = vst [vmem:[#allocation7_spill] sm:$0xff] %v4610_v44  ;;  %v2744_v39 = vsub.s32 0, %v4608_v43  ;;  %v2095_v54 = vand.u32 2139095040, %v4610_v44  ;;  %v2509_v52 = vsub.s32 32, %v2508_v42  ;;  %v2629_v36 = vmul.u32 %v4564_v40, %v2613_v32 }
  0xd5   : > { %v2514_v57 = vadd.s32 127, %v2513_v46  ;;  %vm2631_vm2 = vc.u32 %v4617_v47, %v4604_v37  ;;  %v2493_v62 = vadd.s32 %v4513_v35, %v4510_v34  ;;  %v2092_v7 = vand.u32 2147483647, %v4610_v44 }
  0xd6   : > { %v3668_v45 = vmin.u32 %v2744_v39, %v4608_v43  ;;  %v2096_v18 = vshrl.u32 %v2095_v54, 23  ;;  %v2633_v63 = vsel %vm2631_vm2, %v2632_v49, %v4605_v38  ;;  %v2319_v40 = vmul.f32 %v4429_v5, %v2312_v61 }
  0xd7   : > { %v2634_v1 = vadd.s32 %v2633_v63, %v2629_v36  ;;  %v2511_v6 = vshrl.u32 %v2493_v62, %v2509_v52  ;;  %v2515_v8 = vshll.u32 %v2514_v57, 23  ;;  %v2510_v13 = vshll.u32 %v4566_v41, %v2508_v42 }
  0xd8   : > { %v2746_v59 = vclz %v3668_v45  ;;  %v3645_v2 = vadd.s32 4294967169, %v2096_v18  ;;  %v4631_v14 = vadd.f32 %v2324_v4, %v2319_v40  ;;  %v2099_v5 = vand.u32 8388607, %v2092_v7 }
  0xd9   : > { %v2635_v9 = vadd.s32 536870912, %v2634_v1  ;;  %v4637_v15 = vor.u32 %v2511_v6, %v2510_v13  ;;  %v4639_v55 = vor.u32 4788187, %v2515_v8  ;;  %v2734_v33 = vadd.s32 %v4550_v26, %v4556_v31 }
  0xda   : > { %v3669_v0 = vadd.s32 4294967294, %v2746_v59  ;;  %v2102_v11 = vadd.s32 1, %v3645_v2  ;;  %6622 = vst [vmem:[#allocation8_spill] sm:$0xff] %v4631_v14  ;;  %v2336_v41 = vand.u32 2139095040, %v4631_v14  ;;  %v4653_v21 = vmul.f32 %v4545_v19, %v4581_v50 }
  0xdb   : > { %v4635_v35 = vshrl.u32 %v2635_v9, 30  ;;  %v2519_v29 = vcvt.s32.f32 %v4637_v15  ;;  %v2517_v42 = vand.u32 2147483647, %v4639_v55  ;;  %v2100_v46 = vor.u32 8388608, %v2099_v5 }
  0xdc   : > { %vm3670_vm3 = vcmp.lt.s32.totalorder %v3669_v0, 0  ;;  %vm2103_vm4 = vcmp.gt.s32.totalorder %v2102_v11, 0  ;;  %v2333_v39 = vand.u32 2147483647, %v4631_v14  ;;  %v2337_v54 = vshrl.u32 %v2336_v41, 23 }
  0xdd   : > { %v4633_v34 = vsel %vm3670_vm3, 0, %v3669_v0  ;;  %v2637_v17 = vshll.u32 %v4635_v35, 30  ;;  %v2104_v25 = vsel %vm2103_vm4, %v2102_v11, 0  ;;  %vm2439_vm12 = vcmp.lt.s32.totalorder %v4439_v12, 0 }
  0xde   : > { %v2754_v20 = vsub.s32 4294967266, %v4633_v34  ;;  %v2106_v38 = vand.u32 31, %v2104_v25  ;;  %v2750_v48 = vsub.s32 32, %v4633_v34  ;;  %v2105_v26 = vshrl.u32 %v2104_v25, 5 }
  0xdf   : > { %v4646_v27 = vsub.s32 %v2634_v1, %v2637_v17  ;;  %v3654_v4 = vadd.s32 4294967169, %v2337_v54  ;;  %v2751_v11 = vshll.u32 %v4608_v43, %v4633_v34  ;;  %v2140_v17 = vshll.u32 %v2100_v46, 8 }
  0xe0   : > { %v2755_v49 = vadd.s32 127, %v2754_v20  ;;  %v2107_v45 = vsub.s32 32, %v2106_v38  ;;  %v2109_v31 = vshll.u32 %v6551_v51, %v2106_v38  ;;  %v2112_v19 = vshll.u32 %v6553_v53, %v2106_v38 }
  0xe1   : > { %v2640_v32 = vsub.s32 0, %v4646_v27  ;;  %v2115_v57 = vshll.u32 %v6543_v56, %v2106_v38  ;;  %v2118_v61 = vshll.u32 %v6545_v58, %v2106_v38  ;;  %v2121_v9 = vshll.u32 %v6547_v60, %v2106_v38 }
  0xe2   : > { %v2110_v50 = vshrl.u32 %v6553_v53, %v2107_v45  ;;  %v2113_v36 = vshrl.u32 %v6543_v56, %v2107_v45  ;;  %v2116_v59 = vshrl.u32 %v6545_v58, %v2107_v45  ;;  %v2119_v62 = vshrl.u32 %v6547_v60, %v2107_v45 }
  0xe3   : > { %v3664_v52 = vmin.u32 %v2640_v32, %v4646_v27  ;;  %v2122_v63 = vshrl.u32 %v6549_v3, %v2107_v45  ;;  %v2756_v0 = vshll.u32 %v2755_v49, 23  ;;  %v2752_v13 = vshrl.u32 %v2734_v33, %v2750_v48 }
  0xe4   : > { %v2111_v1 = vor.u32 %v2110_v50, %v2109_v31  ;;  %v2114_v2 = vor.u32 %v2113_v36, %v2112_v19  ;;  %v2117_v40 = vor.u32 %v2116_v59, %v2115_v57  ;;  %v2120_v8 = vor.u32 %v2119_v62, %v2118_v61  ;;  %v2088_v62 = vpop.permute.xlu0 %2087 }
  0xe5   : > { %v2642_v18 = vclz %v3664_v52  ;;  %v4674_v5 = vand.u32 8388607, %v2333_v39  ;;  %v2123_v20 = vor.u32 %v2122_v63, %v2121_v9  ;;  %vm2124_vm6 = vcmp.lt.s32.totalorder %v2105_v26, 1 }
  0xe6   : > { %vm2127_vm7 = vcmp.lt.s32.totalorder %v2105_v26, 4  ;;  %v2132_v41 = vsel %vm2124_vm6, %v2111_v1, %v2114_v2  ;;  %v2343_v49 = vadd.s32 1, %v3654_v4  ;;  %v2757_v38 = vor.u32 4788187, %v2756_v0 }
  0xe7   : > { %v3665_v6 = vadd.s32 4294967294, %v2642_v18  ;;  %v2133_v32 = vsel %vm2127_vm7, %v2120_v8, 920167782  ;;  %v2108_v54 = vshrl.u32 %v6551_v51, %v2107_v45  ;;  %vm2126_vm8 = vcmp.lt.s32.totalorder %v2105_v26, 3 }
  0xe8   : > { %v2129_v43 = vsel %vm2127_vm7, %v2117_v40, 2102212464  ;;  %vm2125_vm9 = vcmp.lt.s32.totalorder %v2105_v26, 2  ;;  %v2134_v33 = vsel %vm2126_vm8, %v2117_v40, %v2133_v32  ;;  %v2136_v46 = vsel %vm2124_vm6, %v2114_v2, %v2117_v40 }
  0xe9   : > { %vm3666_vm5 = vcmp.lt.s32.totalorder %v3665_v6, 0  ;;  %v2753_v48 = vor.u32 %v2752_v13, %v2751_v11  ;;  %v2128_v52 = vsel %vm2124_vm6, %v2108_v54, %v2111_v1  ;;  %v2135_v31 = vsel %vm2125_vm9, %v2132_v41, %v2134_v33 }
  0xea   : > { %v4676_v25 = vsel %vm3666_vm5, 0, %v3665_v6  ;;  %v2137_v19 = vsel %vm2127_vm7, %v2123_v20, 1326507024  ;;  %v2130_v50 = vsel %vm2126_vm8, %v2114_v2, %v2129_v43  ;;  %v2758_v45 = vand.u32 2147483647, %v2757_v38 }
  0xeb   : > { %v2650_v34 = vsub.s32 4294967266, %v4676_v25  ;;  %v2138_v36 = vsel %vm2126_vm8, %v2120_v8, %v2137_v19  ;;  %v4684_v57 = vmul.u32.u64.low %v2140_v17, %v2135_v31  ;;  %v4685_v59 = vmul.u32.u64.high %v2140_v17, %v2135_v31, %v4684_v57 }
  0xec   : > { %v2646_v18 = vsub.s32 32, %v4676_v25  ;;  %v2139_v61 = vsel %vm2125_vm9, %v2136_v46, %v2138_v36  ;;  %vm2344_vm10 = vcmp.gt.s32.totalorder %v2343_v49, 0  ;;  %v2760_v6 = vcvt.s32.f32 %v2753_v48 }
  0xed   : > { %v2651_v63 = vadd.s32 127, %v2650_v34  ;;  %v4690_v0 = vmul.u32.u64.low %v2140_v17, %v2139_v61  ;;  %v4691_v1 = vmul.u32.u64.high %v2140_v17, %v2139_v61, %v4690_v0  ;;  %v2345_v4 = vsel %vm2344_vm10, %v2343_v49, 0 }
  0xee   : > { %v2630_v2 = vadd.s32 %v4604_v37, %v4617_v47  ;;  %v2131_v40 = vsel %vm2125_vm9, %v2128_v52, %v2130_v50  ;;  %v2347_v8 = vand.u32 31, %v2345_v4  ;;  %v4700_v9 = vmul.f32 %v2519_v29, %v2517_v42 }
  0xef   : > { %v2523_v11 = vsub.s32 4, %v4547_v22  ;;  %v2150_v13 = vadd.s32 1, %v4685_v59  ;;  %v4705_v20 = vadd.f32 %v2088_v62, %v4653_v21  ;;  %v4707_v41 = vmul.f32 %v2760_v6, %v2758_v45 }
  0xf0   : > { %v2648_v32 = vshrl.u32 %v2630_v2, %v2646_v18  ;;  %v2341_v37 = vor.u32 8388608, %v4674_v5  ;;  %v2348_v47 = vsub.s32 32, %v2347_v8  ;;  %v2652_v26 = vshll.u32 %v2651_v63, 23 }
  0xf1   : > { %6623 = vst [vmem:[#allocation9_spill] sm:$0xff] %v4705_v20  ;;  %v2147_v49 = vmul.u32 %v2140_v17, %v2131_v40  ;;  %vm2149_vm11 = vc.u32 %v4691_v1, %v4684_v57  ;;  %v4712_v15 = vshrl.u32 %v2345_v4, 5  ;;  %v2350_v29 = vshll.u32 %v6551_v51, %v2347_v8 }
  0xf2   : > { %v2151_v55 = vsel %vm2149_vm11, %v2150_v13, %v4685_v59  ;;  %v2351_v21 = vshrl.u32 %v6553_v53, %v2348_v47  ;;  %v2353_v42 = vshll.u32 %v6553_v53, %v2347_v8  ;;  %v2354_v54 = vshrl.u32 %v6543_v56, %v2348_v47 }
  0xf3   : > { %v2152_v38 = vadd.s32 %v2151_v55, %v2147_v49  ;;  %v2357_v5 = vshrl.u32 %v6545_v58, %v2348_v47  ;;  %v2360_v17 = vshrl.u32 %v6547_v60, %v2348_v47  ;;  %v2356_v43 = vshll.u32 %v6543_v56, %v2347_v8 }
  0xf4   : > { %v2359_v34 = vshll.u32 %v6545_v58, %v2347_v8  ;;  %v2362_v33 = vshll.u32 %v6547_v60, %v2347_v8  ;;  %v2363_v46 = vshrl.u32 %v6549_v3, %v2348_v47  ;;  %v2647_v48 = vshll.u32 %v4646_v27, %v4676_v25 }
  0xf5   : > { %v2153_v52 = vadd.s32 536870912, %v2152_v38  ;;  %v2352_v31 = vor.u32 %v2351_v21, %v2350_v29  ;;  %v2355_v19 = vor.u32 %v2354_v54, %v2353_v42  ;;  %v2521_v50 = vxor.u32 2147483648, %v4700_v9 }
  0xf6   : > { %v2358_v36 = vor.u32 %v2357_v5, %v2356_v43  ;;  %v2361_v59 = vor.u32 %v2360_v17, %v2359_v34  ;;  %v2364_v45 = vor.u32 %v2363_v46, %v2362_v33  ;;  %v2762_v18 = vxor.u32 2147483648, %v4707_v41  ;;  %v1835_v5 = vpop.permute.xlu1 %1834 }
  0xf7   : > { %v2649_v61 = vor.u32 %v2648_v32, %v2647_v48  ;;  %v4730_v62 = vshrl.u32 %v2153_v52, 30  ;;  %v2381_v63 = vshll.u32 %v2341_v37, 8  ;;  %v2653_v0 = vor.u32 4788187, %v2652_v26 }
  0xf8   : > { %v2349_v4 = vshrl.u32 %v6551_v51, %v2348_v47  ;;  %vm2365_vm13 = vcmp.lt.s32.totalorder %v4712_v15, 1  ;;  %v2199_v27 = vand.u32 2139095040, %v4705_v20  ;;  %vm2367_vm14 = vcmp.lt.s32.totalorder %v4712_v15, 3 }
  0xf9   : > { %v2155_v25 = vshll.u32 %v4730_v62, 30  ;;  %vm2368_vm15 = vcmp.lt.s32.totalorder %v4712_v15, 4  ;;  %v2373_v6 = vsel %vm2365_vm13, %v2352_v31, %v2355_v19  ;;  %vm4742_vm0 = vcmp.le.f32.partialorder %v2437_v16, 0.7853982 }
  0xfa   : > { %v2370_v40 = vsel %vm2368_vm15, %v2358_v36, 2102212464  ;;  %v2374_v8 = vsel %vm2368_vm15, %v2361_v59, 920167782  ;;  %v2377_v13 = vsel %vm2365_vm13, %v2355_v19, %v2358_v36  ;;  %v2378_v32 = vsel %vm2368_vm15, %v2364_v45, 1326507024 }
  0xfb   : > { %v4748_v37 = vsub.s32 %v2152_v38, %v2155_v25  ;;  %vm2366_vm1 = vcmp.lt.s32.totalorder %v4712_v15, 2  ;;  %v2375_v47 = vsel %vm2367_vm14, %v2358_v36, %v2374_v8  ;;  %v2379_v26 = vsel %vm2367_vm14, %v2361_v59, %v2378_v32 }
  0xfc   : > { %v2654_v16 = vand.u32 2147483647, %v2653_v0  ;;  %v2369_v49 = vsel %vm2365_vm13, %v2349_v4, %v2352_v31  ;;  %v2376_v55 = vsel %vm2366_vm1, %v2373_v6, %v2375_v47  ;;  %v2380_v29 = vsel %vm2366_vm1, %v2377_v13, %v2379_v26  ;;  %v4783_v31 = vld [vmem:[%s4426_s26 + $0x6] ss:$0 sm:$0xff] }
  0xfd   : > { %v2158_v21 = vsub.s32 0, %v4748_v37  ;;  %v2371_v42 = vsel %vm2367_vm14, %v2355_v19, %v2370_v40  ;;  %v4764_v38 = vmul.u32.u64.low %v2381_v63, %v2380_v29  ;;  %v4765_v54 = vmul.u32.u64.high %v2381_v63, %v2380_v29, %v4764_v38 }
  0xfe   : > { %v2656_v17 = vcvt.s32.f32 %v2649_v61  ;;  %v4767_v43 = vmul.u32.u64.low %v2381_v63, %v2376_v55  ;;  %v4768_v34 = vmul.u32.u64.high %v2381_v63, %v2376_v55, %v4767_v43  ;;  %v2200_v33 = vshrl.u32 %v2199_v27, 23  ;;  %v1847_v27 = vpop.permute.xlu1 %1846 }
  0xff   : > { %v2522_v46 = vsel %vm2439_vm12, %v2521_v50, %v4700_v9  ;;  %vm4776_vm2 = vcmp.le.f32.partialorder %v2678_v28, 0.7853982  ;;  %v6626_v48 = vmov 0  ;;  %vm2680_vm3 = vcmp.lt.s32.totalorder %v4451_v23, 0 }
 0x100   : > { %v6627_v48 = vsel %vm4776_vm2, 4294967295, %v6626_v48  ;;  %v3646_v52 = vmin.u32 %v2158_v21, %v4748_v37  ;;  %v2763_v19 = vsel %vm2680_vm3, %v2762_v18, %v4707_v41  ;;  %vm2576_vm4 = vcmp.lt.s32.totalorder %v4453_v24, 0 }
 0x101   : > { %6628 = vst [vmem:[#allocation10_spill] sm:$0xff] %v6627_v48  ;;  %v2657_v36 = vmul.f32 %v2656_v17, %v2654_v16  ;;  %v2372_v9 = vsel %vm2366_vm1, %v2369_v49, %v2371_v42  ;;  %v3649_v28 = vadd.s32 4294967169, %v2200_v33  ;;  %v4796_v50 = vsel %vm2439_vm12, %v2523_v11, %v4547_v22 }
 0x102   : > { %v2160_v59 = vclz %v3646_v52  ;;  %vm2390_vm5 = vc.u32 %v4765_v54, %v4767_v43  ;;  %v6542_v41 = vand.u32 2147483647, %v4705_v20  ;;  %v2764_v45 = vsub.s32 4, %v4591_v10 }
 0x103   : > { %v2391_v18 = vadd.s32 1, %v4768_v34  ;;  %v2206_v15 = vadd.s32 1, %v3649_v28  ;;  %v1838_v61 = vmul.f32 %v4783_v31, %v1835_v5  ;;  %v2525_v0 = vsel %vm4742_vm0, %v4439_v12, %v2522_v46 }
 0x104   : > { %v4810_v22 = vsel %vm4776_vm2, %v4451_v23, %v2763_v19  ;;  %v3647_v11 = vadd.s32 4294967294, %v2160_v59  ;;  %v2388_v4 = vmul.u32 %v2381_v63, %v2372_v9  ;;  %v2658_v25 = vxor.u32 2147483648, %v2657_v36  ;;  %v1830_v59 = vpop.permute.xlu0 %1829 }
 0x105   : > { %v2178_v6 = vsub.s32 4, %v4730_v62  ;;  %v2392_v40 = vsel %vm2390_vm5, %v2391_v18, %v4768_v34  ;;  %vm2207_vm6 = vcmp.gt.s32.totalorder %v2206_v15, 0  ;;  %v2203_v13 = vand.u32 8388607, %v6542_v41 }
 0x106   : > { %vm3648_vm7 = vcmp.lt.s32.totalorder %v3647_v11, 0  ;;  %v2393_v8 = vadd.s32 %v2392_v40, %v2388_v4  ;;  %v2208_v32 = vsel %vm2207_vm6, %v2206_v15, 0  ;;  %3967 = vcosq.f32 %v2525_v0 }
 0x107   : > { %v4816_v47 = vsel %vm3648_vm7, 0, %v3647_v11  ;;  %v2210_v26 = vand.u32 31, %v2208_v32  ;;  %v4818_v16 = vadd.f32 %v1847_v27, %v1838_v61  ;;  %3969 = vsinq.f32 %v2525_v0 }
 0x108   : > { %v4823_v63 = vsel %vm2680_vm3, %v2764_v45, %v4591_v10  ;;  %vm2094_vm8 = vcmp.lt.s32.totalorder %v4610_v44, 0  ;;  %v2394_v49 = vadd.s32 536870912, %v2393_v8  ;;  %3971 = vcosq.f32 %v4810_v22 }
 0x109   : > { %6629 = vst [vmem:[#allocation11_spill] sm:$0xff] %v4818_v16  ;;  %v2148_v55 = vadd.s32 %v4684_v57, %v4691_v1  ;;  %v2168_v29 = vsub.s32 4294967266, %v4816_v47  ;;  %v2211_v21 = vsub.s32 32, %v2210_v26  ;;  %v4832_v42 = vsel %vm2576_vm4, %v2658_v25, %v2657_v36 }
 0x10a   : > { %v4837_v10 = vsel %vm2094_vm8, %v2178_v6, %v4730_v62  ;;  %v4839_v38 = vshrl.u32 %v2394_v49, 30  ;;  %v2204_v5 = vor.u32 8388608, %v2203_v13  ;;  %v1958_v1 = vand.u32 2139095040, %v4818_v16 }
 0x10b   : > { %v2214_v17 = vshrl.u32 %v6553_v53, %v2211_v21  ;;  %v2217_v34 = vshrl.u32 %v6543_v56, %v2211_v21  ;;  %v2220_v57 = vshrl.u32 %v6545_v58, %v2211_v21  ;;  %v2164_v33 = vsub.s32 32, %v4816_v47 }
 0x10c   : > { %v2396_v46 = vshll.u32 %v4839_v38, 30  ;;  %v2213_v52 = vshll.u32 %v6551_v51, %v2210_v26  ;;  %v2216_v62 = vshll.u32 %v6553_v53, %v2210_v26  ;;  %v2169_v19 = vadd.s32 127, %v2168_v29 }
 0x10d   : > { %v2219_v36 = vshll.u32 %v6543_v56, %v2210_v26  ;;  %v2222_v9 = vshll.u32 %v6545_v58, %v2210_v26  ;;  %v2223_v28 = vshrl.u32 %v6547_v60, %v2211_v21  ;;  %v2209_v18 = vshrl.u32 %v2208_v32, 5 }
 0x10e   : > { %v4852_v45 = vsub.s32 %v2393_v8, %v2396_v46  ;;  %v2215_v15 = vor.u32 %v2214_v17, %v2213_v52  ;;  %v2218_v61 = vor.u32 %v2217_v34, %v2216_v62  ;;  %v2225_v4 = vshll.u32 %v6547_v60, %v2210_v26 }
 0x10f   : > { %v2221_v0 = vor.u32 %v2220_v57, %v2219_v36  ;;  %v2224_v11 = vor.u32 %v2223_v28, %v2222_v9  ;;  %v2226_v27 = vshrl.u32 %v6549_v3, %v2211_v21  ;;  %vm4858_vm9 = vcmp.le.f32.partialorder %v2092_v7, 0.7853982 }
 0x110   : > { %v2399_v6 = vsub.s32 0, %v4852_v45  ;;  %v4863_v40 = vshll.u32 %v2204_v5, 8  ;;  %v1837_v8 = vmul.f32 %v4783_v31, %v1830_v59  ;;  %v1959_v13 = vshrl.u32 %v1958_v1, 23 }
 0x111   : > { %vm4868_vm10 = vcmp.le.f32.partialorder %v2574_v30, 0.7853982  ;;  %v2165_v26 = vshll.u32 %v4748_v37, %v4816_v47  ;;  %v2166_v7 = vshrl.u32 %v2148_v55, %v2164_v33  ;;  %v2170_v49 = vshll.u32 %v2169_v19, 23 }
 0x112   : > { %v2227_v29 = vor.u32 %v2226_v27, %v2225_v4  ;;  %v3655_v17 = vmin.u32 %v2399_v6, %v4852_v45  ;;  %v2212_v5 = vshrl.u32 %v6551_v51, %v2211_v21  ;;  %vm2228_vm11 = vcmp.lt.s32.totalorder %v2209_v18, 1  ;;  %v1842_v6 = vpop.permute.xlu0 %1841 }
 0x113   : > { %vm2231_vm12 = vcmp.lt.s32.totalorder %v2209_v18, 4  ;;  %vm2230_vm13 = vcmp.lt.s32.totalorder %v2209_v18, 3  ;;  %v2236_v34 = vsel %vm2228_vm11, %v2215_v15, %v2218_v61  ;;  %v4877_v57 = vpop.eup %3967  ;;  %vm2229_vm14 = vcmp.lt.s32.totalorder %v2209_v18, 2 }
 0x114   : > { %v2233_v31 = vsel %vm2231_vm12, %v2221_v0, 2102212464  ;;  %v2237_v30 = vsel %vm2231_vm12, %v2224_v11, 920167782  ;;  %v2401_v1 = vclz %v3655_v17  ;;  %v2240_v47 = vsel %vm2228_vm11, %v2218_v61, %v2221_v0  ;;  %v4881_v55 = vpop.eup %3969 }
 0x115   : > { %v2238_v37 = vsel %vm2230_vm13, %v2221_v0, %v2237_v30  ;;  %v2171_v33 = vor.u32 4788187, %v2170_v49  ;;  %v2241_v46 = vsel %vm2231_vm12, %v2227_v29, 1326507024  ;;  %v3640_v52 = vadd.s32 4294967169, %v1959_v13  ;;  %v4884_v62 = vpop.eup %3971 }
 0x116   : > { %v2239_v21 = vsel %vm2229_vm14, %v2236_v34, %v2238_v37  ;;  %6634 = vst [vmem:[#allocation12_spill] sm:$0xff] %v4884_v62  ;;  %v3656_v19 = vadd.s32 4294967294, %v2401_v1  ;;  %v2232_v36 = vsel %vm2228_vm11, %v2212_v5, %v2215_v15  ;;  %v2234_v9 = vsel %vm2230_vm13, %v2218_v61, %v2233_v31 }
 0x117   : > { %v2242_v28 = vsel %vm2230_vm13, %v2224_v11, %v2241_v46  ;;  %v2167_v59 = vor.u32 %v2166_v7, %v2165_v26  ;;  %v4891_v0 = vmul.u32.u64.low %v4863_v40, %v2239_v21  ;;  %v4892_v27 = vmul.u32.u64.high %v4863_v40, %v2239_v21, %v4891_v0 }
 0x118   : > { %v2243_v4 = vsel %vm2229_vm14, %v2240_v47, %v2242_v28  ;;  %vm3657_vm15 = vcmp.lt.s32.totalorder %v3656_v19, 0  ;;  %v6541_v15 = vand.u32 2147483647, %v4818_v16  ;;  %v2172_v29 = vand.u32 2147483647, %v2171_v33  ;;  %v1589_v33 = vpop.permute.xlu0 %1588 }
 0x119   : > { %v4896_v13 = vmul.u32.u64.low %v4863_v40, %v2243_v4  ;;  %v4897_v49 = vmul.u32.u64.high %v4863_v40, %v2243_v4, %v4896_v13  ;;  %v2181_v61 = vsel %vm4858_vm9, 0, %v4837_v10  ;;  %v2235_v11 = vsel %vm2229_vm14, %v2232_v36, %v2234_v9  ;;  %v4923_v47 = vld [vmem:[%s4426_s26 + $0x5] ss:$0 sm:$0xff] }
 0x11a   : > { %v1965_v26 = vadd.s32 1, %v3640_v52  ;;  %3973 = vsinq.f32 %v4810_v22  ;;  %v2660_v7 = vsub.s32 4, %v4635_v35  ;;  %v2662_v17 = vsel %vm4868_vm10, %v4453_v24, %v4832_v42 }
 0x11b   : > { %v4910_v5 = vadd.f32 %v1842_v6, %v1837_v8  ;;  %v2174_v31 = vcvt.s32.f32 %v2167_v59  ;;  %v4912_v34 = vsel %vm3657_vm15, 0, %v3656_v19  ;;  %v2254_v10 = vadd.s32 1, %v4892_v27 }
 0x11c   : > { %vm1966_vm1 = vcmp.gt.s32.totalorder %v1965_v26, 0  ;;  %v2185_v18 = vadd.s32 3, %v2181_v61  ;;  %v2251_v30 = vmul.u32 %v4863_v40, %v2235_v11  ;;  %vm2253_vm3 = vc.u32 %v4897_v49, %v4891_v0 }
 0x11d   : > { %v1962_v22 = vand.u32 8388607, %v6541_v15  ;;  %v2175_v1 = vmul.f32 %v2174_v31, %v2172_v29  ;;  %v2419_v42 = vsub.s32 4, %v4839_v38  ;;  %v2255_v8 = vsel %vm2253_vm3, %v2254_v10, %v4892_v27 }
 0x11e   : > { %v1967_v37 = vsel %vm1966_vm1, %v1965_v26, 0  ;;  %3975 = vcosq.f32 %v2662_v17  ;;  %v2409_v21 = vsub.s32 4294967266, %v4912_v34  ;;  %v2256_v46 = vadd.s32 %v2255_v8, %v2251_v30 }
 0x11f   : > { %v1854_v40 = vand.u32 2139095040, %v4910_v5  ;;  %v4930_v52 = vsel %vm2576_vm4, %v2660_v7, %v4635_v35  ;;  %3977 = vsinq.f32 %v2662_v17  ;;  %vm2335_vm5 = vcmp.lt.s32.totalorder %v4631_v14, 0 }
 0x120   : > { %v1969_v19 = vand.u32 31, %v1967_v37  ;;  %v4933_v36 = vand.u32 3, %v2185_v18  ;;  %v2389_v9 = vadd.s32 %v4767_v43, %v4765_v54  ;;  %v2257_v28 = vadd.s32 536870912, %v2256_v46 }
 0x121   : > { %v4938_v59 = vmul.f32 %v4923_v47, %v1589_v33  ;;  %v2176_v4 = vxor.u32 2147483648, %v2175_v1  ;;  %v4943_v27 = vsel %vm2335_vm5, %v2419_v42, %v4839_v38  ;;  %v1963_v35 = vor.u32 8388608, %v1962_v22 }
 0x122   : > { %6635 = vst [vmem:[#allocation13_spill] sm:$0xff] %v4933_v36  ;;  %v1970_v6 = vsub.s32 32, %v1969_v19  ;;  %v2405_v13 = vsub.s32 32, %v4912_v34  ;;  %v2410_v29 = vadd.s32 127, %v2409_v21  ;;  %v4946_v61 = vshrl.u32 %v2257_v28, 30 }
 0x123   : > { %v1855_v11 = vshrl.u32 %v1854_v40, 23  ;;  %v1972_v54 = vshll.u32 %v6551_v51, %v1969_v19  ;;  %v1975_v38 = vshll.u32 %v6553_v53, %v1969_v19  ;;  %v1978_v31 = vshll.u32 %v6543_v56, %v1969_v19 }
 0x124   : > { %v1973_v43 = vshrl.u32 %v6553_v53, %v1970_v6  ;;  %v1976_v26 = vshrl.u32 %v6543_v56, %v1970_v6  ;;  %v1979_v7 = vshrl.u32 %v6545_v58, %v1970_v6  ;;  %v2259_v17 = vshll.u32 %v4946_v61, 30 }
 0x125   : > { %v1982_v10 = vshrl.u32 %v6547_v60, %v1970_v6  ;;  %v1968_v18 = vshrl.u32 %v1967_v37, 5  ;;  %v1981_v30 = vshll.u32 %v6545_v58, %v1969_v19  ;;  %v1984_v22 = vshll.u32 %v6547_v60, %v1969_v19 }
 0x126   : > { %v1985_v42 = vshrl.u32 %v6549_v3, %v1970_v6  ;;  %v4959_v8 = vsub.s32 %v2256_v46, %v2259_v17  ;;  %v1974_v33 = vor.u32 %v1973_v43, %v1972_v54  ;;  %v1977_v21 = vor.u32 %v1976_v26, %v1975_v38 }
 0x127   : > { %v1980_v40 = vor.u32 %v1979_v7, %v1978_v31  ;;  %v4961_v28 = vpop.eup %3973  ;;  %v2177_v15 = vsel %vm2094_vm8, %v2176_v4, %v2175_v1  ;;  %v2406_v41 = vshll.u32 %v4852_v45, %v4912_v34  ;;  %v1983_v37 = vor.u32 %v1982_v10, %v1981_v30  ;;  %v1594_v4 = vpop.permute.xlu1 %1593 }
 0x128   : > { %6636 = vst [vmem:[#allocation14_spill] sm:$0xff] %v4961_v28  ;;  %v2003_v56 = vshll.u32 %v1963_v35, 8  ;;  %v2407_v58 = vshrl.u32 %v2389_v9, %v2405_v13  ;;  %v2262_v19 = vsub.s32 0, %v4959_v8  ;;  %v1986_v60 = vor.u32 %v1985_v42, %v1984_v22 }
 0x129   : > { %vm4971_vm4 = vcmp.le.f32.partialorder %v2333_v39, 0.7853982  ;;  %v2411_v43 = vshll.u32 %v2410_v29, 23  ;;  %vm1987_vm6 = vcmp.lt.s32.totalorder %v1968_v18, 1  ;;  %vm1990_vm7 = vcmp.lt.s32.totalorder %v1968_v18, 4 }
 0x12a   : > { %v3636_v1 = vadd.s32 4294967169, %v1855_v11  ;;  %v3650_v45 = vmin.u32 %v2262_v19, %v4959_v8  ;;  %v1971_v34 = vshrl.u32 %v6551_v51, %v1970_v6  ;;  %v1992_v9 = vsel %vm1990_vm7, %v1980_v40, 2102212464 }
 0x12b   : > { %v1995_v35 = vsel %vm1987_vm6, %v1974_v33, %v1977_v21  ;;  %v4978_v13 = vpop.eup %3975  ;;  %vm1988_vm8 = vcmp.lt.s32.totalorder %v1968_v18, 2  ;;  %vm1989_vm11 = vcmp.lt.s32.totalorder %v1968_v18, 3  ;;  %v1996_v39 = vsel %vm1990_vm7, %v1983_v37, 920167782 }
 0x12c   : > { %v1999_v26 = vsel %vm1987_vm6, %v1977_v21, %v1980_v40  ;;  %v4981_v7 = vpop.eup %3977  ;;  %v2264_v29 = vclz %v3650_v45  ;;  %v1991_v17 = vsel %vm1987_vm6, %v1971_v34, %v1974_v33  ;;  %v1997_v11 = vsel %vm1989_vm11, %v1980_v40, %v1996_v39  ;;  %v1601_v33 = vpop.permute.xlu1 %1600 }
 0x12d   : > { %v2000_v38 = vsel %vm1990_vm7, %v1986_v60, 1326507024  ;;  %v1993_v31 = vsel %vm1989_vm11, %v1977_v21, %v1992_v9  ;;  %v1998_v6 = vsel %vm1988_vm8, %v1995_v35, %v1997_v11  ;;  %v1861_v30 = vadd.s32 1, %v3636_v1 }
 0x12e   : > { %v2001_v10 = vsel %vm1989_vm11, %v1983_v37, %v2000_v38  ;;  %v3651_v22 = vadd.s32 4294967294, %v2264_v29  ;;  %v4986_v19 = vmul.u32.u64.low %v2003_v56, %v1998_v6  ;;  %v4987_v3 = vmul.u32.u64.high %v2003_v56, %v1998_v6, %v4986_v19 }
 0x12f   : > { %v2002_v42 = vsel %vm1988_vm8, %v1999_v26, %v2001_v10  ;;  %v2408_v51 = vor.u32 %v2407_v58, %v2406_v41  ;;  %vm1862_vm12 = vcmp.gt.s32.totalorder %v1861_v30, 0  ;;  %v2412_v40 = vor.u32 4788187, %v2411_v43 }
 0x130   : > { %v4990_v53 = vmul.u32.u64.low %v2003_v56, %v2002_v42  ;;  %v4991_v46 = vmul.u32.u64.high %v2003_v56, %v2002_v42, %v4990_v53  ;;  %vm3652_vm13 = vcmp.lt.s32.totalorder %v3651_v22, 0  ;;  %v1994_v60 = vsel %vm1988_vm8, %v1991_v17, %v1993_v31 }
 0x131   : > { %v1863_v21 = vsel %vm1862_vm12, %v1861_v30, 0  ;;  %v4994_v37 = vsel %vm3652_vm13, 0, %v3651_v22  ;;  %v6639_v1 = vand.u32 2147483647, %v4910_v5  ;;  %v4999_v9 = vmul.f32 %v4923_v47, %v1594_v4 }
 0x132   : > { %v1865_v34 = vand.u32 31, %v1863_v21  ;;  %v2272_v58 = vsub.s32 4294967266, %v4994_v37  ;;  %v2013_v41 = vadd.s32 1, %v4987_v3  ;;  %v5007_v18 = vadd.f32 %v1601_v33, %v4938_v59 }
 0x133   : > { %v1858_v45 = vand.u32 8388607, %v6639_v1  ;;  %v5012_v43 = vsel %vm4858_vm9, %v4610_v44, %v2177_v15  ;;  %v2010_v35 = vmul.u32 %v2003_v56, %v1994_v60  ;;  %vm2012_vm14 = vc.u32 %v4991_v46, %v4986_v19 }
 0x134   : > { %6640 = vst [vmem:[#allocation15_spill] sm:$0xff] %v5007_v18  ;;  %v1866_v47 = vsub.s32 32, %v1865_v34  ;;  %v2413_v4 = vand.u32 2147483647, %v2412_v40  ;;  %v2415_v39 = vcvt.s32.f32 %v2408_v51  ;;  %v2252_v26 = vadd.s32 %v4891_v0, %v4897_v49 }
 0x135   : > { %v2014_v29 = vsel %vm2012_vm14, %v2013_v41, %v4987_v3  ;;  %v1859_v59 = vor.u32 8388608, %v1858_v45  ;;  %v6641_v11 = vmov 2475754826   ;;  %v6642_v31 = vmov 2131351028  }
 0x136   : > { %v2015_v17 = vadd.s32 %v2014_v29, %v2010_v35  ;;  %v1869_v38 = vshrl.u32 %v6641_v11, %v1866_v47  ;;  %v1872_v25 = vshrl.u32 %v6642_v31, %v1866_v47  ;;  %v2273_v15 = vadd.s32 127, %v2272_v58 }
 0x137   : > { %v6643_v6 = vmov 683565275   ;;  %v1871_v10 = vshll.u32 %v6641_v11, %v1865_v34  ;;  %v6644_v30 = vmov 2102212464   ;;  %v2268_v51 = vsub.s32 32, %v4994_v37 }
 0x138   : > { %v1868_v56 = vshll.u32 %v6643_v6, %v1865_v34  ;;  %v1875_v22 = vshrl.u32 %v6644_v30, %v1866_v47  ;;  %v2016_v42 = vadd.s32 536870912, %v2015_v17  ;;  %v1864_v33 = vshrl.u32 %v1863_v21, 5 }
 0x139   : > { %v1874_v0 = vshll.u32 %v6642_v31, %v1865_v34  ;;  %v1873_v49 = vor.u32 %v1872_v25, %v1871_v10  ;;  %v1877_v40 = vshll.u32 %v6644_v30, %v1865_v34  ;;  %v6645_v60 = vmov 920167782  }
 0x13a   : > { %v1870_v3 = vor.u32 %v1869_v38, %v1868_v56  ;;  %v1878_v1 = vshrl.u32 %v6645_v60, %v1866_v47  ;;  %v2416_v45 = vmul.f32 %v2415_v39, %v2413_v4  ;;  %v2282_v58 = vsub.s32 4, %v4946_v61 }
 0x13b   : > { %v5029_v41 = vshrl.u32 %v2016_v42, 30  ;;  %v6646_v35 = vmov 1326507024   ;;  %vm2198_vm9 = vcmp.lt.s32.totalorder %v4705_v20, 0  ;;  %v2274_v53 = vshll.u32 %v2273_v15, 23 }
 0x13c   : > { %v1881_v29 = vshrl.u32 %v6646_v35, %v1866_v47  ;;  %v1876_v36 = vor.u32 %v1875_v22, %v1874_v0  ;;  %v1879_v21 = vor.u32 %v1878_v1, %v1877_v40  ;;  %v1880_v44 = vshll.u32 %v6645_v60, %v1865_v34 }
 0x13d   : > { %v2018_v38 = vshll.u32 %v5029_v41, 30  ;;  %vm1883_vm15 = vcmp.lt.s32.totalorder %v1864_v33, 1  ;;  %v1899_v25 = vshll.u32 %v1859_v59, 8  ;;  %v1613_v56 = vand.u32 2139095040, %v5007_v18 }
 0x13e   : > { %v2270_v4 = vshrl.u32 %v2252_v26, %v2268_v51  ;;  %v1882_v39 = vor.u32 %v1881_v29, %v1880_v44  ;;  %vm1886_vm1 = vcmp.lt.s32.totalorder %v1864_v33, 4  ;;  %v1891_v10 = vsel %vm1883_vm15, %v1870_v3, %v1873_v49 }
 0x13f   : > { %v6647_v42 = vand.u32 2147483647, %v4705_v20  ;;  %v2269_v34 = vshll.u32 %v4959_v8, %v4994_v37  ;;  %v5045_v15 = vsub.s32 %v2015_v17, %v2018_v38  ;;  %vm1885_vm6 = vcmp.lt.s32.totalorder %v1864_v33, 3 }
 0x140   : > { %v1892_v59 = vsel %vm1886_vm1, %v1879_v21, 920167782  ;;  %v2275_v22 = vor.u32 4788187, %v2274_v53  ;;  %vm1884_vm7 = vcmp.lt.s32.totalorder %v1864_v33, 2  ;;  %v1867_v0 = vshrl.u32 %v6643_v6, %v1866_v47 }
 0x141   : > { %vm5039_vm3 = vcmp.le.f32.partialorder %v6647_v42, 0.7853982  ;;  %v1888_v44 = vsel %vm1886_vm1, %v1876_v36, 2102212464  ;;  %v1893_v26 = vsel %vm1885_vm6, %v1876_v36, %v1892_v59  ;;  %v2021_v51 = vsub.s32 0, %v5045_v15 }
 0x142   : > { %v1894_v40 = vsel %vm1884_vm7, %v1891_v10, %v1893_v26  ;;  %v1895_v1 = vsel %vm1883_vm15, %v1873_v49, %v1876_v36  ;;  %v2271_v8 = vor.u32 %v2270_v4, %v2269_v34  ;;  %v1896_v37 = vsel %vm1886_vm1, %v1882_v39, 1326507024 }
 0x143   : > { %v5055_v17 = vmul.u32.u64.low %v1899_v25, %v1894_v40  ;;  %v5056_v29 = vmul.u32.u64.high %v1899_v25, %v1894_v40, %v5055_v17  ;;  %v3641_v53 = vmin.u32 %v2021_v51, %v5045_v15  ;;  %v1887_v38 = vsel %vm1883_vm15, %v1867_v0, %v1870_v3 }
 0x144   : > { %v1889_v42 = vsel %vm1885_vm6, %v1873_v49, %v1888_v44  ;;  %v1897_v59 = vsel %vm1885_vm6, %v1879_v21, %v1896_v37  ;;  %v2417_v47 = vxor.u32 2147483648, %v2416_v45  ;;  %v2276_v62 = vand.u32 2147483647, %v2275_v22 }
 0x145   : > { %v1898_v10 = vsel %vm1884_vm7, %v1895_v1, %v1897_v59  ;;  %v1614_v36 = vshrl.u32 %v1613_v56, 23  ;;  %v2283_v4 = vsel %vm2198_vm9, %v2282_v58, %v4946_v61  ;;  %v2023_v39 = vclz %v3641_v53  ;;  %v5093_v59 = vld [vmem:[%s4426_s26 + $0x4] ss:$0 sm:$0xff] }
 0x146   : > { %v5067_v34 = vmul.u32.u64.low %v1899_v25, %v1898_v10  ;;  %v5068_v26 = vmul.u32.u64.high %v1899_v25, %v1898_v10, %v5067_v34  ;;  %v2278_v51 = vcvt.s32.f32 %v2271_v8  ;;  %v1890_v3 = vsel %vm1884_vm7, %v1887_v38, %v1889_v42  ;;  %v1353_v42 = vpop.permute.xlu0 %1352 }
 0x147   : > { %v1909_v49 = vadd.s32 1, %v5056_v29  ;;  %v3627_v44 = vadd.s32 4294967169, %v1614_v36  ;;  %3979 = vcosq.f32 %v5012_v43  ;;  %v6650_v21 = vsel %vm4971_vm4, 0, %v4943_v27  ;;  %v1365_v34 = vpop.permute.xlu1 %1364 }
 0x148   : > { %v2426_v56 = vadd.s32 3, %v6650_v21  ;;  %vm1957_vm8 = vcmp.lt.s32.totalorder %v4818_v16, 0  ;;  %v3642_v61 = vadd.s32 4294967294, %v2023_v39  ;;  %v2418_v58 = vsel %vm2335_vm5, %v2417_v47, %v2416_v45 }
 0x149   : > { %v2279_v22 = vmul.f32 %v2278_v51, %v2276_v62  ;;  %v2285_v33 = vsel %vm5039_vm3, 0, %v2283_v4  ;;  %v1620_v0 = vadd.s32 1, %v3627_v44  ;;  %v2041_v40 = vsub.s32 4, %v5029_v41 }
 0x14a   : > { %vm3643_vm11 = vcmp.lt.s32.totalorder %v3642_v61, 0  ;;  %v1906_v1 = vmul.u32 %v1899_v25, %v1890_v3  ;;  %vm1908_vm12 = vc.u32 %v5068_v26, %v5055_v17  ;;  %v6561_v37 = vand.u32 2147483647, %v5007_v18 }
 0x14b   : > { %v2026_v27 = vsel %vm3643_vm11, 0, %v3642_v61  ;;  %v1910_v8 = vsel %vm1908_vm12, %v1909_v49, %v5056_v29  ;;  %vm1621_vm13 = vcmp.gt.s32.totalorder %v1620_v0, 0  ;;  %v5090_v62 = vsel %vm4971_vm4, %v4631_v14, %v2418_v58 }
 0x14c   : > { %v2289_v45 = vadd.s32 3, %v2285_v33  ;;  %v2031_v53 = vsub.s32 4294967266, %v2026_v27  ;;  %v1911_v38 = vadd.s32 %v1910_v8, %v1906_v1  ;;  %3981 = vsinq.f32 %v5012_v43 }
 0x14d   : > { %v2280_v25 = vxor.u32 2147483648, %v2279_v22  ;;  %v6651_v47 = vand.u32 2147483647, %v4818_v16  ;;  %v1622_v10 = vsel %vm1621_vm13, %v1620_v0, 0  ;;  %v2027_v36 = vsub.s32 32, %v2026_v27 }
 0x14e   : > { %v2032_v54 = vadd.s32 127, %v2031_v53  ;;  %v5105_v4 = vsel %vm1957_vm8, %v2041_v40, %v5029_v41  ;;  %v1912_v39 = vadd.s32 536870912, %v1911_v38  ;;  %3983 = vcosq.f32 %v5090_v62 }
 0x14f   : > { %vm5098_vm5 = vcmp.le.f32.partialorder %v6651_v47, 0.7853982  ;;  %v5108_v43 = vand.u32 3, %v2426_v56  ;;  %v1624_v51 = vand.u32 31, %v1622_v10  ;;  %v1356_v3 = vmul.f32 %v5093_v59, %v1353_v42 }
 0x150   : > { %v5111_v49 = vand.u32 3, %v2289_v45  ;;  %v2011_v44 = vadd.s32 %v4986_v19, %v4991_v46  ;;  %v5115_v21 = vshrl.u32 %v1912_v39, 30  ;;  %v1617_v41 = vand.u32 8388607, %v6561_v37 }
 0x151   : > { %6654 = vst [vmem:[#allocation16_spill] sm:$0xff] %v5108_v43  ;;  %v5121_v61 = vsel %vm2198_vm9, %v2280_v25, %v2279_v22  ;;  %v1625_v58 = vsub.s32 32, %v1624_v51  ;;  %v5126_v33 = vadd.f32 %v1365_v34, %v1356_v3  ;;  %v2033_v40 = vshll.u32 %v2032_v54, 23 }
 0x152   : > { %6655 = vst [vmem:[#allocation17_spill] sm:$0xff] %v5111_v49  ;;  %v2029_v0 = vshrl.u32 %v2011_v44, %v2027_v36  ;;  %v1914_v46 = vshll.u32 %v5115_v21, 30  ;;  %v1627_v19 = vshll.u32 %v6643_v6, %v1624_v51  ;;  %v1630_v8 = vshll.u32 %v6641_v11, %v1624_v51 }
 0x153   : > { %v1628_v1 = vshrl.u32 %v6641_v11, %v1625_v58  ;;  %v1631_v22 = vshrl.u32 %v6642_v31, %v1625_v58  ;;  %v1634_v45 = vshrl.u32 %v6644_v30, %v1625_v58  ;;  %v2028_v53 = vshll.u32 %v5045_v15, %v2026_v27 }
 0x154   : > { %v5135_v42 = vsub.s32 %v1911_v38, %v1914_v46  ;;  %v1618_v25 = vor.u32 8388608, %v1617_v41  ;;  %v1623_v47 = vshrl.u32 %v1622_v10, 5  ;;  %v5137_v36 = vpop.eup %3979  ;;  %v1633_v34 = vshll.u32 %v6642_v31, %v1624_v51 }
 0x155   : > { %6656 = vst [vmem:[#allocation18_spill] sm:$0xff] %v5137_v36  ;;  %v1629_v54 = vor.u32 %v1628_v1, %v1627_v19  ;;  %v1632_v39 = vor.u32 %v1631_v22, %v1630_v8  ;;  %v1476_v3 = vand.u32 2139095040, %v5126_v33  ;;  %v2034_v44 = vor.u32 4788187, %v2033_v40 }
 0x156   : > { %v1917_v37 = vsub.s32 0, %v5135_v42  ;;  %v1636_v56 = vshll.u32 %v6644_v30, %v1624_v51  ;;  %v1637_v43 = vshrl.u32 %v6645_v60, %v1625_v58  ;;  %v2030_v15 = vor.u32 %v2029_v0, %v2028_v53 }
 0x157   : > { %v1635_v27 = vor.u32 %v1634_v45, %v1633_v34  ;;  %v1639_v38 = vshll.u32 %v6645_v60, %v1624_v51  ;;  %v1640_v10 = vshrl.u32 %v6646_v35, %v1625_v58  ;;  %vm1642_vm4 = vcmp.lt.s32.totalorder %v1623_v47, 1 }
 0x158   : > { %v3637_v41 = vmin.u32 %v1917_v37, %v5135_v42  ;;  %v1638_v46 = vor.u32 %v1637_v43, %v1636_v56  ;;  %v5147_v19 = vshll.u32 %v1618_v25, 8  ;;  %vm1645_vm14 = vcmp.lt.s32.totalorder %v1623_v47, 4  ;;  %v1606_v56 = vpop.permute.xlu0 %1605 }
 0x159   : > { %v1641_v1 = vor.u32 %v1640_v10, %v1639_v38  ;;  %v1650_v40 = vsel %vm1642_vm4, %v1629_v54, %v1632_v39  ;;  %v1477_v8 = vshrl.u32 %v1476_v3, 23  ;;  %v5150_v22 = vpop.eup %3981  ;;  %v2035_v14 = vand.u32 2147483647, %v2034_v44 }
 0x15a   : > { %6657 = vst [vmem:[#allocation19_spill] sm:$0xff] %v5150_v22  ;;  %v1919_v0 = vclz %v3637_v41  ;;  %vm1644_vm9 = vcmp.lt.s32.totalorder %v1623_v47, 3  ;;  %v1651_v51 = vsel %vm1645_vm14, %v1638_v46, 920167782  ;;  %v2037_v45 = vcvt.s32.f32 %v2030_v15 }
 0x15b   : > { %vm1643_vm15 = vcmp.lt.s32.totalorder %v1623_v47, 2  ;;  %v1652_v37 = vsel %vm1644_vm9, %v1635_v27, %v1651_v51  ;;  %v5155_v53 = vpop.eup %3983  ;;  %v1647_v34 = vsel %vm1645_vm14, %v1635_v27, 2102212464  ;;  %v1654_v44 = vsel %vm1642_vm4, %v1632_v39, %v1635_v27 }
 0x15c   : > { %6658 = vst [vmem:[#allocation20_spill] sm:$0xff] %v5155_v53  ;;  %v3638_v25 = vadd.s32 4294967294, %v1919_v0  ;;  %v1653_v3 = vsel %vm1643_vm15, %v1650_v40, %v1652_v37  ;;  %vm1853_vm1 = vcmp.lt.s32.totalorder %v4910_v5, 0  ;;  %v1626_v38 = vshrl.u32 %v6643_v6, %v1625_v58 }
 0x15d   : > { %v1655_v15 = vsel %vm1645_vm14, %v1641_v1, 1326507024  ;;  %v5164_v10 = vmul.u32.u64.low %v5147_v19, %v1653_v3  ;;  %v5165_v41 = vmul.u32.u64.high %v5147_v19, %v1653_v3, %v5164_v10  ;;  %v2038_v51 = vmul.f32 %v2037_v45, %v2035_v14 }
 0x15e   : > { %vm3639_vm6 = vcmp.lt.s32.totalorder %v3638_v25, 0  ;;  %v1656_v0 = vsel %vm1644_vm9, %v1638_v46, %v1655_v15  ;;  %v3622_v43 = vadd.s32 4294967169, %v1477_v8  ;;  %v1646_v27 = vsel %vm1642_vm4, %v1626_v38, %v1629_v54 }
 0x15f   : > { %v5169_v40 = vsel %vm3639_vm6, 0, %v3638_v25  ;;  %v1648_v37 = vsel %vm1644_vm9, %v1632_v39, %v1647_v34  ;;  %v1657_v58 = vsel %vm1643_vm15, %v1654_v44, %v1656_v0  ;;  %3985 = vsinq.f32 %v5090_v62  ;;  %v5192_v62 = vld [vmem:[%s4426_s26 + $0x3] ss:$0 sm:$0xff]  ;;  %v1107_v34 = vpop.permute.xlu0 %1106 }
 0x160   : > { %v2284_v1 = vsel %vm5039_vm3, %v4705_v20, %v5121_v61  ;;  %v6659_v14 = vsel %vm5098_vm5, 0, %v5105_v4  ;;  %v1483_v8 = vadd.s32 1, %v3622_v43  ;;  %v1937_v45 = vsub.s32 4, %v5115_v21 }
 0x161   : > { %v2048_v46 = vadd.s32 3, %v6659_v14  ;;  %v5185_v54 = vmul.u32.u64.low %v5147_v19, %v1657_v58  ;;  %v5186_v39 = vmul.u32.u64.high %v5147_v19, %v1657_v58, %v5185_v54  ;;  %v5189_v25 = vadd.f32 %v1606_v56, %v4999_v9 }
 0x162   : > { %v1927_v23 = vsub.s32 4294967266, %v5169_v40  ;;  %v1649_v61 = vsel %vm1643_vm15, %v1646_v27, %v1648_v37  ;;  %v1668_v4 = vadd.s32 1, %v5165_v41  ;;  %vm1484_vm3 = vcmp.gt.s32.totalorder %v1483_v8, 0 }
 0x163   : > { %6660 = vst [vmem:[#allocation21_spill] sm:$0xff] %v5189_v25  ;;  %3987 = vcosq.f32 %v2284_v1  ;;  %v2039_v43 = vxor.u32 2147483648, %v2038_v51  ;;  %v6661_v3 = vand.u32 2147483647, %v4910_v5  ;;  %v6664_v9 = vand.u32 2147483647, %v5126_v33 }
 0x164   : > { %v1485_v38 = vsel %vm1484_vm3, %v1483_v8, 0  ;;  %3989 = vsinq.f32 %v2284_v1  ;;  %v5205_v15 = vand.u32 3, %v2048_v46  ;;  %v5208_v0 = vmul.f32 %v5192_v62, %v1107_v34 }
 0x165   : > { %vm5199_vm7 = vcmp.le.f32.partialorder %v6661_v3, 0.7853982  ;;  %v1480_v56 = vand.u32 8388607, %v6664_v9  ;;  %v1487_v47 = vand.u32 31, %v1485_v38  ;;  %v1907_v27 = vadd.s32 %v5055_v17, %v5068_v26 }
 0x166   : > { %6665 = vst [vmem:[#allocation22_spill] sm:$0xff] %v5205_v15  ;;  %v1665_v37 = vmul.u32 %v5147_v19, %v1649_v61  ;;  %vm1667_vm11 = vc.u32 %v5186_v39, %v5164_v10  ;;  %v1928_v14 = vadd.s32 127, %v1927_v23  ;;  %v5219_v1 = vsel %vm1853_vm1, %v1937_v45, %v5115_v21 }
 0x167   : > { %v1669_v46 = vsel %vm1667_vm11, %v1668_v4, %v5165_v41  ;;  %v1488_v8 = vsub.s32 32, %v1487_v47  ;;  %v2040_v54 = vsel %vm1957_vm8, %v2039_v43, %v2038_v51  ;;  %v1923_v17 = vsub.s32 32, %v5169_v40 }
 0x168   : > { %v1670_v26 = vadd.s32 %v1669_v46, %v1665_v37  ;;  %v1481_v19 = vor.u32 8388608, %v1480_v56  ;;  %v1490_v34 = vshll.u32 %v6643_v6, %v1487_v47  ;;  %v1717_v3 = vand.u32 2139095040, %v5189_v25 }
 0x169   : > { %v1491_v61 = vshrl.u32 %v6641_v11, %v1488_v8  ;;  %v1494_v23 = vshrl.u32 %v6642_v31, %v1488_v8  ;;  %v1493_v45 = vshll.u32 %v6641_v11, %v1487_v47  ;;  %v1497_v41 = vshrl.u32 %v6644_v30, %v1488_v8 }
 0x16a   : > { %v1671_v21 = vadd.s32 536870912, %v1670_v26  ;;  %v1500_v4 = vshrl.u32 %v6645_v60, %v1488_v8  ;;  %v1929_v51 = vshll.u32 %v1928_v14, 23  ;;  %v1486_v43 = vshrl.u32 %v1485_v38, 5 }
 0x16b   : > { %v1496_v9 = vshll.u32 %v6642_v31, %v1487_v47  ;;  %v1499_v56 = vshll.u32 %v6644_v30, %v1487_v47  ;;  %v1492_v46 = vor.u32 %v1491_v61, %v1490_v34  ;;  %v1495_v58 = vor.u32 %v1494_v23, %v1493_v45 }
 0x16c   : > { %v5234_v37 = vshrl.u32 %v1671_v21, 30  ;;  %v1503_v15 = vshrl.u32 %v6646_v35, %v1488_v8  ;;  %v1940_v53 = vsel %vm5199_vm7, 0, %v5219_v1  ;;  %v1502_v36 = vshll.u32 %v6645_v60, %v1487_v47  ;;  %v5241_v14 = vpop.eup %3985  ;;  %v1112_v21 = vpop.permute.xlu1 %1111 }
 0x16d   : > { %v1498_v49 = vor.u32 %v1497_v41, %v1496_v9  ;;  %v1501_v20 = vor.u32 %v1500_v4, %v1499_v56  ;;  %6666 = vst [vmem:[#allocation23_spill] sm:$0xff] %v5241_v14  ;;  %v2043_v38 = vsel %vm5098_vm5, %v4818_v16, %v2040_v54  ;;  %v1924_v34 = vshll.u32 %v5135_v42, %v5169_v40 }
 0x16e   : > { %v1925_v61 = vshrl.u32 %v1907_v27, %v1923_v17  ;;  %v1673_v23 = vshll.u32 %v5234_v37, 30  ;;  %v1504_v45 = vor.u32 %v1503_v15, %v1502_v36  ;;  %vm1505_vm8 = vcmp.lt.s32.totalorder %v1486_v43, 1 }
 0x16f   : > { %v1521_v1 = vshll.u32 %v1481_v19, 8  ;;  %v1718_v41 = vshrl.u32 %v1717_v3, 23  ;;  %v1930_v4 = vor.u32 4788187, %v1929_v51  ;;  %vm1508_vm12 = vcmp.lt.s32.totalorder %v1486_v43, 4 }
 0x170   : > { %v5249_v9 = vsub.s32 %v1670_v26, %v1673_v23  ;;  %v1513_v47 = vsel %vm1505_vm8, %v1492_v46, %v1495_v58  ;;  %v5252_v56 = vpop.eup %3987  ;;  %v1489_v29 = vshrl.u32 %v6643_v6, %v1488_v8  ;;  %vm1507_vm13 = vcmp.lt.s32.totalorder %v1486_v43, 3  ;;  %v1119_v14 = vpop.permute.xlu1 %1118 }
 0x171   : > { %6667 = vst [vmem:[#allocation24_spill] sm:$0xff] %v5252_v56  ;;  %v1510_v42 = vsel %vm1508_vm12, %v1498_v49, 2102212464  ;;  %v1514_v40 = vsel %vm1508_vm12, %v1501_v20, 920167782  ;;  %v5255_v27 = vpop.eup %3989  ;;  %v1926_v54 = vor.u32 %v1925_v61, %v1924_v34  ;;  %vm1506_vm5 = vcmp.lt.s32.totalorder %v1486_v43, 2  ;;  %v1348_v56 = vpop.permute.xlu0 %1347 }
 0x172   : > { %6668 = vst [vmem:[#allocation25_spill] sm:$0xff] %v5255_v27  ;;  %v1676_v36 = vsub.s32 0, %v5249_v9  ;;  %v1515_v15 = vsel %vm1507_vm13, %v1498_v49, %v1514_v40  ;;  %v1509_v17 = vsel %vm1505_vm8, %v1489_v29, %v1492_v46  ;;  %v1517_v19 = vsel %vm1505_vm8, %v1495_v58, %v1498_v49 }
 0x173   : > { %v1516_v26 = vsel %vm1506_vm5, %v1513_v47, %v1515_v15  ;;  %v1518_v3 = vsel %vm1508_vm12, %v1504_v45, 1326507024  ;;  %v1511_v8 = vsel %vm1507_vm13, %v1495_v58, %v1510_v42  ;;  %v3631_v16 = vadd.s32 4294967169, %v1718_v41 }
 0x174   : > { %v3628_v51 = vmin.u32 %v1676_v36, %v5249_v9  ;;  %v1519_v23 = vsel %vm1507_vm13, %v1501_v20, %v1518_v3  ;;  %v1931_v27 = vand.u32 2147483647, %v1930_v4  ;;  %v1512_v45 = vsel %vm1506_vm5, %v1509_v17, %v1511_v8  ;;  %v1360_v28 = vpop.permute.xlu1 %1359 }
 0x175   : > { %v1520_v34 = vsel %vm1506_vm5, %v1517_v19, %v1519_v23  ;;  %v5263_v61 = vmul.u32.u64.low %v1521_v1, %v1516_v26  ;;  %v5264_v22 = vmul.u32.u64.high %v1521_v1, %v1516_v26, %v5263_v61  ;;  %v1724_v49 = vadd.s32 1, %v3631_v16 }
 0x176   : > { %v1678_v46 = vclz %v3628_v51  ;;  %v5267_v29 = vmul.u32.u64.low %v1521_v1, %v1520_v34  ;;  %v5268_v47 = vmul.u32.u64.high %v1521_v1, %v1520_v34, %v5267_v29  ;;  %v5272_v58 = vmul.f32 %v5192_v62, %v1112_v21 }
 0x177   : > { %v5275_v20 = vadd.f32 %v1119_v14, %v5208_v0  ;;  %v5278_v41 = vmul.f32 %v5093_v59, %v1348_v56  ;;  %v1933_v4 = vcvt.s32.f32 %v1926_v54  ;;  %v1944_v42 = vadd.s32 3, %v1940_v53 }
 0x178   : > { %v3629_v40 = vadd.s32 4294967294, %v1678_v46  ;;  %vm1725_vm4 = vcmp.gt.s32.totalorder %v1724_v49, 0  ;;  %3991 = vcosq.f32 %v2043_v38  ;;  %v1531_v36 = vadd.s32 1, %v5264_v22 }
 0x179   : > { %6669 = vst [vmem:[#allocation26_spill] sm:$0xff] %v5275_v20  ;;  %v6670_v16 = vand.u32 2147483647, %v5189_v25  ;;  %v1726_v15 = vsel %vm1725_vm4, %v1724_v49, 0  ;;  %v1934_v17 = vmul.f32 %v1933_v4, %v1931_v27  ;;  %v1528_v62 = vmul.u32 %v1521_v1, %v1512_v45 }
 0x17a   : > { %vm3630_vm14 = vcmp.lt.s32.totalorder %v3629_v40, 0  ;;  %vm1530_vm9 = vc.u32 %v5268_v47, %v5263_v61  ;;  %vm1612_vm15 = vcmp.lt.s32.totalorder %v5007_v18, 0  ;;  %v1728_v0 = vand.u32 31, %v1726_v15 }
 0x17b   : > { %v1721_v43 = vand.u32 8388607, %v6670_v16  ;;  %v1681_v59 = vsel %vm3630_vm14, 0, %v3629_v40  ;;  %v1532_v53 = vsel %vm1530_vm9, %v1531_v36, %v5264_v22  ;;  %v1131_v14 = vand.u32 2139095040, %v5275_v20 }
 0x17c   : > { %3993 = vsinq.f32 %v2043_v38  ;;  %v5288_v21 = vand.u32 3, %v1944_v42  ;;  %v1686_v56 = vsub.s32 4294967266, %v1681_v59  ;;  %v1533_v54 = vadd.s32 %v1532_v53, %v1528_v62 }
 0x17d   : > { %v1666_v27 = vadd.s32 %v5164_v10, %v5186_v39  ;;  %v1682_v1 = vsub.s32 32, %v1681_v59  ;;  %v1722_v26 = vor.u32 8388608, %v1721_v43  ;;  %v1729_v19 = vsub.s32 32, %v1728_v0 }
 0x17e   : > { %6671 = vst [vmem:[#allocation27_spill] sm:$0xff] %v5288_v21  ;;  %v1935_v3 = vxor.u32 2147483648, %v1934_v17  ;;  %v1687_v51 = vadd.s32 127, %v1686_v56  ;;  %v1696_v8 = vsub.s32 4, %v5234_v37  ;;  %v1534_v23 = vadd.s32 536870912, %v1533_v54 }
 0x17f   : > { %v1732_v22 = vshrl.u32 %v6641_v11, %v1729_v19  ;;  %v1735_v34 = vshrl.u32 %v6642_v31, %v1729_v19  ;;  %v1738_v38 = vshrl.u32 %v6644_v30, %v1729_v19  ;;  %v1132_v46 = vshrl.u32 %v1131_v14, 23 }
 0x180   : > { %v1535_v29 = vshrl.u32 %v1534_v23, 30  ;;  %v1731_v49 = vshll.u32 %v6643_v6, %v1728_v0  ;;  %v1734_v10 = vshll.u32 %v6641_v11, %v1728_v0  ;;  %v1741_v39 = vshrl.u32 %v6645_v60, %v1729_v19 }
 0x181   : > { %v1684_v45 = vshrl.u32 %v1666_v27, %v1682_v1  ;;  %v1727_v4 = vshrl.u32 %v1726_v15, 5  ;;  %v1737_v42 = vshll.u32 %v6642_v31, %v1728_v0  ;;  %v1740_v40 = vshll.u32 %v6644_v30, %v1728_v0 }
 0x182   : > { %v6672_v36 = vand.u32 2147483647, %v5007_v18  ;;  %v1688_v43 = vshll.u32 %v1687_v51, 23  ;;  %v1536_v62 = vshll.u32 %v1535_v29, 30  ;;  %v1733_v53 = vor.u32 %v1732_v22, %v1731_v49 }
 0x183   : > { %v1736_v14 = vor.u32 %v1735_v34, %v1734_v10  ;;  %v1739_v56 = vor.u32 %v1738_v38, %v1737_v42  ;;  %v1742_v23 = vor.u32 %v1741_v39, %v1740_v40  ;;  %v1743_v21 = vshll.u32 %v6645_v60, %v1728_v0 }
 0x184   : > { %vm5303_vm6 = vcmp.le.f32.partialorder %v6672_v36, 0.7853982  ;;  %v1744_v15 = vshrl.u32 %v6646_v35, %v1729_v19  ;;  %v1936_v27 = vsel %vm1853_vm1, %v1935_v3, %v1934_v17  ;;  %v1683_v1 = vshll.u32 %v5249_v9, %v1681_v59 }
 0x185   : > { %v1697_v36 = vsel %vm1612_vm15, %v1696_v8, %v5234_v37  ;;  %vm1475_vm3 = vcmp.lt.s32.totalorder %v5126_v33, 0  ;;  %v5316_v51 = vsub.s32 %v1533_v54, %v1536_v62  ;;  %v1730_v22 = vshrl.u32 %v6643_v6, %v1729_v19  ;;  %v5319_v49 = vpop.eup %3991 }
 0x186   : > { %v1745_v34 = vor.u32 %v1744_v15, %v1743_v21  ;;  %v1762_v38 = vshll.u32 %v1722_v26, 8  ;;  %v3609_v0 = vadd.s32 4294967169, %v1132_v46  ;;  %6675 = vst [vmem:[#allocation28_spill] sm:$0xff] %v5319_v49  ;;  %v1685_v10 = vor.u32 %v1684_v45, %v1683_v1 }
 0x187   : > { %v1539_v17 = vsub.s32 0, %v5316_v51  ;;  %vm1746_vm1 = vcmp.lt.s32.totalorder %v1727_v4, 1  ;;  %vm1749_vm11 = vcmp.lt.s32.totalorder %v1727_v4, 4  ;;  %v1689_v9 = vor.u32 4788187, %v1688_v43 }
 0x188   : > { %v6676_v59 = vand.u32 2147483647, %v5126_v33  ;;  %v1751_v54 = vsel %vm1749_vm11, %v1739_v56, 2102212464  ;;  %v1754_v3 = vsel %vm1746_vm1, %v1733_v53, %v1736_v14  ;;  %v1755_v19 = vsel %vm1749_vm11, %v1742_v23, 920167782 }
 0x189   : > { %v3623_v21 = vmin.u32 %v1539_v17, %v5316_v51  ;;  %v1559_v26 = vsub.s32 4, %v1535_v29  ;;  %vm1748_vm12 = vcmp.lt.s32.totalorder %v1727_v4, 3  ;;  %v1758_v8 = vsel %vm1746_vm1, %v1736_v14, %v1739_v56  ;;  %v5329_v46 = vpop.eup %3993 }
 0x18a   : > { %vm5324_vm8 = vcmp.le.f32.partialorder %v6676_v59, 0.7853982  ;;  %6679 = vst [vmem:[#allocation29_spill] sm:$0xff] %v5329_v46  ;;  %vm1747_vm13 = vcmp.lt.s32.totalorder %v1727_v4, 2  ;;  %v1750_v39 = vsel %vm1746_vm1, %v1730_v22, %v1733_v53  ;;  %v1756_v45 = vsel %vm1748_vm12, %v1739_v56, %v1755_v19 }
 0x18b   : > { %v1759_v42 = vsel %vm1749_vm11, %v1745_v34, 1326507024  ;;  %v1541_v40 = vclz %v3623_v21  ;;  %v1752_v43 = vsel %vm1748_vm12, %v1736_v14, %v1751_v54  ;;  %v1757_v62 = vsel %vm1747_vm13, %v1754_v3, %v1756_v45 }
 0x18c   : > { %v1760_v15 = vsel %vm1748_vm12, %v1742_v23, %v1759_v42  ;;  %v1699_v1 = vsel %vm5303_vm6, 0, %v1697_v36  ;;  %v5335_v17 = vmul.u32.u64.low %v1762_v38, %v1757_v62  ;;  %v5336_v49 = vmul.u32.u64.high %v1762_v38, %v1757_v62, %v5335_v17 }
 0x18d   : > { %v1761_v59 = vsel %vm1747_vm13, %v1758_v8, %v1760_v15  ;;  %v1690_v46 = vand.u32 2147483647, %v1689_v9  ;;  %v3624_v48 = vadd.s32 4294967294, %v1541_v40  ;;  %v1560_v14 = vsel %vm1475_vm3, %v1559_v26, %v1535_v29 }
 0x18e   : > { %v5339_v53 = vmul.u32.u64.low %v1762_v38, %v1761_v59  ;;  %v5340_v56 = vmul.u32.u64.high %v1762_v38, %v1761_v59, %v5339_v53  ;;  %v1753_v23 = vsel %vm1747_vm13, %v1750_v39, %v1752_v43  ;;  %v6582_v22 = vand.u32 2147483647, %v5275_v20 }
 0x18f   : > { %v1138_v36 = vadd.s32 1, %v3609_v0  ;;  %v1939_v34 = vsel %vm5199_vm7, %v4910_v5, %v1936_v27  ;;  %v1692_v54 = vcvt.s32.f32 %v1685_v10  ;;  %vm3625_vm5 = vcmp.lt.s32.totalorder %v3624_v48, 0 }
 0x190   : > { %v5350_v9 = vadd.f32 %v1360_v28, %v5278_v41  ;;  %v1703_v3 = vadd.s32 3, %v1699_v1  ;;  %v1544_v19 = vsel %vm3625_vm5, 0, %v3624_v48  ;;  %v1772_v21 = vadd.s32 1, %v5336_v49  ;;  %v1124_v41 = vpop.permute.xlu0 %1123 }
 0x191   : > { %vm1139_vm4 = vcmp.gt.s32.totalorder %v1138_v36, 0  ;;  %v1693_v29 = vmul.f32 %v1692_v54, %v1690_v46  ;;  %v1549_v4 = vsub.s32 4294967266, %v1544_v19  ;;  %v1562_v26 = vsel %vm5324_vm8, 0, %v1560_v14 }
 0x192   : > { %6680 = vst [vmem:[#allocation30_spill] sm:$0xff] %v5350_v9  ;;  %v1769_v0 = vmul.u32 %v1762_v38, %v1753_v23  ;;  %v1545_v8 = vsub.s32 32, %v1544_v19  ;;  %vm1771_vm7 = vc.u32 %v5340_v56, %v5335_v17  ;;  %v1135_v44 = vand.u32 8388607, %v6582_v22 }
 0x193   : > { %v1140_v28 = vsel %vm1139_vm4, %v1138_v36, 0  ;;  %3995 = vcosq.f32 %v1939_v34  ;;  %v1550_v48 = vadd.s32 127, %v1549_v4  ;;  %v1773_v27 = vsel %vm1771_vm7, %v1772_v21, %v5336_v49 }
 0x194   : > { %v1372_v10 = vand.u32 2139095040, %v5350_v9  ;;  %3997 = vsinq.f32 %v1939_v34  ;;  %v1529_v46 = vadd.s32 %v5263_v61, %v5268_v47  ;;  %v1774_v38 = vadd.s32 %v1773_v27, %v1769_v0 }
 0x195   : > { %v1142_v39 = vand.u32 31, %v1140_v28  ;;  %v1694_v45 = vxor.u32 2147483648, %v1693_v29  ;;  %v5363_v42 = vand.u32 3, %v1703_v3  ;;  %v5365_v40 = vadd.s32 3, %v1562_v26 }
 0x196   : > { %v5368_v43 = vadd.f32 %v1124_v41, %v5272_v58  ;;  %v1547_v62 = vshrl.u32 %v1529_v46, %v1545_v8  ;;  %v1775_v15 = vadd.s32 536870912, %v1774_v38  ;;  %v1136_v1 = vor.u32 8388608, %v1135_v44 }
 0x197   : > { %6681 = vst [vmem:[#allocation31_spill] sm:$0xff] %v5363_v42  ;;  %v1143_v49 = vsub.s32 32, %v1142_v39  ;;  %v1546_v59 = vshll.u32 %v5316_v51, %v1544_v19  ;;  %v1551_v53 = vshll.u32 %v1550_v48, 23  ;;  %v5371_v14 = vshrl.u32 %v1140_v28, 5 }
 0x198   : > { %v1373_v61 = vshrl.u32 %v1372_v10, 23  ;;  %v5373_v47 = vshrl.u32 %v1775_v15, 30  ;;  %v1145_v23 = vshll.u32 %v6643_v6, %v1142_v39  ;;  %v1148_v58 = vshll.u32 %v6641_v11, %v1142_v39 }
 0x199   : > { %v1146_v36 = vshrl.u32 %v6641_v11, %v1143_v49  ;;  %v1149_v34 = vshrl.u32 %v6642_v31, %v1143_v49  ;;  %v1152_v54 = vshrl.u32 %v6644_v30, %v1143_v49  ;;  %v1154_v3 = vshll.u32 %v6644_v30, %v1142_v39 }
 0x19a   : > { %v1155_v51 = vshrl.u32 %v6645_v60, %v1143_v49  ;;  %v1548_v19 = vor.u32 %v1547_v62, %v1546_v59  ;;  %v1777_v21 = vshll.u32 %v5373_v47, 30  ;;  %v1151_v4 = vshll.u32 %v6642_v31, %v1142_v39 }
 0x19b   : > { %v1157_v26 = vshll.u32 %v6645_v60, %v1142_v39  ;;  %v1147_v0 = vor.u32 %v1146_v36, %v1145_v23  ;;  %v1150_v8 = vor.u32 %v1149_v34, %v1148_v58  ;;  %v1158_v28 = vshrl.u32 %v6646_v35, %v1143_v49 }
 0x19c   : > { %v1156_v44 = vor.u32 %v1155_v51, %v1154_v3  ;;  %v1695_v41 = vsel %vm1612_vm15, %v1694_v45, %v1693_v29  ;;  %v5388_v48 = vsub.s32 %v1774_v38, %v1777_v21  ;;  %v1153_v27 = vor.u32 %v1152_v54, %v1151_v4 }
 0x19d   : > { %v1552_v46 = vor.u32 4788187, %v1551_v53  ;;  %v1159_v62 = vor.u32 %v1158_v28, %v1157_v26  ;;  %v1176_v15 = vshll.u32 %v1136_v1, 8  ;;  %v3618_v59 = vadd.s32 4294967169, %v1373_v61  ;;  %v871_v26 = vpop.permute.xlu1 %870  ;;  %v5419_v28 = vld [vmem:[%s4426_s26 + $0x2] ss:$0 sm:$0xff] }
 0x19e   : > { %v1780_v22 = vsub.s32 0, %v5388_v48  ;;  %vm1160_vm14 = vcmp.lt.s32.totalorder %v5371_v14, 1  ;;  %vm1161_vm9 = vcmp.lt.s32.totalorder %v5371_v14, 2  ;;  %vm1163_vm1 = vcmp.lt.s32.totalorder %v5371_v14, 4 }
 0x19f   : > { %v1555_v39 = vcvt.s32.f32 %v1548_v19  ;;  %vm1716_vm15 = vcmp.lt.s32.totalorder %v5189_v25, 0  ;;  %v1144_v29 = vshrl.u32 %v6643_v6, %v1143_v49  ;;  %v1168_v38 = vsel %vm1160_vm14, %v1147_v0, %v1150_v8 }
 0x1a0   : > { %v1169_v45 = vsel %vm1163_vm1, %v1156_v44, 920167782  ;;  %v5399_v53 = vpop.eup %3995  ;;  %v3632_v1 = vmin.u32 %v1780_v22, %v5388_v48  ;;  %vm1162_vm11 = vcmp.lt.s32.totalorder %v5371_v14, 3  ;;  %v1165_v61 = vsel %vm1163_vm1, %v1153_v27, 2102212464 }
 0x1a1   : > { %6682 = vst [vmem:[#allocation32_spill] sm:$0xff] %v5399_v53  ;;  %v1172_v23 = vsel %vm1160_vm14, %v1150_v8, %v1153_v27  ;;  %v5405_v36 = vpop.eup %3997  ;;  %v1553_v34 = vand.u32 2147483647, %v1552_v46  ;;  %v1800_v49 = vsub.s32 4, %v5373_v47  ;;  %v1170_v58 = vsel %vm1162_vm11, %v1153_v27, %v1169_v45 }
 0x1a2   : > { %v1173_v54 = vsel %vm1163_vm1, %v1159_v62, 1326507024  ;;  %v6683_v3 = vand.u32 2147483647, %v5189_v25  ;;  %v1782_v22 = vclz %v3632_v1  ;;  %v1164_v19 = vsel %vm1160_vm14, %v1144_v29, %v1147_v0 }
 0x1a3   : > { %v1171_v21 = vsel %vm1161_vm9, %v1168_v38, %v1170_v58  ;;  %v1174_v4 = vsel %vm1162_vm11, %v1156_v44, %v1173_v54  ;;  %v1166_v46 = vsel %vm1162_vm11, %v1150_v8, %v1165_v61  ;;  %v1379_v0 = vadd.s32 1, %v3618_v59 }
 0x1a4   : > { %vm5410_vm12 = vcmp.le.f32.partialorder %v6683_v3, 0.7853982  ;;  %v1175_v27 = vsel %vm1161_vm9, %v1172_v23, %v1174_v4  ;;  %v5423_v62 = vmul.u32.u64.low %v1176_v15, %v1171_v21  ;;  %v5424_v45 = vmul.u32.u64.high %v1176_v15, %v1171_v21, %v5423_v62 }
 0x1a5   : > { %v3633_v3 = vadd.s32 4294967294, %v1782_v22  ;;  %v5427_v1 = vmul.u32.u64.low %v1176_v15, %v1175_v27  ;;  %v5428_v10 = vmul.u32.u64.high %v1176_v15, %v1175_v27, %v5427_v1  ;;  %v5433_v44 = vsel %vm5303_vm6, %v5007_v18, %v1695_v41 }
 0x1a6   : > { %v5436_v29 = vand.u32 3, %v5365_v40  ;;  %v1770_v8 = vadd.s32 %v5335_v17, %v5340_v56  ;;  %v5441_v38 = vmul.f32 %v5419_v28, %v871_v26  ;;  %v1556_v61 = vmul.f32 %v1555_v39, %v1553_v34 }
 0x1a7   : > { %vm3634_vm13 = vcmp.lt.s32.totalorder %v3633_v3, 0  ;;  %v1167_v23 = vsel %vm1161_vm9, %v1164_v19, %v1166_v46  ;;  %vm1380_vm5 = vcmp.gt.s32.totalorder %v1379_v0, 0  ;;  %v1186_v16 = vadd.s32 1, %v5424_v45 }
 0x1a8   : > { %6686 = vst [vmem:[#allocation33_spill] sm:$0xff] %v5436_v29  ;;  %v1785_v59 = vsel %vm3634_vm13, 0, %v3633_v3  ;;  %v6687_v41 = vand.u32 2147483647, %v5350_v9  ;;  %v1381_v40 = vsel %vm1380_vm5, %v1379_v0, 0  ;;  %v1801_v17 = vsel %vm1716_vm15, %v1800_v49, %v5373_v47 }
 0x1a9   : > { %v1786_v54 = vsub.s32 32, %v1785_v59  ;;  %v1790_v22 = vsub.s32 4294967266, %v1785_v59  ;;  %v1235_v56 = vand.u32 2139095040, %v5368_v43  ;;  %3999 = vcosq.f32 %v5433_v44 }
 0x1aa   : > { %v1376_v58 = vand.u32 8388607, %v6687_v41  ;;  %v1183_v14 = vmul.u32 %v1176_v15, %v1167_v23  ;;  %vm1185_vm6 = vc.u32 %v5428_v10, %v5423_v62  ;;  %v1383_v39 = vand.u32 31, %v1381_v40 }
 0x1ab   : > { %v1557_v34 = vxor.u32 2147483648, %v1556_v61  ;;  %v1788_v19 = vshrl.u32 %v1770_v8, %v1786_v54  ;;  %v1791_v21 = vadd.s32 127, %v1790_v22  ;;  %v1187_v4 = vsel %vm1185_vm6, %v1186_v16, %v5424_v45 }
 0x1ac   : > { %v1803_v26 = vsel %vm5410_vm12, 0, %v1801_v17  ;;  %v1188_v46 = vadd.s32 %v1187_v4, %v1183_v14  ;;  %v1377_v27 = vor.u32 8388608, %v1376_v58  ;;  %v1384_v47 = vsub.s32 32, %v1383_v39 }
 0x1ad   : > { %v1787_v49 = vshll.u32 %v5388_v48, %v1785_v59  ;;  %v1792_v3 = vshll.u32 %v1791_v21, 23  ;;  %v5459_v1 = vshrl.u32 %v1381_v40, 5  ;;  %v1236_v15 = vshrl.u32 %v1235_v56, 23 }
 0x1ae   : > { %v1189_v0 = vadd.s32 536870912, %v1188_v46  ;;  %v1386_v23 = vshll.u32 %v6643_v6, %v1383_v39  ;;  %v1387_v8 = vshrl.u32 %v6641_v11, %v1384_v47  ;;  %v1390_v41 = vshrl.u32 %v6642_v31, %v1384_v47 }
 0x1af   : > { %v1789_v45 = vor.u32 %v1788_v19, %v1787_v49  ;;  %v1389_v16 = vshll.u32 %v6641_v11, %v1383_v39  ;;  %v1393_v54 = vshrl.u32 %v6644_v30, %v1384_v47  ;;  %v1396_v58 = vshrl.u32 %v6645_v60, %v1384_v47 }
 0x1b0   : > { %v1793_v22 = vor.u32 4788187, %v1792_v3  ;;  %v1190_v48 = vshrl.u32 %v1189_v0, 30  ;;  %v1392_v59 = vshll.u32 %v6642_v31, %v1383_v39  ;;  %v1395_v40 = vshll.u32 %v6644_v30, %v1383_v39 }
 0x1b1   : > { %v1388_v17 = vor.u32 %v1387_v8, %v1386_v23  ;;  %v1391_v56 = vor.u32 %v1390_v41, %v1389_v16  ;;  %v1398_v14 = vshll.u32 %v6645_v60, %v1383_v39  ;;  %v1399_v21 = vshrl.u32 %v6646_v35, %v1384_v47 }
 0x1b2   : > { %v1191_v4 = vshll.u32 %v1190_v48, 30  ;;  %v1394_v19 = vor.u32 %v1393_v54, %v1392_v59  ;;  %v1397_v49 = vor.u32 %v1396_v58, %v1395_v40  ;;  %v6587_v18 = vand.u32 2147483647, %v5368_v43 }
 0x1b3   : > { %v1558_v42 = vsel %vm1475_vm3, %v1557_v34, %v1556_v61  ;;  %v1807_v3 = vadd.s32 3, %v1803_v26  ;;  %vm1130_vm4 = vcmp.lt.s32.totalorder %v5275_v20, 0  ;;  %v1400_v0 = vor.u32 %v1399_v21, %v1398_v14 }
 0x1b4   : > { %v1417_v29 = vshll.u32 %v1377_v27, 8  ;;  %v5475_v53 = vsub.s32 %v1188_v46, %v1191_v4  ;;  %v1385_v23 = vshrl.u32 %v6643_v6, %v1384_v47  ;;  %vm1401_vm7 = vcmp.lt.s32.totalorder %v5459_v1, 1 }
 0x1b5   : > { %v3613_v39 = vadd.s32 4294967169, %v1236_v15  ;;  %v1794_v8 = vand.u32 2147483647, %v1793_v22  ;;  %v1796_v41 = vcvt.s32.f32 %v1789_v45  ;;  %vm1404_vm14 = vcmp.lt.s32.totalorder %v5459_v1, 4 }
 0x1b6   : > { %v1409_v16 = vsel %vm1401_vm7, %v1388_v17, %v1391_v56  ;;  %v6688_v61 = vand.u32 2147483647, %v5275_v20  ;;  %v1194_v26 = vsub.s32 0, %v5475_v53  ;;  %vm1403_vm9 = vcmp.lt.s32.totalorder %v5459_v1, 3  ;;  %v5490_v47 = vpop.eup %3999 }
 0x1b7   : > { %v1406_v46 = vsel %vm1404_vm14, %v1394_v19, 2102212464  ;;  %v1410_v27 = vsel %vm1404_vm14, %v1397_v49, 920167782  ;;  %6691 = vst [vmem:[#allocation34_spill] sm:$0xff] %v5490_v47  ;;  %vm1402_vm1 = vcmp.lt.s32.totalorder %v5459_v1, 2  ;;  %v1413_v45 = vsel %vm1401_vm7, %v1391_v56, %v1394_v19 }
 0x1b8   : > { %vm5484_vm3 = vcmp.le.f32.partialorder %v6688_v61, 0.7853982  ;;  %v1411_v15 = vsel %vm1403_vm9, %v1394_v19, %v1410_v27  ;;  %v1414_v54 = vsel %vm1404_vm14, %v1400_v0, 1326507024  ;;  %v3610_v58 = vmin.u32 %v1194_v26, %v5475_v53 }
 0x1b9   : > { %v1214_v22 = vsub.s32 4, %v1190_v48  ;;  %v1405_v59 = vsel %vm1401_vm7, %v1385_v23, %v1388_v17  ;;  %v1412_v40 = vsel %vm1402_vm1, %v1409_v16, %v1411_v15  ;;  %v1407_v14 = vsel %vm1403_vm9, %v1391_v56, %v1406_v46 }
 0x1ba   : > { %v1415_v21 = vsel %vm1403_vm9, %v1397_v49, %v1414_v54  ;;  %v5500_v4 = vmul.u32.u64.low %v1417_v29, %v1412_v40  ;;  %v5501_v61 = vmul.u32.u64.high %v1417_v29, %v1412_v40, %v5500_v4  ;;  %v1561_v19 = vsel %vm5324_vm8, %v5126_v33, %v1558_v42 }
 0x1bb   : > { %v1797_v0 = vmul.f32 %v1796_v41, %v1794_v8  ;;  %v1196_v27 = vclz %v3610_v58  ;;  %v1416_v26 = vsel %vm1402_vm1, %v1413_v45, %v1415_v21  ;;  %4001 = vsinq.f32 %v5433_v44 }
 0x1bc   : > { %v5510_v17 = vmul.u32.u64.low %v1417_v29, %v1416_v26  ;;  %v5511_v23 = vmul.u32.u64.high %v1417_v29, %v1416_v26, %v5510_v17  ;;  %v1242_v56 = vadd.s32 1, %v3613_v39  ;;  %v5513_v49 = vand.u32 3, %v1807_v3  ;;  %v866_v39 = vpop.permute.xlu0 %865 }
 0x1bd   : > { %v3611_v16 = vadd.s32 4294967294, %v1196_v27  ;;  %v1215_v46 = vsel %vm1130_vm4, %v1214_v22, %v1190_v48  ;;  %v1408_v37 = vsel %vm1402_vm1, %v1405_v59, %v1407_v14  ;;  %4003 = vcosq.f32 %v1561_v19 }
 0x1be   : > { %6692 = vst [vmem:[#allocation35_spill] sm:$0xff] %v5513_v49  ;;  %v1427_v42 = vadd.s32 1, %v5501_v61  ;;  %v5522_v8 = vand.u32 8388607, %v6587_v18  ;;  %vm1243_vm8 = vcmp.gt.s32.totalorder %v1242_v56, 0  ;;  %4005 = vsinq.f32 %v1561_v19 }
 0x1bf   : > { %v1798_v44 = vxor.u32 2147483648, %v1797_v0  ;;  %vm3612_vm11 = vcmp.lt.s32.totalorder %v3611_v16, 0  ;;  %v1244_v3 = vsel %vm1243_vm8, %v1242_v56, 0  ;;  %v1217_v48 = vsel %vm5484_vm3, 0, %v1215_v46 }
 0x1c0   : > { %v1199_v41 = vsel %vm3612_vm11, 0, %v3611_v16  ;;  %v1424_v15 = vmul.u32 %v1417_v29, %v1408_v37  ;;  %vm1426_vm13 = vc.u32 %v5511_v23, %v5500_v4  ;;  %v1184_v1 = vadd.s32 %v5423_v62, %v5428_v10 }
 0x1c1   : > { %v1200_v45 = vsub.s32 32, %v1199_v41  ;;  %v1204_v54 = vsub.s32 4294967266, %v1199_v41  ;;  %v1428_v58 = vsel %vm1426_vm13, %v1427_v42, %v5501_v61  ;;  %v1240_v59 = vor.u32 8388608, %v5522_v8 }
 0x1c2   : > { %v1429_v22 = vadd.s32 %v1428_v58, %v1424_v15  ;;  %v1246_v40 = vand.u32 31, %v1244_v3  ;;  %v5533_v14 = vmul.f32 %v5419_v28, %v866_v39  ;;  %v1201_v21 = vshll.u32 %v5475_v53, %v1199_v41 }
 0x1c3   : > { %v1202_v29 = vshrl.u32 %v1184_v1, %v1200_v45  ;;  %v1205_v19 = vadd.s32 127, %v1204_v54  ;;  %v5536_v27 = vadd.s32 3, %v1217_v48  ;;  %v1799_v10 = vsel %vm1716_vm15, %v1798_v44, %v1797_v0  ;;  %v883_v0 = vpop.permute.xlu1 %882 }
 0x1c4   : > { %v1430_v62 = vadd.s32 536870912, %v1429_v22  ;;  %v5540_v26 = vshrl.u32 %v1244_v3, 5  ;;  %v1247_v61 = vsub.s32 32, %v1246_v40  ;;  %v1249_v16 = vshll.u32 %v6643_v6, %v1246_v40 }
 0x1c5   : > { %v1203_v17 = vor.u32 %v1202_v29, %v1201_v21  ;;  %v1206_v56 = vshll.u32 %v1205_v19, 23  ;;  %v1252_v28 = vshll.u32 %v6641_v11, %v1246_v40  ;;  %vm1371_vm5 = vcmp.lt.s32.totalorder %v5350_v9, 0 }
 0x1c6   : > { %v1431_v53 = vshrl.u32 %v1430_v62, 30  ;;  %v1250_v46 = vshrl.u32 %v6641_v11, %v1247_v61  ;;  %v1253_v37 = vshrl.u32 %v6642_v31, %v1247_v61  ;;  %v1255_v42 = vshll.u32 %v6642_v31, %v1246_v40 }
 0x1c7   : > { %v1207_v8 = vor.u32 4788187, %v1206_v56  ;;  %v1256_v44 = vshrl.u32 %v6644_v30, %v1247_v61  ;;  %v1258_v3 = vshll.u32 %v6644_v30, %v1246_v40  ;;  %v1259_v39 = vshrl.u32 %v6645_v60, %v1247_v61 }
 0x1c8   : > { %v5554_v41 = vsel %vm5410_vm12, %v5189_v25, %v1799_v10  ;;  %v1432_v48 = vshll.u32 %v1431_v53, 30  ;;  %v1251_v15 = vor.u32 %v1250_v46, %v1249_v16  ;;  %v1254_v1 = vor.u32 %v1253_v37, %v1252_v28  ;;  %v5556_v45 = vpop.eup %4001 }
 0x1c9   : > { %6693 = vst [vmem:[#allocation36_spill] sm:$0xff] %v5556_v45  ;;  %v1208_v54 = vand.u32 2147483647, %v1207_v8  ;;  %v1257_v58 = vor.u32 %v1256_v44, %v1255_v42  ;;  %v1260_v21 = vor.u32 %v1259_v39, %v1258_v3  ;;  %v5559_v29 = vadd.f32 %v883_v0, %v5441_v38  ;;  %v878_v44 = vpop.permute.xlu0 %877 }
 0x1ca   : > { %v5561_v19 = vsub.s32 %v1429_v22, %v1432_v48  ;;  %v1261_v62 = vshll.u32 %v6645_v60, %v1246_v40  ;;  %v1262_v56 = vshrl.u32 %v6646_v35, %v1247_v61  ;;  %vm1264_vm15 = vcmp.lt.s32.totalorder %v5540_v26, 1  ;;  %v5566_v51 = vpop.eup %4003 }
 0x1cb   : > { %6694 = vst [vmem:[#allocation37_spill] sm:$0xff] %v5559_v29  ;;  %6695 = vst [vmem:[#allocation38_spill] sm:$0xff] %v5566_v51  ;;  %v1210_v10 = vcvt.s32.f32 %v1203_v17  ;;  %v6696_v16 = vand.u32 2147483647, %v5350_v9  ;;  %v1455_v46 = vsub.s32 4, %v1431_v53  ;;  %vm1265_vm6 = vcmp.lt.s32.totalorder %v5540_v26, 2  ;;  %v5576_v38 = vpop.eup %4005 }
 0x1cc   : > { %vm1266_vm7 = vcmp.lt.s32.totalorder %v5540_v26, 3  ;;  %6699 = vst [vmem:[#allocation39_spill] sm:$0xff] %v5576_v38  ;;  %v1435_v22 = vsub.s32 0, %v5561_v19  ;;  %v1263_v40 = vor.u32 %v1262_v56, %v1261_v62  ;;  %vm1267_vm14 = vcmp.lt.s32.totalorder %v5540_v26, 4 }
 0x1cd   : > { %vm5570_vm12 = vcmp.le.f32.partialorder %v6696_v16, 0.7853982  ;;  %v1272_v17 = vsel %vm1264_vm15, %v1251_v15, %v1254_v1  ;;  %v1211_v37 = vmul.f32 %v1210_v10, %v1208_v54  ;;  %v1269_v42 = vsel %vm1267_vm14, %v1257_v58, 2102212464 }
 0x1ce   : > { %v1273_v0 = vsel %vm1267_vm14, %v1260_v21, 920167782  ;;  %v1276_v8 = vsel %vm1264_vm15, %v1254_v1, %v1257_v58  ;;  %v3619_v3 = vmin.u32 %v1435_v22, %v5561_v19  ;;  %v1248_v39 = vshrl.u32 %v6643_v6, %v1247_v61 }
 0x1cf   : > { %v1274_v48 = vsel %vm1266_vm7, %v1257_v58, %v1273_v0  ;;  %v1277_v62 = vsel %vm1267_vm14, %v1263_v40, 1326507024  ;;  %v1456_v56 = vsel %vm1371_vm5, %v1455_v46, %v1431_v53  ;;  %v1280_v16 = vshll.u32 %v1240_v59, 8 }
 0x1d0   : > { %v1275_v54 = vsel %vm1265_vm6, %v1272_v17, %v1274_v48  ;;  %v1278_v10 = vsel %vm1266_vm7, %v1260_v21, %v1277_v62  ;;  %v1437_v18 = vclz %v3619_v3  ;;  %v1268_v22 = vsel %vm1264_vm15, %v1248_v39, %v1251_v15 }
 0x1d1   : > { %v1270_v61 = vsel %vm1266_vm7, %v1254_v1, %v1269_v42  ;;  %v1279_v58 = vsel %vm1265_vm6, %v1276_v8, %v1278_v10  ;;  %v1212_v40 = vxor.u32 2147483648, %v1211_v37  ;;  %v994_v46 = vand.u32 2139095040, %v5559_v29  ;;  %v625_v8 = vpop.permute.xlu0 %624 }
 0x1d2   : > { %v5600_v0 = vmul.u32.u64.low %v1280_v16, %v1279_v58  ;;  %v5601_v53 = vmul.u32.u64.high %v1280_v16, %v1279_v58, %v5600_v0  ;;  %v3620_v17 = vadd.s32 4294967294, %v1437_v18  ;;  %v5609_v59 = vadd.f32 %v878_v44, %v5533_v14 }
 0x1d3   : > { %v5604_v48 = vmul.u32.u64.low %v1280_v16, %v1275_v54  ;;  %v5605_v21 = vmul.u32.u64.high %v1280_v16, %v1275_v54, %v5604_v48  ;;  %4007 = vcosq.f32 %v5554_v41  ;;  %v5613_v15 = vand.u32 3, %v5536_v27  ;;  %v3590_v0 = vld [vmem:[%s4426_s26 + $0x1] ss:$0 sm:$0xff] }
 0x1d4   : > { %v6588_v1 = vand.u32 2147483647, %v5559_v29  ;;  %v995_v42 = vshrl.u32 %v994_v46, 23  ;;  %v1425_v3 = vadd.s32 %v5500_v4, %v5511_v23  ;;  %vm3621_vm9 = vcmp.lt.s32.totalorder %v3620_v17, 0 }
 0x1d5   : > { %6700 = vst [vmem:[#allocation40_spill] sm:$0xff] %v5613_v15  ;;  %v1458_v18 = vsel %vm5570_vm12, 0, %v1456_v56  ;;  %v1271_v14 = vsel %vm1265_vm6, %v1268_v22, %v1270_v61  ;;  %v1213_v44 = vsel %vm1130_vm4, %v1212_v40, %v1211_v37  ;;  %v1440_v39 = vsel %vm3621_vm9, 0, %v3620_v17  ;;  %v630_v40 = vpop.permute.xlu1 %629 }
 0x1d6   : > { %vm1289_vm1 = vc.u32 %v5601_v53, %v5604_v48  ;;  %v3604_v27 = vadd.s32 4294967169, %v995_v42  ;;  %v1441_v62 = vsub.s32 32, %v1440_v39  ;;  %v1445_v54 = vsub.s32 4294967266, %v1440_v39  ;;  %v5640_v42 = vld [vmem:[%s4426_s26] ss:$0 sm:$0xff] }
 0x1d7   : > { %v1290_v4 = vadd.s32 1, %v5605_v21  ;;  %v890_v23 = vand.u32 2139095040, %v5609_v59  ;;  %4009 = vsinq.f32 %v5554_v41  ;;  %v1462_v26 = vadd.s32 3, %v1458_v18 }
 0x1d8   : > { %v1287_v56 = vmul.u32 %v1280_v16, %v1271_v14  ;;  %v1001_v10 = vadd.s32 1, %v3604_v27  ;;  %v1442_v37 = vshll.u32 %v5561_v19, %v1440_v39  ;;  %v1443_v22 = vshrl.u32 %v1425_v3, %v1441_v62  ;;  %v389_v16 = vpop.permute.xlu0 %388 }
 0x1d9   : > { %v1446_v61 = vadd.s32 127, %v1445_v54  ;;  %v1291_v58 = vsel %vm1289_vm1, %v1290_v4, %v5605_v21  ;;  %v5635_v46 = vsel %vm5484_vm3, %v5275_v20, %v1213_v44  ;;  %v998_v41 = vand.u32 8388607, %v6588_v1 }
 0x1da   : > { %v1292_v17 = vadd.s32 %v1291_v58, %v1287_v56  ;;  %vm1002_vm4 = vcmp.gt.s32.totalorder %v1001_v10, 0  ;;  %v1444_v19 = vor.u32 %v1443_v22, %v1442_v37  ;;  %v891_v14 = vshrl.u32 %v890_v23, 23 }
 0x1db   : > { %v1447_v3 = vshll.u32 %v1446_v61, 23  ;;  %v1003_v18 = vsel %vm1002_vm4, %v1001_v10, 0  ;;  %v5642_v27 = vmul.f32 %v3590_v0, %v630_v40  ;;  %v5644_v62 = vmul.f32 %v3590_v0, %v625_v8 }
 0x1dc   : > { %v1293_v21 = vadd.s32 536870912, %v1292_v17  ;;  %v1005_v39 = vand.u32 31, %v1003_v18  ;;  %4011 = vcosq.f32 %v5635_v46  ;;  %v5647_v44 = vand.u32 3, %v1462_v26 }
 0x1dd   : > { %v1448_v34 = vor.u32 4788187, %v1447_v3  ;;  %vm1234_vm3 = vcmp.lt.s32.totalorder %v5368_v43, 0  ;;  %v5651_v54 = vmul.f32 %v5640_v42, %v389_v16  ;;  %v999_v56 = vor.u32 8388608, %v998_v41 }
 0x1de   : > { %6701 = vst [vmem:[#allocation41_spill] sm:$0xff] %v5647_v44  ;;  %v1294_v4 = vshrl.u32 %v1293_v21, 30  ;;  %v1006_v10 = vsub.s32 32, %v1005_v39  ;;  %v1451_v37 = vcvt.s32.f32 %v1444_v19  ;;  %v1004_v22 = vshrl.u32 %v1003_v18, 5 }
 0x1df   : > { %v1008_v8 = vshll.u32 %v6643_v6, %v1005_v39  ;;  %v3600_v61 = vadd.s32 4294967169, %v891_v14  ;;  %v1449_v58 = vand.u32 2147483647, %v1448_v34  ;;  %v1011_v0 = vshll.u32 %v6641_v11, %v1005_v39 }
 0x1e0   : > { %v1295_v40 = vshll.u32 %v1294_v4, 30  ;;  %v1009_v26 = vshrl.u32 %v6641_v11, %v1006_v10  ;;  %v5657_v3 = vpop.eup %4007  ;;  %v1012_v16 = vshrl.u32 %v6642_v31, %v1006_v10  ;;  %v1014_v41 = vshll.u32 %v6642_v31, %v1005_v39 }
 0x1e1   : > { %6702 = vst [vmem:[#allocation42_spill] sm:$0xff] %v5657_v3  ;;  %v1015_v21 = vshrl.u32 %v6644_v30, %v1006_v10  ;;  %v1018_v19 = vshrl.u32 %v6645_v60, %v1006_v10  ;;  %v1318_v1 = vsub.s32 4, %v1294_v4  ;;  %v1017_v14 = vshll.u32 %v6644_v30, %v1005_v39 }
 0x1e2   : > { %v5663_v18 = vsub.s32 %v1292_v17, %v1295_v40  ;;  %v1021_v34 = vshrl.u32 %v6646_v35, %v1006_v10  ;;  %v1010_v23 = vor.u32 %v1009_v26, %v1008_v8  ;;  %v1013_v44 = vor.u32 %v1012_v16, %v1011_v0 }
 0x1e3   : > { %v1016_v15 = vor.u32 %v1015_v21, %v1014_v41  ;;  %v1020_v20 = vshll.u32 %v6645_v60, %v1005_v39  ;;  %v1452_v3 = vmul.f32 %v1451_v37, %v1449_v58  ;;  %v1019_v25 = vor.u32 %v1018_v19, %v1017_v14 }
 0x1e4   : > { %v1298_v49 = vsub.s32 0, %v5663_v18  ;;  %v6703_v47 = vand.u32 2147483647, %v5609_v59  ;;  %v5673_v17 = vpop.eup %4009  ;;  %v6705_v40 = vand.u32 2147483647, %v5368_v43  ;;  %v1007_v8 = vshrl.u32 %v6643_v6, %v1006_v10 }
 0x1e5   : > { %6704 = vst [vmem:[#allocation43_spill] sm:$0xff] %v5673_v17  ;;  %v1022_v26 = vor.u32 %v1021_v34, %v1020_v20  ;;  %v1039_v39 = vshll.u32 %v999_v56, 8  ;;  %v897_v37 = vadd.s32 1, %v3600_v61  ;;  %v5685_v0 = vsel %vm1234_vm3, %v1318_v1, %v1294_v4 }
 0x1e6   : > { %v5671_v45 = vand.u32 8388607, %v6703_v47  ;;  %vm5677_vm8 = vcmp.le.f32.partialorder %v6705_v40, 0.7853982  ;;  %v3614_v58 = vmin.u32 %v1298_v49, %v5663_v18  ;;  %vm1023_vm11 = vcmp.lt.s32.totalorder %v1004_v22, 1 }
 0x1e7   : > { %vm1026_vm13 = vcmp.lt.s32.totalorder %v1004_v22, 4  ;;  %vm1025_vm15 = vcmp.lt.s32.totalorder %v1004_v22, 3  ;;  %v1027_v47 = vsel %vm1023_vm11, %v1007_v8, %v1010_v23  ;;  %v1031_v41 = vsel %vm1023_vm11, %v1010_v23, %v1013_v44  ;;  %v637_v8 = vpop.permute.xlu1 %636 }
 0x1e8   : > { %v1028_v16 = vsel %vm1026_vm13, %v1016_v15, 2102212464  ;;  %v1453_v21 = vxor.u32 2147483648, %v1452_v3  ;;  %v1300_v19 = vclz %v3614_v58  ;;  %v1032_v10 = vsel %vm1026_vm13, %v1019_v25, 920167782 }
 0x1e9   : > { %v1029_v14 = vsel %vm1025_vm15, %v1013_v44, %v1028_v16  ;;  %vm1024_vm6 = vcmp.lt.s32.totalorder %v1004_v22, 2  ;;  %v1033_v20 = vsel %vm1025_vm15, %v1016_v15, %v1032_v10  ;;  %v1035_v56 = vsel %vm1023_vm11, %v1013_v44, %v1016_v15  ;;  %v5689_v61 = vpop.eup %4011 }
 0x1ea   : > { %v1036_v49 = vsel %vm1026_vm13, %v1022_v26, 1326507024  ;;  %6708 = vst [vmem:[#allocation44_spill] sm:$0xff] %v5689_v61  ;;  %v3615_v1 = vadd.s32 4294967294, %v1300_v19  ;;  %v1030_v4 = vsel %vm1024_vm6, %v1027_v47, %v1029_v14  ;;  %v1034_v34 = vsel %vm1024_vm6, %v1031_v41, %v1033_v20 }
 0x1eb   : > { %v1037_v40 = vsel %vm1025_vm15, %v1019_v25, %v1036_v49  ;;  %v5692_v23 = vmul.u32.u64.low %v1039_v39, %v1034_v34  ;;  %v5693_v38 = vmul.u32.u64.high %v1039_v39, %v1034_v34, %v5692_v23  ;;  %vm898_vm7 = vcmp.gt.s32.totalorder %v897_v37, 0 }
 0x1ec   : > { %v1038_v17 = vsel %vm1024_vm6, %v1035_v56, %v1037_v40  ;;  %vm3616_vm14 = vcmp.lt.s32.totalorder %v3615_v1, 0  ;;  %v899_v15 = vsel %vm898_vm7, %v897_v37, 0  ;;  %v1288_v44 = vadd.s32 %v5604_v48, %v5601_v53 }
 0x1ed   : > { %v5696_v58 = vmul.u32.u64.low %v1039_v39, %v1038_v17  ;;  %v5697_v16 = vmul.u32.u64.high %v1039_v39, %v1038_v17, %v5696_v58  ;;  %v1303_v26 = vsel %vm3616_vm14, 0, %v3615_v1  ;;  %v901_v47 = vand.u32 31, %v899_v15 }
 0x1ee   : > { %v5702_v22 = vadd.f32 %v637_v8, %v5644_v62  ;;  %v1304_v25 = vsub.s32 32, %v1303_v26  ;;  %v1308_v41 = vsub.s32 4294967266, %v1303_v26  ;;  %v1321_v19 = vsel %vm5677_vm8, 0, %v5685_v0  ;;  %v401_v8 = vpop.permute.xlu1 %400 }
 0x1ef   : > { %v895_v14 = vor.u32 8388608, %v5671_v45  ;;  %v1454_v17 = vsel %vm1371_vm5, %v1453_v21, %v1452_v3  ;;  %v1046_v37 = vmul.u32 %v1039_v39, %v1030_v4  ;;  %v1049_v10 = vadd.s32 1, %v5693_v38 }
 0x1f0   : > { %v902_v53 = vsub.s32 32, %v901_v47  ;;  %v1305_v48 = vshll.u32 %v5663_v18, %v1303_v26  ;;  %v1306_v20 = vshrl.u32 %v1288_v44, %v1304_v25  ;;  %v1309_v62 = vadd.s32 127, %v1308_v41 }
 0x1f1   : > { %vm1048_vm9 = vc.u32 %v5697_v16, %v5692_v23  ;;  %v904_v0 = vshll.u32 %v6643_v6, %v901_v47  ;;  %v900_v21 = vshrl.u32 %v899_v15, 5  ;;  %v907_v1 = vshll.u32 %v6641_v11, %v901_v47 }
 0x1f2   : > { %v1050_v56 = vsel %vm1048_vm9, %v1049_v10, %v5693_v38  ;;  %v905_v45 = vshrl.u32 %v6641_v11, %v902_v53  ;;  %v908_v49 = vshrl.u32 %v6642_v31, %v902_v53  ;;  %v1310_v3 = vshll.u32 %v1309_v62, 23 }
 0x1f3   : > { %v1051_v39 = vadd.s32 %v1050_v56, %v1046_v37  ;;  %v1307_v4 = vor.u32 %v1306_v20, %v1305_v48  ;;  %v910_v34 = vshll.u32 %v6642_v31, %v901_v47  ;;  %v911_v40 = vshrl.u32 %v6644_v30, %v902_v53 }
 0x1f4   : > { %v906_v18 = vor.u32 %v905_v45, %v904_v0  ;;  %v1311_v58 = vor.u32 4788187, %v1310_v3  ;;  %v913_v44 = vshll.u32 %v6644_v30, %v901_v47  ;;  %v914_v26 = vshrl.u32 %v6645_v60, %v902_v53 }
 0x1f5   : > { %v1052_v38 = vadd.s32 536870912, %v1051_v39  ;;  %vm993_vm5 = vcmp.lt.s32.totalorder %v5559_v29, 0  ;;  %v909_v25 = vor.u32 %v908_v49, %v907_v1  ;;  %v912_v41 = vor.u32 %v911_v40, %v910_v34 }
 0x1f6   : > { %v916_v15 = vshll.u32 %v6645_v60, %v901_v47  ;;  %v917_v37 = vshrl.u32 %v6646_v35, %v902_v53  ;;  %v1312_v10 = vand.u32 2147483647, %v1311_v58  ;;  %v915_v20 = vor.u32 %v914_v26, %v913_v44 }
 0x1f7   : > { %v1053_v48 = vshrl.u32 %v1052_v38, 30  ;;  %v5727_v62 = vadd.f32 %v401_v8, %v5651_v54  ;;  %v1314_v56 = vcvt.s32.f32 %v1307_v4  ;;  %v1325_v0 = vadd.s32 3, %v1321_v19 }
 0x1f8   : > { %v918_v45 = vor.u32 %v917_v37, %v916_v15  ;;  %v935_v3 = vshll.u32 %v895_v14, 8  ;;  %v1457_v61 = vsel %vm5570_vm12, %v5350_v9, %v1454_v17  ;;  %vm919_vm1 = vcmp.lt.s32.totalorder %v900_v21, 1 }
 0x1f9   : > { %v1054_v49 = vshll.u32 %v1053_v48, 30  ;;  %vm922_vm4 = vcmp.lt.s32.totalorder %v900_v21, 4  ;;  %v1315_v47 = vmul.f32 %v1314_v56, %v1312_v10  ;;  %v6709_v1 = vand.u32 2147483647, %v5559_v29 }
 0x1fa   : > { %v924_v54 = vsel %vm922_vm4, %v912_v41, 2102212464  ;;  %v927_v4 = vsel %vm919_vm1, %v906_v18, %v909_v25  ;;  %v928_v19 = vsel %vm922_vm4, %v915_v20, 920167782  ;;  %v1077_v14 = vsub.s32 4, %v1053_v48 }
 0x1fb   : > { %vm5734_vm11 = vcmp.le.f32.partialorder %v6709_v1, 0.7853982  ;;  %v5739_v40 = vsub.s32 %v1051_v39, %v1054_v49  ;;  %v903_v28 = vshrl.u32 %v6643_v6, %v902_v53  ;;  %vm921_vm12 = vcmp.lt.s32.totalorder %v900_v21, 3 }
 0x1fc   : > { %vm920_vm13 = vcmp.lt.s32.totalorder %v900_v21, 2  ;;  %v929_v17 = vsel %vm921_vm12, %v912_v41, %v928_v19  ;;  %v931_v8 = vsel %vm919_vm1, %v909_v25, %v912_v41  ;;  %v932_v58 = vsel %vm922_vm4, %v918_v45, 1326507024 }
 0x1fd   : > { %v1057_v38 = vsub.s32 0, %v5739_v40  ;;  %v923_v44 = vsel %vm919_vm1, %v903_v28, %v906_v18  ;;  %v925_v26 = vsel %vm921_vm12, %v909_v25, %v924_v54  ;;  %v930_v15 = vsel %vm920_vm13, %v927_v4, %v929_v17 }
 0x1fe   : > { %v1316_v37 = vxor.u32 2147483648, %v1315_v47  ;;  %v933_v10 = vsel %vm921_vm12, %v915_v20, %v932_v58  ;;  %v5745_v56 = vmul.u32.u64.low %v935_v3, %v930_v15  ;;  %v5746_v39 = vmul.u32.u64.high %v935_v3, %v930_v15, %v5745_v56 }
 0x1ff   : > { %4013 = vsinq.f32 %v5635_v46  ;;  %v3605_v53 = vmin.u32 %v1057_v38, %v5739_v40  ;;  %v1078_v49 = vsel %vm993_vm5, %v1077_v14, %v1053_v48  ;;  %v934_v41 = vsel %vm920_vm13, %v931_v8, %v933_v10 }
 0x200   : > { %v926_v45 = vsel %vm920_vm13, %v923_v44, %v925_v26  ;;  %v5752_v1 = vmul.u32.u64.low %v935_v3, %v934_v41  ;;  %v5753_v19 = vmul.u32.u64.high %v935_v3, %v934_v41, %v5752_v1  ;;  %v649_v21 = vand.u32 2139095040, %v5702_v22 }
 0x201   : > { %4015 = vcosq.f32 %v1457_v61  ;;  %v5756_v18 = vand.u32 3, %v1325_v0  ;;  %v1059_v25 = vclz %v3605_v53  ;;  %v6604_v20 = vand.u32 2147483647, %v5702_v22 }
 0x202   : > { %v1317_v46 = vsel %vm1234_vm3, %v1316_v37, %v1315_v47  ;;  %v945_v54 = vadd.s32 1, %v5746_v39  ;;  %v650_v4 = vshrl.u32 %v649_v21, 23  ;;  %v512_v48 = vand.u32 2139095040, %v5727_v62 }
 0x203   : > { %6712 = vst [vmem:[#allocation45_spill] sm:$0xff] %v5756_v18  ;;  %4017 = vsinq.f32 %v1457_v61  ;;  %v3606_v14 = vadd.s32 4294967294, %v1059_v25  ;;  %v1080_v28 = vsel %vm5734_vm11, 0, %v1078_v49  ;;  %v942_v17 = vmul.u32 %v935_v3, %v926_v45 }
 0x204   : > { %vm944_vm15 = vc.u32 %v5753_v19, %v5745_v56  ;;  %v3591_v0 = vadd.s32 4294967169, %v650_v4  ;;  %v6603_v8 = vand.u32 2147483647, %v5727_v62  ;;  %v513_v58 = vshrl.u32 %v512_v48, 23 }
 0x205   : > { %v1320_v47 = vsel %vm5677_vm8, %v5368_v43, %v1317_v46  ;;  %v1047_v38 = vadd.s32 %v5692_v23, %v5697_v16  ;;  %vm3607_vm3 = vcmp.lt.s32.totalorder %v3606_v14, 0  ;;  %v946_v61 = vsel %vm944_vm15, %v945_v54, %v5746_v39  ;;  %v642_v16 = vpop.permute.xlu0 %641 }
 0x206   : > { %v1062_v44 = vsel %vm3607_vm3, 0, %v3606_v14  ;;  %v947_v26 = vadd.s32 %v946_v61, %v942_v17  ;;  %v656_v15 = vadd.s32 1, %v3591_v0  ;;  %v3586_v3 = vadd.s32 4294967169, %v513_v58 }
 0x207   : > { %v1063_v37 = vsub.s32 32, %v1062_v44  ;;  %v1067_v10 = vsub.s32 4294967266, %v1062_v44  ;;  %v5773_v53 = vadd.s32 3, %v1080_v28  ;;  %vm889_vm6 = vcmp.lt.s32.totalorder %v5609_v59, 0 }
 0x208   : > { %v653_v51 = vand.u32 8388607, %v6604_v20  ;;  %4019 = vcosq.f32 %v1320_v47  ;;  %v948_v49 = vadd.s32 536870912, %v947_v26  ;;  %vm657_vm8 = vcmp.gt.s32.totalorder %v656_v15, 0 }
 0x209   : > { %v516_v23 = vand.u32 8388607, %v6603_v8  ;;  %v1065_v39 = vshrl.u32 %v1047_v38, %v1063_v37  ;;  %v1068_v41 = vadd.s32 127, %v1067_v10  ;;  %v658_v45 = vsel %vm657_vm8, %v656_v15, 0 }
 0x20a   : > { %v519_v1 = vadd.s32 1, %v3586_v3  ;;  %4021 = vsinq.f32 %v1320_v47  ;;  %v1064_v21 = vshll.u32 %v5739_v40, %v1062_v44  ;;  %v949_v25 = vshrl.u32 %v948_v49, 30 }
 0x20b   : > { %v660_v46 = vand.u32 31, %v658_v45  ;;  %v1069_v54 = vshll.u32 %v1068_v41, 23  ;;  %v5782_v4 = vadd.s32 %v5745_v56, %v5753_v19  ;;  %v654_v48 = vor.u32 8388608, %v653_v51 }
 0x20c   : > { %v5785_v14 = vadd.f32 %v642_v16, %v5642_v27  ;;  %v5787_v28 = vpop.eup %4013  ;;  %v1066_v17 = vor.u32 %v1065_v39, %v1064_v21  ;;  %v6713_v0 = vand.u32 2147483647, %v5609_v59  ;;  %v950_v40 = vshll.u32 %v949_v25, 30 }
 0x20d   : > { %v973_v47 = vsub.s32 4, %v949_v25  ;;  %v661_v38 = vsub.s32 32, %v660_v46  ;;  %v1070_v61 = vor.u32 4788187, %v1069_v54  ;;  %v659_v44 = vshrl.u32 %v658_v45, 5 }
 0x20e   : > { %vm5791_vm7 = vcmp.le.f32.partialorder %v6713_v0, 0.7853982  ;;  %v517_v56 = vor.u32 8388608, %v516_v23  ;;  %vm520_vm14 = vcmp.gt.s32.totalorder %v519_v1, 0  ;;  %v5795_v19 = vpop.eup %4015  ;;  %v5797_v27 = vsub.s32 %v947_v26, %v950_v40 }
 0x20f   : > { %6716 = vst [vmem:[#allocation46_spill] sm:$0xff] %v5795_v19  ;;  %v663_v15 = vshll.u32 %v6643_v6, %v660_v46  ;;  %v664_v3 = vshrl.u32 %v6641_v11, %v661_v38  ;;  %v666_v37 = vshll.u32 %v6641_v11, %v660_v46  ;;  %v1071_v10 = vand.u32 2147483647, %v1070_v61 }
 0x210   : > { %v667_v51 = vshrl.u32 %v6642_v31, %v661_v38  ;;  %v669_v49 = vshll.u32 %v6642_v31, %v660_v46  ;;  %v670_v16 = vshrl.u32 %v6644_v30, %v661_v38  ;;  %v5805_v39 = vpop.eup %4017  ;;  %v1073_v23 = vcvt.s32.f32 %v1066_v17 }
 0x211   : > { %6717 = vst [vmem:[#allocation47_spill] sm:$0xff] %v5805_v39  ;;  %v953_v41 = vsub.s32 0, %v5797_v27  ;;  %v974_v26 = vsel %vm889_vm6, %v973_v47, %v949_v25  ;;  %v665_v45 = vor.u32 %v664_v3, %v663_v15  ;;  %v672_v0 = vshll.u32 %v6644_v30, %v660_v46 }
 0x212   : > { %v668_v21 = vor.u32 %v667_v51, %v666_v37  ;;  %v671_v54 = vor.u32 %v670_v16, %v669_v49  ;;  %v673_v40 = vshrl.u32 %v6645_v60, %v661_v38  ;;  %v1074_v61 = vmul.f32 %v1073_v23, %v1071_v10 }
 0x213   : > { %v3601_v8 = vmin.u32 %v953_v41, %v5797_v27  ;;  %v675_v20 = vshll.u32 %v6645_v60, %v660_v46  ;;  %v676_v19 = vshrl.u32 %v6646_v35, %v661_v38  ;;  %v694_v39 = vshll.u32 %v654_v48, 8 }
 0x214   : > { %v674_v17 = vor.u32 %v673_v40, %v672_v0  ;;  %v521_v9 = vsel %vm520_vm14, %v519_v1, 0  ;;  %v5816_v18 = vshll.u32 %v517_v56, 8  ;;  %vm678_vm9 = vcmp.lt.s32.totalorder %v659_v44, 1 }
 0x215   : > { %v955_v25 = vclz %v3601_v8  ;;  %v677_v47 = vor.u32 %v676_v19, %v675_v20  ;;  %vm681_vm1 = vcmp.lt.s32.totalorder %v659_v44, 4  ;;  %v5818_v15 = vpop.eup %4019  ;;  %v976_v3 = vsel %vm5791_vm7, 0, %v974_v26 }
 0x216   : > { %6718 = vst [vmem:[#allocation48_spill] sm:$0xff] %v5818_v15  ;;  %v662_v37 = vshrl.u32 %v6643_v6, %v661_v38  ;;  %v683_v46 = vsel %vm681_vm1, %v671_v54, 2102212464  ;;  %v686_v10 = vsel %vm678_vm9, %v665_v45, %v668_v21  ;;  %v1075_v51 = vxor.u32 2147483648, %v1074_v61 }
 0x217   : > { %v3602_v48 = vadd.s32 4294967294, %v955_v25  ;;  %vm680_vm4 = vcmp.lt.s32.totalorder %v659_v44, 3  ;;  %v687_v1 = vsel %vm681_vm1, %v674_v17, 920167782  ;;  %v5825_v56 = vpop.eup %4021  ;;  %vm679_vm12 = vcmp.lt.s32.totalorder %v659_v44, 2 }
 0x218   : > { %6719 = vst [vmem:[#allocation49_spill] sm:$0xff] %v5825_v56  ;;  %v682_v20 = vsel %vm678_vm9, %v662_v37, %v665_v45  ;;  %v688_v8 = vsel %vm680_vm4, %v671_v54, %v687_v1  ;;  %v690_v19 = vsel %vm678_vm9, %v668_v21, %v671_v54  ;;  %v684_v49 = vsel %vm680_vm4, %v668_v21, %v683_v46 }
 0x219   : > { %vm3603_vm13 = vcmp.lt.s32.totalorder %v3602_v48, 0  ;;  %v689_v16 = vsel %vm679_vm12, %v686_v10, %v688_v8  ;;  %v691_v23 = vsel %vm681_vm1, %v677_v47, 1326507024  ;;  %v1076_v40 = vsel %vm993_vm5, %v1075_v51, %v1074_v61 }
 0x21a   : > { %v958_v38 = vsel %vm3603_vm13, 0, %v3602_v48  ;;  %v692_v41 = vsel %vm680_vm4, %v674_v17, %v691_v23  ;;  %v5828_v26 = vmul.u32.u64.low %v694_v39, %v689_v16  ;;  %v5829_v0 = vmul.u32.u64.high %v694_v39, %v689_v16, %v5828_v26 }
 0x21b   : > { %v959_v25 = vsub.s32 32, %v958_v38  ;;  %v963_v15 = vsub.s32 4294967266, %v958_v38  ;;  %v693_v56 = vsel %vm679_vm12, %v690_v19, %v692_v41  ;;  %v685_v45 = vsel %vm679_vm12, %v682_v20, %v684_v49 }
 0x21c   : > { %v5834_v37 = vmul.u32.u64.low %v694_v39, %v693_v56  ;;  %v5835_v54 = vmul.u32.u64.high %v694_v39, %v693_v56, %v5834_v37  ;;  %v5837_v21 = vshrl.u32 %v521_v9, 5  ;;  %v960_v44 = vshll.u32 %v5797_v27, %v958_v38 }
 0x21d   : > { %v961_v17 = vshrl.u32 %v5782_v4, %v959_v25  ;;  %v964_v47 = vadd.s32 127, %v963_v15  ;;  %v523_v46 = vand.u32 31, %v521_v9  ;;  %v5844_v10 = vsel %vm5734_vm11, %v5559_v29, %v1076_v40 }
 0x21e   : > { %v5846_v61 = vadd.s32 3, %v976_v3  ;;  %v704_v51 = vadd.s32 1, %v5829_v0  ;;  %v6612_v48 = vand.u32 2147483647, %v5785_v14  ;;  %v701_v20 = vmul.u32 %v694_v39, %v685_v45 }
 0x21f   : > { %v962_v1 = vor.u32 %v961_v17, %v960_v44  ;;  %v965_v56 = vshll.u32 %v964_v47, 23  ;;  %v524_v8 = vsub.s32 32, %v523_v46  ;;  %vm703_vm5 = vc.u32 %v5835_v54, %v5828_v26 }
 0x220   : > { %v526_v9 = vshll.u32 %v6643_v6, %v523_v46  ;;  %vm541_vm15 = vcmp.lt.s32.totalorder %v5837_v21, 1  ;;  %v753_v34 = vand.u32 2139095040, %v5785_v14  ;;  %vm648_vm11 = vcmp.lt.s32.totalorder %v5702_v22, 0 }
 0x221   : > { %v966_v4 = vor.u32 4788187, %v965_v56  ;;  %v705_v27 = vsel %vm703_vm5, %v704_v51, %v5829_v0  ;;  %v529_v15 = vshll.u32 %v6641_v11, %v523_v46  ;;  %v532_v3 = vshll.u32 %v6642_v31, %v523_v46 }
 0x222   : > { %v706_v39 = vadd.s32 %v705_v27, %v701_v20  ;;  %v527_v19 = vshrl.u32 %v6641_v11, %v524_v8  ;;  %v530_v49 = vshrl.u32 %v6642_v31, %v524_v8  ;;  %v533_v16 = vshrl.u32 %v6644_v30, %v524_v8 }
 0x223   : > { %v967_v23 = vand.u32 2147483647, %v966_v4  ;;  %v969_v38 = vcvt.s32.f32 %v962_v1  ;;  %v6720_v41 = vand.u32 2147483647, %v5702_v22  ;;  %v535_v0 = vshll.u32 %v6644_v30, %v523_v46 }
 0x224   : > { %v536_v25 = vshrl.u32 %v6645_v60, %v524_v8  ;;  %v707_v45 = vadd.s32 536870912, %v706_v39  ;;  %v528_v37 = vor.u32 %v527_v19, %v526_v9  ;;  %v531_v44 = vor.u32 %v530_v49, %v529_v15 }
 0x225   : > { %vm5864_vm3 = vcmp.le.f32.partialorder %v6720_v41, 0.7853982  ;;  %v534_v17 = vor.u32 %v533_v16, %v532_v3  ;;  %v970_v47 = vmul.f32 %v969_v38, %v967_v23  ;;  %v538_v56 = vshll.u32 %v6645_v60, %v523_v46 }
 0x226   : > { %v537_v51 = vor.u32 %v536_v25, %v535_v0  ;;  %v539_v1 = vshrl.u32 %v6646_v35, %v524_v8  ;;  %v708_v20 = vshrl.u32 %v707_v45, 30  ;;  %vm542_vm8 = vcmp.lt.s32.totalorder %v5837_v21, 2 }
 0x227   : > { %vm543_vm14 = vcmp.lt.s32.totalorder %v5837_v21, 3  ;;  %vm544_vm9 = vcmp.lt.s32.totalorder %v5837_v21, 4  ;;  %v971_v4 = vxor.u32 2147483648, %v970_v47  ;;  %v549_v9 = vsel %vm541_vm15, %v528_v37, %v531_v44 }
 0x228   : > { %v540_v27 = vor.u32 %v539_v1, %v538_v56  ;;  %v550_v15 = vsel %vm544_vm9, %v537_v51, 920167782  ;;  %v709_v3 = vshll.u32 %v708_v20, 30  ;;  %v732_v19 = vsub.s32 4, %v708_v20 }
 0x229   : > { %v546_v49 = vsel %vm544_vm9, %v534_v17, 2102212464  ;;  %v551_v46 = vsel %vm543_vm14, %v534_v17, %v550_v15  ;;  %v972_v16 = vsel %vm889_vm6, %v971_v4, %v970_v47  ;;  %v525_v23 = vshrl.u32 %v6643_v6, %v524_v8  ;;  %v384_v4 = vpop.permute.xlu0 %383 }
 0x22a   : > { %v553_v38 = vsel %vm541_vm15, %v531_v44, %v534_v17  ;;  %v554_v41 = vsel %vm544_vm9, %v540_v27, 1326507024  ;;  %v5884_v0 = vsub.s32 %v706_v39, %v709_v3  ;;  %v733_v25 = vsel %vm648_vm11, %v732_v19, %v708_v20 }
 0x22b   : > { %v552_v45 = vsel %vm542_vm8, %v549_v9, %v551_v46  ;;  %v555_v56 = vsel %vm543_vm14, %v537_v51, %v554_v41  ;;  %4023 = vcosq.f32 %v5844_v10  ;;  %v545_v8 = vsel %vm541_vm15, %v525_v23, %v528_v37 }
 0x22c   : > { %v547_v17 = vsel %vm543_vm14, %v531_v44, %v546_v49  ;;  %v556_v39 = vsel %vm542_vm8, %v553_v38, %v555_v56  ;;  %v975_v47 = vsel %vm5791_vm7, %v5609_v59, %v972_v16  ;;  %v712_v1 = vsub.s32 0, %v5884_v0 }
 0x22d   : > { %v735_v51 = vsel %vm5864_vm3, 0, %v733_v25  ;;  %v754_v20 = vshrl.u32 %v753_v34, 23  ;;  %v5906_v27 = vmul.u32.u64.low %v5816_v18, %v556_v39  ;;  %v5907_v37 = vmul.u32.u64.high %v5816_v18, %v556_v39, %v5906_v27  ;;  %v396_v25 = vpop.permute.xlu1 %395 }
 0x22e   : > { %v5910_v44 = vmul.u32.u64.low %v5816_v18, %v552_v45  ;;  %v5911_v9 = vmul.u32.u64.high %v5816_v18, %v552_v45, %v5910_v44  ;;  %v3592_v15 = vmin.u32 %v712_v1, %v5884_v0  ;;  %v548_v58 = vsel %vm542_vm8, %v545_v8, %v547_v17 }
 0x22f   : > { %v3595_v3 = vadd.s32 4294967169, %v754_v20  ;;  %v757_v19 = vand.u32 8388607, %v6612_v48  ;;  %4025 = vsinq.f32 %v5844_v10  ;;  %v5921_v34 = vand.u32 3, %v5773_v53  ;;  %v3951_v53 = vld [vmem:[%s6534_s3] sm:$0xff]  }
 0x230   : > { %v5924_v49 = vand.u32 3, %v5846_v61  ;;  %v391_v46 = vmul.f32 %v5640_v42, %v384_v4  ;;  %4027 = vcosq.f32 %v975_v47  ;;  %v714_v16 = vclz %v3592_v15  ;;  %3752 = vmatprep.mubr.bf16.mxu0 %v3951_v53 }
 0x231   : > { %6723 = vst [vmem:[#allocation50_spill] sm:$0xff] %v5921_v34  ;;  %v739_v23 = vadd.s32 3, %v735_v51  ;;  %v760_v38 = vadd.s32 1, %v3595_v3  ;;  %v564_v21 = vmul.u32 %v5816_v18, %v548_v58  ;;  %vm566_vm6 = vc.u32 %v5907_v37, %v5910_v44 }
 0x232   : > { %v567_v41 = vadd.s32 1, %v5911_v9  ;;  %v758_v10 = vor.u32 8388608, %v757_v19  ;;  %v3593_v61 = vadd.s32 4294967294, %v714_v16  ;;  %v5934_v42 = vadd.f32 %v396_v25, %v391_v46 }
 0x233   : > { %vm761_vm7 = vcmp.gt.s32.totalorder %v760_v38, 0  ;;  %v2526_v45 = vsel %vm4742_vm0, 0, %v4796_v50  ;;  %4029 = vsinq.f32 %v975_v47  ;;  %v702_v18 = vadd.s32 %v5828_v26, %v5835_v54 }
 0x234   : > { %v568_v56 = vsel %vm566_vm6, %v567_v41, %v5911_v9  ;;  %v762_v8 = vsel %vm761_vm7, %v760_v38, 0  ;;  %vm3594_vm1 = vcmp.lt.s32.totalorder %v3593_v61, 0  ;;  %v5942_v17 = vand.u32 3, %v739_v23 }
 0x235   : > { %v569_v39 = vadd.s32 %v568_v56, %v564_v21  ;;  %v764_v1 = vand.u32 31, %v762_v8  ;;  %v717_v51 = vsel %vm3594_vm1, 0, %v3593_v61  ;;  %vm511_vm4 = vcmp.lt.s32.totalorder %v5727_v62, 0 }
 0x236   : > { %6724 = vst [vmem:[#allocation51_spill] sm:$0xff] %v5942_v17  ;;  %v5945_v20 = vshll.u32 %v758_v10, 8  ;;  %v5947_v2 = vadd.s32 3, %v2526_v45  ;;  %v718_v47 = vsub.s32 32, %v717_v51  ;;  %v722_v26 = vsub.s32 4294967266, %v717_v51 }
 0x237   : > { %v570_v54 = vadd.s32 536870912, %v569_v39  ;;  %v719_v27 = vshll.u32 %v5884_v0, %v717_v51  ;;  %v5952_v9 = vshrl.u32 %v762_v8, 5  ;;  %v765_v15 = vsub.s32 32, %v764_v1 }
 0x238   : > { %v408_v58 = vand.u32 2139095040, %v5934_v42  ;;  %v5955_v3 = vpop.eup %4023  ;;  %v720_v19 = vshrl.u32 %v702_v18, %v718_v47  ;;  %v723_v46 = vadd.s32 127, %v722_v26  ;;  %v767_v23 = vshll.u32 %v6643_v6, %v764_v1 }
 0x239   : > { %6725 = vst [vmem:[#allocation52_spill] sm:$0xff] %v5955_v3  ;;  %v571_v16 = vshrl.u32 %v570_v54, 30  ;;  %v768_v38 = vshrl.u32 %v6641_v11, %v765_v15  ;;  %v770_v21 = vshll.u32 %v6641_v11, %v764_v1  ;;  %v771_v41 = vshrl.u32 %v6642_v31, %v765_v15 }
 0x23a   : > { %v774_v0 = vshrl.u32 %v6644_v30, %v765_v15  ;;  %v721_v10 = vor.u32 %v720_v19, %v719_v27  ;;  %v724_v25 = vshll.u32 %v723_v46, 23  ;;  %v6726_v45 = vand.u32 2147483647, %v5727_v62 }
 0x23b   : > { %v572_v53 = vshll.u32 %v571_v16, 30  ;;  %v595_v61 = vsub.s32 4, %v571_v16  ;;  %v766_v56 = vshrl.u32 %v6643_v6, %v765_v15  ;;  %v773_v8 = vshll.u32 %v6642_v31, %v764_v1 }
 0x23c   : > { %vm5964_vm0 = vcmp.le.f32.partialorder %v6726_v45, 0.7853982  ;;  %v776_v51 = vshll.u32 %v6644_v30, %v764_v1  ;;  %v777_v47 = vshrl.u32 %v6645_v60, %v765_v15  ;;  %v5972_v26 = vpop.eup %4025  ;;  %v725_v54 = vor.u32 4788187, %v724_v25 }
 0x23d   : > { %6729 = vst [vmem:[#allocation53_spill] sm:$0xff] %v5972_v26  ;;  %v5974_v27 = vsub.s32 %v569_v39, %v572_v53  ;;  %v769_v19 = vor.u32 %v768_v38, %v767_v23  ;;  %v772_v46 = vor.u32 %v771_v41, %v770_v21  ;;  %v5976_v50 = vpop.eup %4027  ;;  %v775_v45 = vor.u32 %v774_v0, %v773_v8 }
 0x23e   : > { %v778_v48 = vor.u32 %v777_v47, %v776_v51  ;;  %v779_v4 = vshll.u32 %v6645_v60, %v764_v1  ;;  %v780_v17 = vshrl.u32 %v6646_v35, %v765_v15  ;;  %v726_v29 = vand.u32 2147483647, %v725_v54 }
 0x23f   : > { %v728_v3 = vcvt.s32.f32 %v721_v10  ;;  %v575_v34 = vsub.s32 0, %v5974_v27  ;;  %v596_v26 = vsel %vm511_vm4, %v595_v61, %v571_v16  ;;  %vm782_vm12 = vcmp.lt.s32.totalorder %v5952_v9, 1 }
 0x240   : > { %v781_v25 = vor.u32 %v780_v17, %v779_v4  ;;  %vm783_vm13 = vcmp.lt.s32.totalorder %v5952_v9, 2  ;;  %vm784_vm5 = vcmp.lt.s32.totalorder %v5952_v9, 3  ;;  %v5986_v39 = vpop.eup %4029  ;;  %vm785_vm15 = vcmp.lt.s32.totalorder %v5952_v9, 4 }
 0x241   : > { %v729_v23 = vmul.f32 %v728_v3, %v726_v29  ;;  %v3587_v1 = vmin.u32 %v575_v34, %v5974_v27  ;;  %v786_v15 = vsel %vm782_vm12, %v766_v56, %v769_v19  ;;  %v787_v38 = vsel %vm785_vm15, %v775_v45, 2102212464 }
 0x242   : > { %v790_v21 = vsel %vm782_vm12, %v769_v19, %v772_v46  ;;  %v791_v41 = vsel %vm785_vm15, %v778_v48, 920167782  ;;  %v794_v0 = vsel %vm782_vm12, %v772_v46, %v775_v45  ;;  %v788_v4 = vsel %vm784_vm5, %v772_v46, %v787_v38 }
 0x243   : > { %v730_v16 = vxor.u32 2147483648, %v729_v23  ;;  %v577_v17 = vclz %v3587_v1  ;;  %v792_v10 = vsel %vm784_vm5, %v775_v45, %v791_v41  ;;  %v795_v3 = vsel %vm785_vm15, %v781_v25, 1326507024 }
 0x244   : > { %v793_v29 = vsel %vm783_vm13, %v790_v21, %v792_v10  ;;  %v409_v34 = vshrl.u32 %v408_v58, 23  ;;  %v6730_v53 = vand.u32 2147483647, %v5934_v42  ;;  %v598_v51 = vsel %vm5964_vm0, 0, %v596_v26 }
 0x245   : > { %v731_v56 = vsel %vm648_vm11, %v730_v16, %v729_v23  ;;  %v3588_v8 = vadd.s32 4294967294, %v577_v17  ;;  %v796_v47 = vsel %vm784_vm5, %v778_v48, %v795_v3  ;;  %v789_v54 = vsel %vm783_vm13, %v786_v15, %v788_v4 }
 0x246   : > { %v412_v61 = vand.u32 8388607, %v6730_v53  ;;  %v797_v19 = vsel %vm783_vm13, %v794_v0, %v796_v47  ;;  %v6009_v58 = vmul.u32.u64.low %v5945_v20, %v793_v29  ;;  %v6010_v46 = vmul.u32.u64.high %v5945_v20, %v793_v29, %v6009_v58 }
 0x247   : > { %v734_v45 = vsel %vm5864_vm3, %v5702_v22, %v731_v56  ;;  %vm3589_vm11 = vcmp.lt.s32.totalorder %v3588_v8, 0  ;;  %v6016_v26 = vmul.u32.u64.low %v5945_v20, %v797_v19  ;;  %v6017_v25 = vmul.u32.u64.high %v5945_v20, %v797_v19, %v6016_v26 }
 0x248   : > { %v565_v48 = vadd.s32 %v5910_v44, %v5907_v37  ;;  %v580_v23 = vsel %vm3589_vm11, 0, %v3588_v8  ;;  %v602_v1 = vadd.s32 3, %v598_v51  ;;  %v3582_v9 = vadd.s32 4294967169, %v409_v34 }
 0x249   : > { %v581_v15 = vsub.s32 32, %v580_v23  ;;  %v585_v38 = vsub.s32 4294967266, %v580_v23  ;;  %v805_v21 = vmul.u32 %v5945_v20, %v789_v54  ;;  %v6023_v41 = vand.u32 3, %v5947_v2 }
 0x24a   : > { %4031 = vcosq.f32 %v734_v45  ;;  %v808_v40 = vadd.s32 1, %v6010_v46  ;;  %v413_v0 = vor.u32 8388608, %v412_v61  ;;  %v415_v16 = vadd.s32 1, %v3582_v9 }
 0x24b   : > { %v582_v17 = vshll.u32 %v5974_v27, %v580_v23  ;;  %v583_v4 = vshrl.u32 %v565_v48, %v581_v15  ;;  %v586_v10 = vadd.s32 127, %v585_v38  ;;  %vm807_vm3 = vc.u32 %v6017_v25, %v6009_v58 }
 0x24c   : > { %4033 = vsinq.f32 %v734_v45  ;;  %v6028_v37 = vand.u32 3, %v602_v1  ;;  %vm752_vm8 = vcmp.lt.s32.totalorder %v5785_v14, 0  ;;  %v809_v44 = vsel %vm807_vm3, %v808_v40, %v6010_v46 }
 0x24d   : > { %vm416_vm14 = vcmp.gt.s32.totalorder %v415_v16, 0  ;;  %v584_v20 = vor.u32 %v583_v4, %v582_v17  ;;  %v587_v2 = vshll.u32 %v586_v10, 23  ;;  %v6731_v29 = vand.u32 2147483647, %v5785_v14 }
 0x24e   : > { %v810_v27 = vadd.s32 %v809_v44, %v805_v21  ;;  %v417_v34 = vsel %vm416_vm14, %v415_v16, 0  ;;  %v6039_v53 = vadd.s32 %v6009_v58, %v6017_v25  ;;  %v6041_v56 = vshll.u32 %v413_v0, 8 }
 0x24f   : > { %vm6034_vm9 = vcmp.le.f32.partialorder %v6731_v29, 0.7853982  ;;  %v419_v61 = vand.u32 31, %v417_v34  ;;  %vm2533_vm6 = vcmp.eq.s32.totalorder %v6023_v41, 0  ;;  %v588_v8 = vor.u32 4788187, %v587_v2 }
 0x250   : > { %v811_v51 = vadd.s32 536870912, %v810_v27  ;;  %v418_v47 = vshrl.u32 %v417_v34, 5  ;;  %v6734_v54 = vxor.u32 2147483648, %v4881_v55  ;;  %v591_v46 = vcvt.s32.f32 %v584_v20 }
 0x251   : > { %v420_v45 = vsub.s32 32, %v419_v61  ;;  %v422_v26 = vshll.u32 %v6643_v6, %v419_v61  ;;  %v2537_v58 = vxor.u32 2147483648, %v4877_v57  ;;  %v589_v25 = vand.u32 2147483647, %v588_v8 }
 0x252   : > { %v6047_v19 = vsel %vm2533_vm6, %v4877_v57, %v6734_v54  ;;  %v812_v48 = vshrl.u32 %v811_v51, 30  ;;  %v425_v23 = vshll.u32 %v6641_v11, %v419_v61  ;;  %v428_v1 = vshll.u32 %v6642_v31, %v419_v61 }
 0x253   : > { %v423_v9 = vshrl.u32 %v6641_v11, %v420_v45  ;;  %v426_v15 = vshrl.u32 %v6642_v31, %v420_v45  ;;  %v429_v38 = vshrl.u32 %v6644_v30, %v420_v45  ;;  %v431_v21 = vshll.u32 %v6644_v30, %v419_v61 }
 0x254   : > { %v592_v40 = vmul.f32 %v591_v46, %v589_v25  ;;  %v813_v0 = vshll.u32 %v812_v48, 30  ;;  %v836_v16 = vsub.s32 4, %v812_v48  ;;  %v432_v17 = vshrl.u32 %v6645_v60, %v420_v45 }
 0x255   : > { %vm2536_vm7 = vcmp.eq.s32.totalorder %v6023_v41, 2  ;;  %v424_v57 = vor.u32 %v423_v9, %v422_v26  ;;  %v427_v4 = vor.u32 %v426_v15, %v425_v23  ;;  %v434_v10 = vshll.u32 %v6645_v60, %v419_v61 }
 0x256   : > { %v435_v44 = vshrl.u32 %v6646_v35, %v420_v45  ;;  %v593_v11 = vxor.u32 2147483648, %v592_v40  ;;  %v6061_v20 = vsub.s32 %v810_v27, %v813_v0  ;;  %v837_v31 = vsel %vm752_vm8, %v836_v16, %v812_v48 }
 0x257   : > { %v430_v30 = vor.u32 %v429_v38, %v428_v1  ;;  %vm2532_vm1 = vcmp.lt.s32.totalorder %v6023_v41, 2  ;;  %v839_v2 = vsel %vm6034_vm9, 0, %v837_v31  ;;  %v421_v29 = vshrl.u32 %v6643_v6, %v420_v45  ;;  %v6073_v35 = vpop.eup %4031 }
 0x258   : > { %v433_v34 = vor.u32 %v432_v17, %v431_v21  ;;  %vm2529_vm12 = vweird.f32 %v4439_v12  ;;  %v2663_v60 = vsel %vm4868_vm10, 0, %v4930_v52  ;;  %v594_v27 = vsel %vm511_vm4, %v593_v11, %v592_v40 }
 0x259   : > { %v816_v61 = vsub.s32 0, %v6061_v20  ;;  %v436_v8 = vor.u32 %v435_v44, %v434_v10  ;;  %vm437_vm13 = vcmp.lt.s32.totalorder %v418_v47, 1  ;;  %v6081_v6 = vsel %vm5964_vm0, %v5727_v62, %v594_v27  ;;  %v6083_v51 = vpop.eup %4033 }
 0x25a   : > { %vm438_vm5 = vcmp.lt.s32.totalorder %v418_v47, 2  ;;  %vm439_vm15 = vcmp.lt.s32.totalorder %v418_v47, 3  ;;  %vm440_vm11 = vcmp.lt.s32.totalorder %v418_v47, 4  ;;  %v441_v52 = vsel %vm437_vm13, %v421_v29, %v424_v57 }
 0x25b   : > { %v3596_v32 = vmin.u32 %v816_v61, %v6061_v20  ;;  %v442_v54 = vsel %vm440_vm11, %v430_v30, 2102212464  ;;  %v445_v46 = vsel %vm437_vm13, %v424_v57, %v427_v4  ;;  %v6086_v45 = vadd.s32 3, %v839_v2 }
 0x25c   : > { %v443_v26 = vsel %vm439_vm15, %v427_v4, %v442_v54  ;;  %v446_v25 = vsel %vm440_vm11, %v433_v34, 920167782  ;;  %v449_v48 = vsel %vm437_vm13, %v427_v4, %v430_v30  ;;  %4035 = vcosq.f32 %v6081_v6 }
 0x25d   : > { %v818_v18 = vclz %v3596_v32  ;;  %v447_v23 = vsel %vm439_vm15, %v430_v30, %v446_v25  ;;  %v450_v1 = vsel %vm440_vm11, %v436_v8, 1326507024  ;;  %v444_v9 = vsel %vm438_vm5, %v441_v52, %v443_v26  ;;  %v6736_v32 = vld [vmem:[#allocation14_spill] sm:$0xff]  ;;  %v6737_v25 = vld [vmem:[#allocation12_spill] sm:$0xff] }
 0x25e   : > { %v448_v15 = vsel %vm438_vm5, %v445_v46, %v447_v23  ;;  %v451_v38 = vsel %vm439_vm15, %v433_v34, %v450_v1  ;;  %v2538_v21 = vsel %vm2536_vm7, %v2537_v58, %v4881_v55  ;;  %vm2666_vm10 = vweird.f32 %v4453_v24  ;;  %v6738_v23 = vld [vmem:[#allocation6_spill] sm:$0xff] }
 0x25f   : > { %v3597_v40 = vadd.s32 4294967294, %v818_v18  ;;  %v452_v0 = vsel %vm438_vm5, %v449_v48, %v451_v38  ;;  %v6099_v16 = vmul.u32.u64.low %v6041_v56, %v448_v15  ;;  %v6100_v17 = vmul.u32.u64.high %v6041_v56, %v448_v15, %v6099_v16 }
 0x260   : > { %v6103_v57 = vmul.u32.u64.low %v6041_v56, %v452_v0  ;;  %v6104_v4 = vmul.u32.u64.high %v6041_v56, %v452_v0, %v6103_v57  ;;  %v2539_v10 = vsel %vm2532_vm1, %v6047_v19, %v2538_v21  ;;  %v2667_v44 = vadd.s32 3, %v2663_v60 }
 0x261   : > { %vm3598_vm4 = vcmp.lt.s32.totalorder %v3597_v40, 0  ;;  %v460_v55 = vmul.u32 %v6041_v56, %v444_v9  ;;  %v6113_v47 = vsel %vm2529_vm12, nan, %v2539_v10  ;;  %v2671_v58 = vxor.u32 2147483648, %v4981_v7 }
 0x262   : > { %v821_v11 = vsel %vm3598_vm4, 0, %v3597_v40  ;;  %v2668_v31 = vand.u32 3, %v2667_v44  ;;  %v2674_v30 = vxor.u32 2147483648, %v4978_v13  ;;  %v2767_v41 = vsel %vm4776_vm2, 0, %v4823_v63 }
 0x263   : > { %v822_v19 = vsub.s32 32, %v821_v11  ;;  %v823_v29 = vshll.u32 %v6061_v20, %v821_v11  ;;  %v826_v34 = vsub.s32 4294967266, %v821_v11  ;;  %v463_v56 = vadd.s32 1, %v6100_v17 }
 0x264   : > { %v6123_v12 = vadd.s32 %v6099_v16, %v6104_v4  ;;  %vm462_vm0 = vc.u32 %v6104_v4, %v6099_v16  ;;  %vm2669_vm3 = vcmp.lt.s32.totalorder %v2668_v31, 2  ;;  %vm2670_vm14 = vcmp.eq.s32.totalorder %v2668_v31, 0 }
 0x265   : > { %v824_v60 = vshrl.u32 %v6039_v53, %v822_v19  ;;  %v827_v27 = vadd.s32 127, %v826_v34  ;;  %v464_v61 = vsel %vm462_vm0, %v463_v56, %v6100_v17  ;;  %v2672_v63 = vsel %vm2670_vm14, %v4978_v13, %v2671_v58  ;;  %v6742_v34 = vld [vmem:[#allocation13_spill] sm:$0xff] }
 0x266   : > { %vm407_vm2 = vcmp.lt.s32.totalorder %v5934_v42, 0  ;;  %v465_v20 = vadd.s32 %v464_v61, %v460_v55  ;;  %vm2673_vm6 = vcmp.eq.s32.totalorder %v2668_v31, 2  ;;  %v2771_v8 = vadd.s32 3, %v2767_v41  ;;  %v6739_v41 = vld [vmem:[#allocation7_spill] sm:$0xff]  ;;  %v6744_v61 = vld [vmem:[#allocation18_spill] sm:$0xff] }
 0x267   : > { %v2775_v52 = vxor.u32 2147483648, %v6736_v32  ;;  %v825_v54 = vor.u32 %v824_v60, %v823_v29  ;;  %v828_v46 = vshll.u32 %v827_v27, 23  ;;  %v2675_v26 = vsel %vm2673_vm6, %v2674_v30, %v4981_v7 }
 0x268   : > { %v2778_v48 = vxor.u32 2147483648, %v6737_v25  ;;  %v466_v18 = vadd.s32 536870912, %v465_v20  ;;  %v2676_v53 = vsel %vm2669_vm3, %v2672_v63, %v2675_v26  ;;  %vm2770_vm7 = vweird.f32 %v6738_v23  ;;  %v6747_v26 = vld [vmem:[#allocation25_spill] sm:$0xff] }
 0x269   : > { %v2772_v1 = vand.u32 3, %v2771_v8  ;;  %v829_v13 = vor.u32 4788187, %v828_v46  ;;  %v832_v9 = vcvt.s32.f32 %v825_v54  ;;  %v2677_v15 = vsel %vm2666_vm10, nan, %v2676_v53  ;;  %v6137_v38 = vpop.eup %4035  ;;  %v6745_v54 = vld [vmem:[#allocation9_spill] sm:$0xff] }
 0x26a   : > { %vm2793_vm1 = vcmask 1042432   ;;  %v467_v21 = vshrl.u32 %v466_v18, 30  ;;  %v2847_v16 = vrot.slane %v6113_v47, 1  ;;  %v2854_v10 = vrot.slane %v2677_v15, 5  ;;  %v6746_v46 = vld [vmem:[#allocation17_spill] sm:$0xff]  ;;  %v6748_v18 = vld [vmem:[#allocation24_spill] sm:$0xff] }
 0x26b   : > { %vm2773_vm12 = vcmp.lt.s32.totalorder %v2772_v1, 2  ;;  %vm2774_vm13 = vcmp.eq.s32.totalorder %v2772_v1, 0  ;;  %vm2777_vm5 = vcmp.eq.s32.totalorder %v2772_v1, 2  ;;  %v830_v7 = vand.u32 2147483647, %v829_v13  ;;  %v6750_v15 = vld [vmem:[#allocation23_spill] sm:$0xff] }
 0x26c   : > { %v2776_v40 = vsel %vm2774_vm13, %v6737_v25, %v2775_v52  ;;  %v2779_v0 = vsel %vm2777_vm5, %v2778_v48, %v6736_v32  ;;  %v468_v17 = vshll.u32 %v467_v21, 30  ;;  %v491_v57 = vsub.s32 4, %v467_v21  ;;  %v6759_v47 = vld [vmem:[#allocation22_spill] sm:$0xff] }
 0x26d   : > { %v2780_v4 = vsel %vm2773_vm12, %v2776_v40, %v2779_v0  ;;  %v833_v24 = vmul.f32 %v832_v9, %v830_v7  ;;  %vm2784_vm15 = vcmask 1046528   ;;  %v6145_v55 = vand.u32 3, %v6086_v45  ;;  %v6749_v9 = vld [vmem:[#allocation8_spill] sm:$0xff] }
 0x26e   : > { %v2781_v44 = vsel %vm2770_vm7, nan, %v2780_v4  ;;  %v6147_v58 = vsub.s32 %v465_v20, %v468_v17  ;;  %v2868_v31 = vsel %vm2793_vm1, %v2847_v16, %v2854_v10  ;;  %4037 = vsinq.f32 %v6081_v6  ;;  %v6743_v6 = vld [vmem:[#allocation19_spill] sm:$0xff]  ;;  %v6751_v40 = vld [vmem:[#allocation16_spill] sm:$0xff] }
 0x26f   : > { %v2855_v11 = vrot.slane %v2781_v44, 5  ;;  %v834_v30 = vxor.u32 2147483648, %v833_v24  ;;  %v6155_v2 = vsel %vm407_vm2, %v491_v57, %v467_v21  ;;  %vm2184_vm11 = vweird.f32 %v6739_v41  ;;  %v6752_v0 = vld [vmem:[#allocation20_spill] sm:$0xff] }
 0x270   : > { %v471_v19 = vsub.s32 0, %v6147_v58  ;;  %vm4120_vm10 = vmmov 1   ;;  %vm2187_vm0 = vcmp.lt.s32.totalorder %v6742_v34, 2  ;;  %v2189_v56 = vxor.u32 2147483648, %v6743_v6 }
 0x271   : > { %v2856_v45 = vsel %vm2793_vm1, %v2854_v10, %v2855_v11  ;;  %vm6161_vm4 = vmpackc.low %vm2784_vm15, %vm4120_vm10  ;;  %v835_v60 = vsel %vm752_vm8, %v834_v30, %v833_v24  ;;  %vm2188_vm3 = vcmp.eq.s32.totalorder %v6742_v34, 0  ;;  %v2192_v63 = vxor.u32 2147483648, %v6744_v61 }
 0x272   : > { %v3680_v27 = vpack.c.bf16 %v2856_v45, %v2868_v31  ;;  %v838_v20 = vsel %vm6034_vm9, %v5785_v14, %v835_v60  ;;  %v3583_v8 = vmin.u32 %v471_v19, %v6147_v58  ;;  %v2190_v32 = vsel %vm2188_vm3, %v6744_v61, %v2189_v56  ;;  %v6753_v61 = vld [vmem:[#allocation27_spill] sm:$0xff] }
 0x273   : > { %vm2191_vm14 = vcmp.eq.s32.totalorder %v6742_v34, 2  ;;  %vm2288_vm8 = vweird.f32 %v6745_v54  ;;  %vm2291_vm6 = vcmp.lt.s32.totalorder %v6746_v46, 2  ;;  %v2293_v25 = vxor.u32 2147483648, %v6747_v26 }
 0x274   : > { %3736 = vmatprep.subr.msk.bf16.mxu0 %vm6161_vm4, %v3680_v27  ;;  %v2193_v52 = vsel %vm2191_vm14, %v2192_v63, %v6743_v6  ;;  %4039 = vcosq.f32 %v838_v20  ;;  %v473_v3 = vclz %v3583_v8  ;;  %vm2292_vm9 = vcmp.eq.s32.totalorder %v6746_v46, 0 }
 0x275   : > { %3737 = vmatpush3.bf16.msk.msra.mxu0 %vm6161_vm4, %v3680_v27  ;;  %v2194_v48 = vsel %vm2187_vm0, %v2190_v32, %v2193_v52  ;;  %4041 = vsinq.f32 %v838_v20  ;;  %v2294_v53 = vsel %vm2292_vm9, %v6748_v18, %v2293_v25  ;;  %vm2295_vm7 = vcmp.eq.s32.totalorder %v6746_v46, 2  ;;  %v6754_v20 = vld [vmem:[#allocation32_spill] sm:$0xff]  ;;  %v6755_v25 = vld [vmem:[#allocation11_spill] sm:$0xff] }
 0x276   : > { %v2296_v23 = vxor.u32 2147483648, %v6748_v18  ;;  %v3584_v1 = vadd.s32 4294967294, %v473_v3  ;;  %v6193_v13 = vsel %vm2184_vm11, nan, %v2194_v48  ;;  %vm2425_vm12 = vweird.f32 %v6749_v9 }
 0x277   : > { %v2430_v21 = vxor.u32 2147483648, %v6750_v15  ;;  %vm2428_vm13 = vcmp.lt.s32.totalorder %v6751_v40, 2  ;;  %vm2429_vm5 = vcmp.eq.s32.totalorder %v6751_v40, 0  ;;  %v2433_v17 = vxor.u32 2147483648, %v6752_v0 }
 0x278   : > { %v2297_v7 = vsel %vm2295_vm7, %v2296_v23, %v6747_v26  ;;  %vm3585_vm10 = vcmp.lt.s32.totalorder %v3584_v1, 0  ;;  %vm2432_vm11 = vcmp.eq.s32.totalorder %v6751_v40, 2  ;;  %v2839_v11 = vrot.slane %v6193_v13, 5 }
 0x279   : > { %v2298_v57 = vsel %vm2291_vm6, %v2294_v53, %v2297_v7  ;;  %v2431_v4 = vsel %vm2429_vm5, %v6752_v0, %v2430_v21  ;;  %v476_v10 = vsel %vm3585_vm10, 0, %v3584_v1  ;;  %v2434_v44 = vsel %vm2432_vm11, %v2433_v17, %v6750_v15  ;;  %v6761_v15 = vld [vmem:[#allocation28_spill] sm:$0xff] }
 0x27a   : > { %v2299_v24 = vsel %vm2288_vm8, nan, %v2298_v57  ;;  %v477_v31 = vsub.s32 32, %v476_v10  ;;  %v481_v30 = vsub.s32 4294967266, %v476_v10  ;;  %v2435_v41 = vsel %vm2428_vm13, %v2431_v4, %v2434_v44  ;;  %v6762_v57 = vld [vmem:[#allocation33_spill] sm:$0xff]  ;;  %v6763_v4 = vld [vmem:[#allocation39_spill] sm:$0xff] }
 0x27b   : > { %vm1943_vm4 = vweird.f32 %v4910_v5  ;;  %v478_v19 = vshll.u32 %v6147_v58, %v476_v10  ;;  %v2436_v45 = vsel %vm2425_vm12, nan, %v2435_v41  ;;  %v2840_v29 = vrot.slane %v2299_v24, 5  ;;  %v6214_v6 = vpop.eup %4037 }
 0x27c   : > { %v1948_v34 = vxor.u32 2147483648, %v5405_v36  ;;  %v479_v56 = vshrl.u32 %v6123_v12, %v477_v31  ;;  %v482_v60 = vadd.s32 127, %v481_v30  ;;  %v2846_v27 = vrot.slane %v2436_v45, 1  ;;  %v6764_v31 = vld [vmem:[#allocation38_spill] sm:$0xff]  ;;  %v6765_v45 = vld [vmem:[#allocation31_spill] sm:$0xff] }
 0x27d   : > { %vm1947_vm0 = vcmp.eq.s32.totalorder %v6753_v61, 0  ;;  %v2841_v63 = vsel %vm2793_vm1, %v2839_v11, %v2840_v29  ;;  %vm1950_vm3 = vcmp.eq.s32.totalorder %v6753_v61, 2  ;;  %v1951_v8 = vxor.u32 2147483648, %v6754_v20 }
 0x27e   : > { %v1949_v58 = vsel %vm1947_vm0, %v6754_v20, %v1948_v34  ;;  %v480_v32 = vor.u32 %v479_v56, %v478_v19  ;;  %v483_v52 = vshll.u32 %v482_v60, 23  ;;  %v2848_v12 = vsel %vm2784_vm15, %v2846_v27, %v2847_v16  ;;  %v6760_v16 = vld [vmem:[#allocation29_spill] sm:$0xff]  ;;  %v6766_v60 = vld [vmem:[#allocation36_spill] sm:$0xff] }
 0x27f   : > { %v2867_v54 = vsel %vm2784_vm15, %v2841_v63, %v2846_v27  ;;  %vm1946_vm14 = vcmp.lt.s32.totalorder %v6753_v61, 2  ;;  %v1952_v26 = vsel %vm1950_vm3, %v1951_v8, %v5405_v36  ;;  %vm2047_vm8 = vweird.f32 %v6755_v25  ;;  %v6767_v63 = vld [vmem:[#allocation34_spill] sm:$0xff]  ;;  %v6768_v25 = vld [vmem:[#allocation15_spill] sm:$0xff] }
 0x280   : > { %v2876_v46 = vpack.c.bf16 %v2848_v12, %v2867_v54  ;;  %v6756_v3 = vand.u32 2147483647, %v5934_v42  ;;  %v484_v18 = vor.u32 4788187, %v483_v52  ;;  %v1953_v53 = vsel %vm1946_vm14, %v1949_v58, %v1952_v26 }
 0x281   : > { %vm2050_vm9 = vcmp.lt.s32.totalorder %v6759_v47, 2  ;;  %v2052_v23 = vxor.u32 2147483648, %v6760_v16  ;;  %v6239_v1 = vpop.eup %4039  ;;  %v487_v9 = vcvt.s32.f32 %v480_v32  ;;  %v6243_v36 = vsel %vm1943_vm4, nan, %v1953_v53 }
 0x282   : > { %vm6233_vm6 = vcmp.le.f32.partialorder %v6756_v3, 0.7853982  ;;  %3738 = vmatprep.subr.bf16.mxu0 %v2876_v46  ;;  %vm2051_vm7 = vcmp.eq.s32.totalorder %v6759_v47, 0  ;;  %v2055_v21 = vxor.u32 2147483648, %v6761_v15  ;;  %v6247_v7 = vpop.eup %4041  ;;  %v485_v40 = vand.u32 2147483647, %v484_v18 }
 0x283   : > { %3739 = vmatpush3.bf16.msra.mxu0 %v2876_v46  ;;  %v2053_v0 = vsel %vm2051_vm7, %v6761_v15, %v2052_v23  ;;  %vm2054_vm12 = vcmp.eq.s32.totalorder %v6759_v47, 2  ;;  %vm1565_vm13 = vweird.f32 %v5126_v33  ;;  %v2831_v5 = vrot.slane %v6243_v36, 1  ;;  %v6770_v3 = vld [vmem:[#allocation35_spill] sm:$0xff]  ;;  %v6772_v47 = vld [vmem:[#allocation42_spill] sm:$0xff] }
 0x284   : > { %v2056_v17 = vsel %vm2054_vm12, %v2055_v21, %v6760_v16  ;;  %vm1568_vm5 = vcmp.lt.s32.totalorder %v6762_v57, 2  ;;  %v1570_v10 = vxor.u32 2147483648, %v6763_v4  ;;  %v488_v24 = vmul.f32 %v487_v9, %v485_v40  ;;  %v6771_v18 = vld [vmem:[#allocation43_spill] sm:$0xff]  ;;  %v6773_v21 = vld [vmem:[#allocation26_spill] sm:$0xff] }
 0x285   : > { %v2057_v44 = vsel %vm2050_vm9, %v2053_v0, %v2056_v17  ;;  %vm1569_vm10 = vcmp.eq.s32.totalorder %v6762_v57, 0  ;;  %v1573_v30 = vxor.u32 2147483648, %v6764_v31  ;;  %vm1572_vm11 = vcmp.eq.s32.totalorder %v6762_v57, 2  ;;  %v6774_v17 = vld [vmem:[#allocation40_spill] sm:$0xff] }
 0x286   : > { %v2058_v41 = vsel %vm2047_vm8, nan, %v2057_v44  ;;  %v1571_v19 = vsel %vm1569_vm10, %v6764_v31, %v1570_v10  ;;  %vm1705_vm4 = vcmp.lt.s32.totalorder %v6765_v45, 2  ;;  %v489_v29 = vxor.u32 2147483648, %v488_v24  ;;  %v6775_v57 = vld [vmem:[#allocation44_spill] sm:$0xff] }
 0x287   : > { %v2832_v34 = vrot.slane %v2058_v41, 1  ;;  %v1574_v56 = vsel %vm1572_vm11, %v1573_v30, %v6763_v4  ;;  %v1707_v27 = vxor.u32 2147483648, %v6766_v60  ;;  %vm1706_vm0 = vcmp.eq.s32.totalorder %v6765_v45, 0  ;;  %v6776_v41 = vld [vmem:[#allocation49_spill] sm:$0xff] }
 0x288   : > { %v1575_v61 = vsel %vm1568_vm5, %v1571_v19, %v1574_v56  ;;  %vm1709_vm3 = vcmp.eq.s32.totalorder %v6765_v45, 2  ;;  %v1710_v20 = vxor.u32 2147483648, %v6767_v63  ;;  %v490_v58 = vsel %vm407_vm2, %v489_v29, %v488_v24  ;;  %v6778_v56 = vld [vmem:[#allocation48_spill] sm:$0xff] }
 0x289   : > { %v2833_v8 = vsel %vm2784_vm15, %v2831_v5, %v2832_v34  ;;  %v2866_v32 = vsel %vm2793_vm1, %v2832_v34, %v2839_v11  ;;  %v6280_v52 = vsel %vm1565_vm13, nan, %v1575_v61  ;;  %v493_v12 = vsel %vm6233_vm6, %v5934_v42, %v490_v58  ;;  %v6769_v11 = vld [vmem:[#allocation21_spill] sm:$0xff]  ;;  %v6780_v58 = vld [vmem:[#allocation47_spill] sm:$0xff] }
 0x28a   : > { %v2875_v54 = vpack.c.bf16 %v2866_v32, %v2833_v8  ;;  %v1708_v46 = vsel %vm1706_vm0, %v6767_v63, %v1707_v27  ;;  %v1711_v26 = vsel %vm1709_vm3, %v1710_v20, %v6766_v60  ;;  %4043 = vcosq.f32 %v493_v12  ;;  %v6777_v34 = vld [vmem:[#allocation45_spill] sm:$0xff]  ;;  %v6779_v20 = vld [vmem:[#allocation30_spill] sm:$0xff] }
 0x28b   : > { %vm1702_vm2 = vweird.f32 %v6768_v25  ;;  %v1712_v13 = vsel %vm1705_vm4, %v1708_v46, %v1711_v26  ;;  %vm1806_vm14 = vweird.f32 %v6769_v11  ;;  %vm1809_vm8 = vcmp.lt.s32.totalorder %v6770_v3, 2 }
 0x28c   : > { %3740 = vmatprep.subr.bf16.mxu0 %v2875_v54  ;;  %v1713_v33 = vsel %vm1702_vm2, nan, %v1712_v13  ;;  %vm1810_vm9 = vcmp.eq.s32.totalorder %v6770_v3, 0  ;;  %v1811_v53 = vxor.u32 2147483648, %v6771_v18  ;;  %4045 = vsinq.f32 %v493_v12  ;;  %v6781_v12 = vld [vmem:[#allocation41_spill] sm:$0xff] }
 0x28d   : > { %3741 = vmatpush3.bf16.msra.mxu0 %v2875_v54  ;;  %vm1813_vm7 = vcmp.eq.s32.totalorder %v6770_v3, 2  ;;  %v1814_v16 = vxor.u32 2147483648, %v6772_v47  ;;  %v2817_v23 = vrot.slane %v6280_v52, 1  ;;  %v2824_v15 = vrot.slane %v1713_v33, 5  ;;  %v6782_v54 = vld [vmem:[#allocation46_spill] sm:$0xff] }
 0x28e   : > { %v1812_v9 = vsel %vm1810_vm9, %v6772_v47, %v1811_v53  ;;  %vm1220_vm12 = vweird.f32 %v6773_v21  ;;  %v1225_v40 = vxor.u32 2147483648, %v5787_v28  ;;  %vm1223_vm13 = vcmp.lt.s32.totalorder %v6774_v17, 2  ;;  %v6783_v21 = vld [vmem:[#allocation50_spill] sm:$0xff] }
 0x28f   : > { %v1815_v0 = vsel %vm1813_vm7, %v1814_v16, %v6771_v18  ;;  %vm1224_vm5 = vcmp.eq.s32.totalorder %v6774_v17, 0  ;;  %v1228_v4 = vxor.u32 2147483648, %v6775_v57  ;;  %v2864_v24 = vsel %vm2793_vm1, %v2817_v23, %v2824_v15 }
 0x290   : > { %v1816_v10 = vsel %vm1809_vm8, %v1812_v9, %v1815_v0  ;;  %v1226_v44 = vsel %vm1224_vm5, %v6775_v57, %v1225_v40  ;;  %vm1227_vm10 = vcmp.eq.s32.totalorder %v6774_v17, 2  ;;  %vm1324_vm11 = vweird.f32 %v5368_v43  ;;  %v6784_v0 = vld [vmem:[#allocation53_spill] sm:$0xff]  ;;  %v6785_v57 = vld [vmem:[#allocation52_spill] sm:$0xff] }
 0x291   : > { %v1817_v31 = vsel %vm1806_vm14, nan, %v1816_v10  ;;  %v1229_v30 = vsel %vm1227_vm10, %v1228_v4, %v5787_v28  ;;  %v1329_v19 = vxor.u32 2147483648, %v6776_v41  ;;  %vm1328_vm4 = vcmp.eq.s32.totalorder %v6777_v34, 0 }
 0x292   : > { %v2825_v45 = vrot.slane %v1817_v31, 5  ;;  %v1230_v29 = vsel %vm1223_vm13, %v1226_v44, %v1229_v30  ;;  %v1332_v60 = vxor.u32 2147483648, %v6778_v56  ;;  %vm1327_vm0 = vcmp.lt.s32.totalorder %v6777_v34, 2 }
 0x293   : > { %v6318_v27 = vsel %vm1220_vm12, nan, %v1230_v29  ;;  %v1330_v61 = vsel %vm1328_vm4, %v6778_v56, %v1329_v19  ;;  %vm1331_vm3 = vcmp.eq.s32.totalorder %v6777_v34, 2  ;;  %vm1461_vm2 = vweird.f32 %v6779_v20  ;;  %v6787_v56 = vld [vmem:[#allocation51_spill] sm:$0xff] }
 0x294   : > { %v2826_v28 = vsel %vm2793_vm1, %v2824_v15, %v2825_v45  ;;  %v1333_v63 = vsel %vm1331_vm3, %v1332_v60, %v6776_v41  ;;  %v1466_v8 = vxor.u32 2147483648, %v6780_v58  ;;  %vm1465_vm14 = vcmp.eq.s32.totalorder %v6781_v12, 0  ;;  %v6786_v41 = vld [vmem:[#allocation37_spill] sm:$0xff] }
 0x295   : > { %v2865_v32 = vsel %vm2784_vm15, %v2826_v28, %v2831_v5  ;;  %v1334_v52 = vsel %vm1327_vm0, %v1330_v61, %v1333_v63  ;;  %v1469_v46 = vxor.u32 2147483648, %v6782_v54  ;;  %vm1468_vm8 = vcmp.eq.s32.totalorder %v6781_v12, 2 }
 0x296   : > { %v2874_v26 = vpack.c.bf16 %v2865_v32, %v2864_v24  ;;  %v1335_v25 = vsel %vm1324_vm11, nan, %v1334_v52  ;;  %v1467_v13 = vsel %vm1465_vm14, %v6782_v54, %v1466_v8  ;;  %vm1464_vm9 = vcmp.lt.s32.totalorder %v6781_v12, 2 }
 0x297   : > { %v1470_v11 = vsel %vm1468_vm8, %v1469_v46, %v6780_v58  ;;  %v2809_v36 = vrot.slane %v6318_v27, 5  ;;  %v2810_v5 = vrot.slane %v1335_v25, 5  ;;  %v6339_v33 = vpop.eup %4043  ;;  %vm979_vm7 = vweird.f32 %v5609_v59 }
 0x298   : > { %3742 = vmatprep.subr.bf16.mxu0 %v2874_v26  ;;  %v1471_v3 = vsel %vm1464_vm9, %v1467_v13, %v1470_v11  ;;  %vm982_vm12 = vcmp.lt.s32.totalorder %v5924_v49, 2  ;;  %v984_v43 = vxor.u32 2147483648, %v5986_v39  ;;  %vm983_vm13 = vcmp.eq.s32.totalorder %v5924_v49, 0 }
 0x299   : > { %3743 = vmatpush3.bf16.msra.mxu0 %v2874_v26  ;;  %v1472_v18 = vsel %vm1461_vm2, nan, %v1471_v3  ;;  %v2811_v53 = vsel %vm2793_vm1, %v2809_v36, %v2810_v5  ;;  %v987_v47 = vxor.u32 2147483648, %v5976_v50  ;;  %v6349_v16 = vpop.eup %4045  ;;  %vm986_vm5 = vcmp.eq.s32.totalorder %v5924_v49, 2  ;;  %v371_v3 = vld [vmem:[%s4426_s26] sm:$0x7f] }
 0x29a   : > { %v2816_v9 = vrot.slane %v1472_v18, 1  ;;  %v985_v15 = vsel %vm983_vm13, %v5976_v50, %v984_v43  ;;  %vm1086_vm10 = vcmp.lt.s32.totalorder %v6783_v21, 2  ;;  %vm1087_vm11 = vcmp.eq.s32.totalorder %v6783_v21, 0 }
 0x29b   : > { %v988_v40 = vsel %vm986_vm5, %v987_v47, %v5986_v39  ;;  %v1088_v17 = vxor.u32 2147483648, %v6784_v0  ;;  %v1091_v4 = vxor.u32 2147483648, %v6785_v57  ;;  %vm1090_vm4 = vcmp.eq.s32.totalorder %v6783_v21, 2  ;;  %v3955_v21 = vld [vmem:[%s6534_s3 + $0x20] sm:$0xff]  }
 0x29c   : > { %v2818_v10 = vsel %vm2784_vm15, %v2816_v9, %v2817_v23  ;;  %v2863_v24 = vsel %vm2784_vm15, %v2811_v53, %v2816_v9  ;;  %v989_v44 = vsel %vm982_vm12, %v985_v15, %v988_v40  ;;  %v494_v23 = vsel %vm6233_vm6, 0, %v6155_v2  ;;  %v3954_v15 = vld [vmem:[%s6534_s3 + $0x18] sm:$0xff]   ;;  %v3956_v40 = vld [vmem:[%s6534_s3 + $0x28] sm:$0xff]  }
 0x29d   : > { %v2873_v50 = vpack.c.bf16 %v2818_v10, %v2863_v24  ;;  %v6365_v31 = vsel %vm979_vm7, nan, %v989_v44  ;;  %v1089_v39 = vsel %vm1087_vm11, %v6785_v57, %v1088_v17  ;;  %v1092_v30 = vsel %vm1090_vm4, %v1091_v4, %v6784_v0  ;;  %v3957_v0 = vld [vmem:[%s6534_s3 + $0x30] sm:$0xff]   ;;  %v3958_v17 = vld [vmem:[%s6534_s3 + $0x38] sm:$0xff]   ;;  %v3959_v57 = vld [vmem:[%s6536_s5] sm:$0xff]  }
 0x29e   : > { %vm1083_vm0 = vweird.f32 %v6786_v41  ;;  %v1093_v19 = vsel %vm1086_vm10, %v1089_v39, %v1092_v30  ;;  %v2801_v49 = vrot.slane %v6365_v31, 1  ;;  %vm601_vm3 = vweird.f32 %v5727_v62  ;;  %3784 = vmatprep.mubr.bf16.mxu1 %v3959_v57  ;;  %v3017_v39 = vpop.permute.xlu0 %3016 }
 0x29f   : > { %3744 = vmatprep.subr.bf16.mxu0 %v2873_v50  ;;  %v1094_v45 = vsel %vm1083_vm0, nan, %v1093_v19  ;;  %v606_v59 = vxor.u32 2147483648, %v6214_v6  ;;  %v609_v29 = vxor.u32 2147483648, %v6137_v38  ;;  %vm604_vm2 = vcmp.lt.s32.totalorder %v6028_v37, 2 }
 0x2a0   : > { %3745 = vmatpush3.bf16.msra.mxu0 %v2873_v50  ;;  %v2802_v34 = vrot.slane %v1094_v45, 1  ;;  %vm605_vm14 = vcmp.eq.s32.totalorder %v6028_v37, 0  ;;  %vm608_vm6 = vcmp.eq.s32.totalorder %v6028_v37, 2  ;;  %vm742_vm8 = vcmp.eq.s32.totalorder %v6787_v56, 0  ;;  %v3022_v50 = vpop.permute.xlu1 %3021 }
 0x2a1   : > { %v607_v2 = vsel %vm605_vm14, %v6137_v38, %v606_v59  ;;  %v610_v48 = vsel %vm608_vm6, %v609_v29, %v6214_v6  ;;  %v743_v60 = vxor.u32 2147483648, %v6083_v51  ;;  %v746_v63 = vxor.u32 2147483648, %v6073_v35 }
 0x2a2   : > { %v2803_v27 = vsel %vm2784_vm15, %v2801_v49, %v2802_v34  ;;  %v2862_v61 = vsel %vm2793_vm1, %v2802_v34, %v2809_v36  ;;  %v611_v28 = vsel %vm604_vm2, %v607_v2, %v610_v48  ;;  %vm738_vm9 = vweird.f32 %v5702_v22 }
 0x2a3   : > { %v2872_v20 = vpack.c.bf16 %v2862_v61, %v2803_v27  ;;  %v744_v37 = vsel %vm742_vm8, %v6073_v35, %v743_v60  ;;  %vm745_vm7 = vcmp.eq.s32.totalorder %v6787_v56, 2  ;;  %v612_v38 = vsel %vm601_vm3, nan, %v611_v28 }
 0x2a4   : > { %vm741_vm12 = vcmp.lt.s32.totalorder %v6787_v56, 2  ;;  %v747_v6 = vsel %vm745_vm7, %v746_v63, %v6083_v51  ;;  %v847_v58 = vxor.u32 2147483648, %v6247_v7  ;;  %vm845_vm13 = vcmp.lt.s32.totalorder %v6145_v55, 2  ;;  %v3012_v41 = vpop.permute.xlu1 %3011 }
 0x2a5   : > { %3746 = vmatprep.subr.bf16.mxu0 %v2872_v20  ;;  %v748_v8 = vsel %vm741_vm12, %v744_v37, %v747_v6  ;;  %vm846_vm5 = vcmp.eq.s32.totalorder %v6145_v55, 0  ;;  %v850_v22 = vxor.u32 2147483648, %v6239_v1  ;;  %vm849_vm10 = vcmp.eq.s32.totalorder %v6145_v55, 2 }
 0x2a6   : > { %3747 = vmatpush3.bf16.msra.mxu0 %v2872_v20  ;;  %v749_v35 = vsel %vm738_vm9, nan, %v748_v8  ;;  %v848_v32 = vsel %vm846_vm5, %v6239_v1, %v847_v58  ;;  %v498_v62 = vadd.s32 3, %v494_v23  ;;  %v2786_v51 = vrot.slane %v612_v38, 1 }
 0x2a7   : > { %v851_v52 = vsel %vm849_vm10, %v850_v22, %v6247_v7  ;;  %v502_v12 = vxor.u32 2147483648, %v6349_v16  ;;  %v505_v54 = vxor.u32 2147483648, %v6339_v33  ;;  %vm842_vm11 = vweird.f32 %v5785_v14 }
 0x2a8   : > { %v852_v46 = vsel %vm845_vm13, %v848_v32, %v851_v52  ;;  %v499_v26 = vand.u32 3, %v498_v62  ;;  %v2794_v13 = vrot.slane %v749_v35, 5  ;;  %vm497_vm2 = vweird.f32 %v5934_v42  ;;  %v3953_v42 = vld [vmem:[%s6534_s3 + $0x10] sm:$0xff]   ;;  %v3002_v29 = vpop.permute.xlu1 %3001 }
 0x2a9   : > { %v853_v25 = vsel %vm842_vm11, nan, %v852_v46 }
 0x2aa   : > { %v2795_v11 = vrot.slane %v853_v25, 5  ;;  %vm501_vm4 = vcmp.eq.s32.totalorder %v499_v26, 0  ;;  %vm504_vm0 = vcmp.eq.s32.totalorder %v499_v26, 2  ;;  %v2860_v55 = vsel %vm2793_vm1, %v2786_v51, %v2794_v13 }
 0x2ab   : > { %vm500_vm3 = vcmp.lt.s32.totalorder %v499_v26, 2  ;;  %v503_v1 = vsel %vm501_vm4, %v6339_v33, %v502_v12  ;;  %v506_v7 = vsel %vm504_vm0, %v505_v54, %v6349_v16  ;;  %v3952_v16 = vld [vmem:[%s6534_s3 + $0x8] sm:$0xff]  }
 0x2ac   : > { %v2796_v36 = vsel %vm2793_vm1, %v2794_v13, %v2795_v11  ;;  %v507_v14 = vsel %vm500_vm3, %v503_v1, %v506_v7  ;;  %v2992_v60 = vpop.permute.xlu1 %2991  ;;  %vm4122_vm1 = vmmov 0  }
 0x2ad   : > { %v2861_v5 = vsel %vm2784_vm15, %v2796_v36, %v2801_v49  ;;  %v508_v43 = vsel %vm497_vm2, nan, %v507_v14  ;;  %v3007_v49 = vpop.permute.xlu0 %3006 }
 0x2ae   : > { %v2871_v18 = vpack.c.bf16 %v2861_v5, %v2860_v55  ;;  %v2785_v53 = vrot.slane %v508_v43, 1 }
 0x2b0   : > { %3748 = vmatprep.subr.bf16.mxu0 %v2871_v18  ;;  %v2787_v47 = vsel %vm2784_vm15, %v2785_v53, %v2786_v51  ;;  %v2859_v9 = vsel %vm2784_vm15, %v371_v3, %v2785_v53  ;;  %v2982_v35 = vpop.permute.xlu1 %2981 }
 0x2b1   : > { %3749 = vmatpush3.bf16.msra.mxu0 %v2871_v18  ;;  %v2870_v33 = vpack.c.bf16 %v2787_v47, %v2859_v9  ;;  %v2997_v2 = vpop.permute.xlu0 %2996 }
 0x2b3   : > { %3750 = vmatprep.subr.bf16.mxu0 %v2870_v33 }
 0x2b4   : > { %v2972_v11 = vpop.permute.xlu1 %2971 }
 0x2b5   : > { %3751 = vmatpush3.bf16.msra.mxu0 %v2870_v33  ;;  %v2987_v28 = vpop.permute.xlu0 %2986 }
 0x2b8   : > { %3753 = vmatmul.mubr.bf16.vlgmr.msra.gmra.mxu0 %v3952_v16  ;;  %v2962_v53 = vpop.permute.xlu1 %2961 }
 0x2b9   : > { %3756 = vmatprep.mubr.bf16.mxu0 %v3953_v42  ;;  %v2977_v12 = vpop.permute.xlu0 %2976 }
 0x2bd   : > { %v2967_v36 = vpop.permute.xlu0 %2966 }
 0x2c0   : > { %3757 = vmatmul.mubr.bf16.gmra.mxu0 %v3954_v15 }
 0x2c1   : > { %3760 = vmatprep.mubr.bf16.mxu0 %v3955_v21  ;;  %v2957_v33 = vpop.permute.xlu0 %2956 }
 0x2c8   : > { %3761 = vmatmul.mubr.bf16.gmra.mxu0 %v3956_v40 }
 0x2c9   : > { %3764 = vmatprep.mubr.bf16.mxu0 %v3957_v0  ;;  %v2952_v0 = vpop.permute.xlu1 %2951 }
 0x2d0   : > { %3765 = vmatmul.mubr.bf16.gmra.mxu0 %v3958_v17 }
 0x378   : > { %v6437_v4 = vpop.f32.mrf.mxu0 }
 0x379   : > { %v3115_v21 = vadd.f32 %v6437_v4, %v2957_v33  ;;  %v3960_v4 = vld [vmem:[%s6536_s5 + $0x8] sm:$0xff]  }
 0x37a   : > { %v6439_v10 = vpop.f32.mrf.mxu0 }
 0x37c   : > { %v3755_v24 = vpop.f32.mrf.mxu0 }
 0x37d   : > { %v3118_v16 = vadd.f32 %v3755_v24, %v2962_v53 }
 0x37e   : > { %v6441_v44 = vpop.f32.mrf.mxu0 }
 0x37f   : > { %v3172_v17 = vmax.f32 %v3118_v16, 0.0  ;;  %v3110_v57 = vadd.f32 %v6441_v44, %v2952_v0  ;;  %v3961_v44 = vld [vmem:[%s6536_s5 + $0x10] sm:$0xff]  }
 0x380   : > { %v3758_v31 = vpop.f32.mrf.mxu0 }
 0x381   : > { %v3131_v14 = vadd.f32 %v3758_v31, %v2977_v12  ;;  %v2947_v31 = vpop.permute.xlu0 %2946  ;;  %v3170_v24 = vmax.f32 %v3110_v57, 0.0 }
 0x382   : > { %v3122_v30 = vpop.f32.mrf.mxu0 }
 0x383   : > { %v3175_v47 = vmax.f32 %v3131_v14, 0.0  ;;  %v3123_v9 = vadd.f32 %v3122_v30, %v2967_v36  ;;  %v3107_v30 = vadd.f32 %v6439_v10, %v2947_v31  ;;  %v3962_v10 = vld [vmem:[%s6536_s5 + $0x18] sm:$0xff]  }
 0x384   : > { %v3759_v23 = vpop.f32.mrf.mxu0 }
 0x385   : > { %v3134_v55 = vadd.f32 %v3759_v23, %v2982_v35  ;;  %v3173_v40 = vmax.f32 %v3123_v9, 0.0 }
 0x386   : > { %v3125_v19 = vpop.f32.mrf.mxu0 }
 0x387   : > { %v3176_v3 = vmax.f32 %v3134_v55, 0.0  ;;  %v3126_v43 = vadd.f32 %v3125_v19, %v2972_v11 }
 0x388   : > { %v3762_v45 = vpop.f32.mrf.mxu0 }
 0x389   : > { %v3147_v32 = vadd.f32 %v3762_v45, %v2997_v2  ;;  %v3188_v42 = vpack.c.bf16 %v3176_v3, %v3175_v47  ;;  %v3174_v15 = vmax.f32 %v3126_v43, 0.0  ;;  %v3964_v45 = vld [vmem:[%s6536_s5 + $0x28] sm:$0xff]  }
 0x38a   : > { %v3138_v59 = vpop.f32.mrf.mxu0 }
 0x38b   : > { %v3179_v25 = vmax.f32 %v3147_v32, 0.0  ;;  %v3139_v13 = vadd.f32 %v3138_v59, %v2987_v28  ;;  %v3965_v59 = vld [vmem:[%s6536_s5 + $0x30] sm:$0xff]  }
 0x38c   : > { %v3763_v34 = vpop.f32.mrf.mxu0 }
 0x38d   : > { %v3150_v6 = vadd.f32 %v3763_v34, %v3002_v29  ;;  %v3177_v5 = vmax.f32 %v3139_v13, 0.0  ;;  %v3966_v29 = vld [vmem:[%s6536_s5 + $0x38] sm:$0xff]   ;;  %v4121_v34 = vmov 0.0  }
 0x38e   : > { %v3141_v48 = vpop.f32.mrf.mxu0  ;;  %3800 = vmatprep.subr.bf16.mxu0 %v4121_v34  ;;  %3816 = vmatprep.mubr.msk.bf16.mxu0 %vm4122_vm1, %v4121_v34 }
 0x38f   : > { %v3180_v54 = vmax.f32 %v3150_v6, 0.0  ;;  %v3142_v46 = vadd.f32 %v3141_v48, %v2992_v60 }
 0x390   : > { %v3766_v56 = vpop.f32.mrf.mxu0 }
 0x391   : > { %v3163_v61 = vadd.f32 %v3766_v56, %v3017_v39  ;;  %v3190_v1 = vpack.c.bf16 %v3180_v54, %v3179_v25  ;;  %v3178_v7 = vmax.f32 %v3142_v46, 0.0  ;;  %v3171_v39 = vmax.f32 %v3115_v21, 0.0 }
 0x392   : > { %v3154_v27 = vpop.f32.mrf.mxu0 }
 0x393   : > { %v3155_v20 = vadd.f32 %v3154_v27, %v3007_v49  ;;  %v3183_v58 = vmax.f32 %v3163_v61, 0.0  ;;  %v3189_v18 = vpack.c.bf16 %v3178_v7, %v3177_v5  ;;  %v3186_v23 = vpack.c.bf16 %v3172_v17, %v3171_v39  ;;  %v3963_v49 = vld [vmem:[%s6536_s5 + $0x20] sm:$0xff]   ;;  %v3271_v61 = vpop.permute.xlu1 %3270 }
 0x394   : > { %v3767_v63 = vpop.f32.mrf.mxu0 }
 0x395   : > { %v3166_v37 = vadd.f32 %v3767_v63, %v3022_v50  ;;  %v3181_v62 = vmax.f32 %v3155_v20, 0.0  ;;  %v3187_v50 = vpack.c.bf16 %v3174_v15, %v3173_v40  ;;  %v3266_v63 = vpop.permute.xlu0 %3265 }
 0x396   : > { %v3157_v38 = vpop.f32.mrf.mxu0 }
 0x397   : > { %v3184_v8 = vmax.f32 %v3166_v37, 0.0  ;;  %v3158_v22 = vadd.f32 %v3157_v38, %v3012_v41  ;;  %v3169_v41 = vmax.f32 %v3107_v30, 0.0  ;;  %v3261_v38 = vpop.permute.xlu1 %3260 }
 0x399   : > { %v3182_v52 = vmax.f32 %v3158_v22, 0.0  ;;  %v3192_v51 = vpack.c.bf16 %v3184_v8, %v3183_v58  ;;  %v3185_v19 = vpack.c.bf16 %v3170_v24, %v3169_v41  ;;  %v3256_v58 = vpop.permute.xlu0 %3255 }
 0x39b   : > { %v3191_v26 = vpack.c.bf16 %v3182_v52, %v3181_v62  ;;  %3768 = vmatprep.subr.bf16.mxu1 %v3192_v51  ;;  %v3251_v35 = vpop.permute.xlu1 %3250 }
 0x39c   : > { %3769 = vmatpush3.bf16.msra.mxu1 %v3192_v51 }
 0x39d   : > { %3770 = vmatprep.subr.bf16.mxu1 %v3191_v26  ;;  %v3246_v62 = vpop.permute.xlu0 %3245 }
 0x39f   : > { %v3241_v54 = vpop.permute.xlu1 %3240 }
 0x3a0   : > { %3771 = vmatpush3.bf16.msra.mxu1 %v3191_v26 }
 0x3a1   : > { %3772 = vmatprep.subr.bf16.mxu1 %v3190_v1  ;;  %v3236_v25 = vpop.permute.xlu0 %3235 }
 0x3a3   : > { %v3231_v3 = vpop.permute.xlu1 %3230 }
 0x3a4   : > { %3773 = vmatpush3.bf16.msra.mxu1 %v3190_v1 }
 0x3a5   : > { %3774 = vmatprep.subr.bf16.mxu1 %v3189_v18  ;;  %v3226_v53 = vpop.permute.xlu0 %3225 }
 0x3a7   : > { %v3221_v15 = vpop.permute.xlu1 %3220 }
 0x3a8   : > { %3775 = vmatpush3.bf16.msra.mxu1 %v3189_v18 }
 0x3a9   : > { %3776 = vmatprep.subr.bf16.mxu1 %v3188_v42  ;;  %v3216_v17 = vpop.permute.xlu0 %3215 }
 0x3ac   : > { %3777 = vmatpush3.bf16.msra.mxu1 %v3188_v42 }
 0x3ad   : > { %3778 = vmatprep.subr.bf16.mxu1 %v3187_v50 }
 0x3b0   : > { %3779 = vmatpush3.bf16.msra.mxu1 %v3187_v50 }
 0x3b1   : > { %3780 = vmatprep.subr.bf16.mxu1 %v3186_v23 }
 0x3b4   : > { %3781 = vmatpush3.bf16.msra.mxu1 %v3186_v23  ;;  %v3211_v23 = vpop.permute.xlu1 %3210 }
 0x3b5   : > { %3782 = vmatprep.subr.bf16.mxu1 %v3185_v19 }
 0x3b8   : > { %3783 = vmatpush3.bf16.msra.mxu1 %v3185_v19  ;;  %v3206_v19 = vpop.permute.xlu0 %3205 }
 0x3bb   : > { %3785 = vmatmul.mubr.bf16.vlgmr.msra.gmra.mxu1 %v3960_v4 }
 0x3bc   : > { %3788 = vmatprep.mubr.bf16.mxu1 %v3961_v44 }
 0x3c3   : > { %3789 = vmatmul.mubr.bf16.gmra.mxu1 %v3962_v10 }
 0x3c4   : > { %3792 = vmatprep.mubr.bf16.mxu1 %v3963_v49 }
 0x3cb   : > { %3793 = vmatmul.mubr.bf16.gmra.mxu1 %v3964_v45 }
 0x3cc   : > { %3796 = vmatprep.mubr.bf16.mxu1 %v3965_v59  ;;  %v3201_v59 = vpop.permute.xlu1 %3200 }
 0x3d3   : > { %3797 = vmatmul.mubr.bf16.gmra.mxu1 %v3966_v29 }
 0x47b   : > { %v6469_v2 = vpop.f32.mrf.mxu1 }
 0x47c   : > { %v3364_v49 = vadd.f32 %v6469_v2, %v3206_v19 }
 0x47d   : > { %v6471_v48 = vpop.f32.mrf.mxu1 }
 0x47f   : > { %v3787_v56 = vpop.f32.mrf.mxu1 }
 0x480   : > { %v3367_v4 = vadd.f32 %v3787_v56, %v3211_v23 }
 0x481   : > { %v6473_v60 = vpop.f32.mrf.mxu1 }
 0x482   : > { %v3421_v29 = vmax.f32 %v3367_v4, 0.0 }
 0x483   : > { %v3790_v27 = vpop.f32.mrf.mxu1 }
 0x484   : > { %v3380_v57 = vadd.f32 %v3790_v27, %v3226_v53  ;;  %v3359_v27 = vadd.f32 %v6473_v60, %v3201_v59  ;;  %v2942_v60 = vld [vmem:[%s6538_s7] sm:$0xf] }
 0x485   : > { %v3371_v28 = vpop.f32.mrf.mxu1 }
 0x486   : > { %v3424_v24 = vmax.f32 %v3380_v57, 0.0  ;;  %v3372_v41 = vadd.f32 %v3371_v28, %v3216_v17  ;;  %v3420_v28 = vmax.f32 %v3364_v49, 0.0 }
 0x487   : > { %v3791_v20 = vpop.f32.mrf.mxu1 }
 0x488   : > { %v3383_v21 = vadd.f32 %v3791_v20, %v3231_v3  ;;  %v3422_v45 = vmax.f32 %v3372_v41, 0.0  ;;  %v3435_v56 = vpack.c.bf16 %v3421_v29, %v3420_v28 }
 0x489   : > { %v3374_v37 = vpop.f32.mrf.mxu1 }
 0x48a   : > { %v3425_v31 = vmax.f32 %v3383_v21, 0.0  ;;  %v3375_v39 = vadd.f32 %v3374_v37, %v3221_v15  ;;  %v3419_v37 = vmax.f32 %v3359_v27, 0.0 }
 0x48b   : > { %v3794_v6 = vpop.f32.mrf.mxu1 }
 0x48c   : > { %v3396_v43 = vadd.f32 %v3794_v6, %v3246_v62  ;;  %v3437_v44 = vpack.c.bf16 %v3425_v31, %v3424_v24  ;;  %v3423_v10 = vmax.f32 %v3375_v39, 0.0 }
 0x48d   : > { %v3387_v8 = vpop.f32.mrf.mxu1 }
 0x48e   : > { %v3428_v16 = vmax.f32 %v3396_v43, 0.0  ;;  %v3388_v42 = vadd.f32 %v3387_v8, %v3236_v25 }
 0x48f   : > { %v3795_v22 = vpop.f32.mrf.mxu1 }
 0x490   : > { %v3399_v36 = vadd.f32 %v3795_v22, %v3251_v35  ;;  %v3426_v50 = vmax.f32 %v3388_v42, 0.0 }
 0x491   : > { %v3390_v32 = vpop.f32.mrf.mxu1 }
 0x492   : > { %v3429_v47 = vmax.f32 %v3399_v36, 0.0  ;;  %v3391_v9 = vadd.f32 %v3390_v32, %v3241_v54 }
 0x493   : > { %v3798_v52 = vpop.f32.mrf.mxu1 }
 0x494   : > { %v3412_v12 = vadd.f32 %v3798_v52, %v3266_v63  ;;  %v3439_v40 = vpack.c.bf16 %v3429_v47, %v3428_v16  ;;  %v3427_v0 = vmax.f32 %v3391_v9, 0.0  ;;  %v3196_v63 = vpop.permute.xlu0 %3195 }
 0x495   : > { %v3403_v51 = vpop.f32.mrf.mxu1  ;;  %v3356_v20 = vadd.f32 %v6471_v48, %v3196_v63 }
 0x496   : > { %v3432_v11 = vmax.f32 %v3412_v12, 0.0  ;;  %v3404_v55 = vadd.f32 %v3403_v51, %v3256_v58  ;;  %v3438_v30 = vpack.c.bf16 %v3427_v0, %v3426_v50 }
 0x497   : > { %v3799_v46 = vpop.f32.mrf.mxu1 }
 0x498   : > { %v3415_v26 = vadd.f32 %v3799_v46, %v3271_v61  ;;  %v3430_v18 = vmax.f32 %v3404_v55, 0.0  ;;  %v3436_v61 = vpack.c.bf16 %v3423_v10, %v3422_v45  ;;  %v3445_v6 = vpop.permute.xlu0 %3444 }
 0x499   : > { %v3406_v13 = vpop.f32.mrf.mxu1 }
 0x49a   : > { %v3433_v1 = vmax.f32 %v3415_v26, 0.0  ;;  %v3407_v7 = vadd.f32 %v3406_v13, %v3261_v38  ;;  %v3418_v38 = vmax.f32 %v3356_v20, 0.0 }
 0x49c   : > { %v3441_v14 = vpack.c.bf16 %v3433_v1, %v3432_v11  ;;  %v3431_v5 = vmax.f32 %v3407_v7, 0.0  ;;  %v3434_v2 = vpack.c.bf16 %v3419_v37, %v3418_v38 }
 0x49e   : > { %3801 = vmatpush3.bf16.msra.mxu0 %v3441_v14  ;;  %v3440_v33 = vpack.c.bf16 %v3431_v5, %v3430_v18 }
 0x49f   : > { %3802 = vmatprep.subr.bf16.mxu0 %v4121_v34 }
 0x4a2   : > { %3803 = vmatpush3.bf16.msra.mxu0 %v3440_v33 }
 0x4a3   : > { %3804 = vmatprep.subr.bf16.mxu0 %v4121_v34 }
 0x4a6   : > { %3805 = vmatpush3.bf16.msra.mxu0 %v3439_v40 }
 0x4a7   : > { %3806 = vmatprep.subr.bf16.mxu0 %v4121_v34 }
 0x4aa   : > { %3807 = vmatpush3.bf16.msra.mxu0 %v3438_v30 }
 0x4ab   : > { %3808 = vmatprep.subr.bf16.mxu0 %v4121_v34 }
 0x4ae   : > { %3809 = vmatpush3.bf16.msra.mxu0 %v3437_v44 }
 0x4af   : > { %3810 = vmatprep.subr.bf16.mxu0 %v4121_v34 }
 0x4b2   : > { %3811 = vmatpush3.bf16.msra.mxu0 %v3436_v61 }
 0x4b3   : > { %3812 = vmatprep.subr.bf16.mxu0 %v4121_v34 }
 0x4b6   : > { %3813 = vmatpush3.bf16.msra.mxu0 %v3435_v56 }
 0x4b7   : > { %3814 = vmatprep.subr.bf16.mxu0 %v4121_v34 }
 0x4ba   : > { %3815 = vmatpush3.bf16.msra.mxu0 %v3434_v2 }
 0x4bd   : > { %3817 = vmatmul.mubr.bf16.vlgmr.msra.gmra.mxu0 %v2942_v60 }
 0x57d   : > { %v3481_v48 = vpop.f32.mrf.mxu0 }
 0x57e   : > { %v3482_v58 = vadd.f32 %v3481_v48, %v3445_v6 }
 0x57f   : > { %v3818_v8 = vpop.f32.mrf.mxu0 }
 0x580   : > { %v3690_v22 = vmul.f32 -1.442695, %v3482_v58 }
 0x581   : > { %v3484_v35 = vpop.f32.mrf.mxu0 }
 0x582   : > { %4047 = vpow2.f32 %v3690_v22 }
 0x583   : > { %v3819_v32 = vpop.f32.mrf.mxu0 }
 0x58f   : > { %v4048_v34 = vpop.eup %4047 }
 0x590   : > { %v3490_v62 = vadd.f32 1.0, %v4048_v34 }
 0x592   : > { %4049 = vrcp.f32 %v3490_v62 }
 0x59f   : > { %v4050_v52 = vpop.eup %4049 }
 0x5a0   : > { %3493 = vst [vmem:[%s369_s29] sm:$0xff] %v4050_v52 }
 0x5a1   : > { %4064 = shalt.err (!%p4061_p5)
}
 0x5a2   : > { %s4065_s25 = scalar_lea.hbm %s6494_s17, 128  ;;  %s4069_s29 = scalar_lea.hbm %s6540_s9, 256 }
 0x5a3   : > { %p4066_p7 = scmp.ne.s32.totalorder %s6494_s17, %s4065_s25  ;;  %p4070_p12 = scmp.lt.s32.totalorder %s6494_s17, %s6540_s9 }
 0x5a4   : > { %p4071_p13 = scmp.lt.s32.totalorder %s4069_s29, %s4065_s25 }
 0x5a5   : > { %p4067_p10 = pnand %p4066_p7, %p4212_p6 }
 0x5a6   : > { %p4072_p0 = por %p4071_p13, %p4070_p12 }
 0x5a7   : > { %p4068_p11 = pneg %p4067_p10 }
 0x5a9   : > { %p4073_p1 = pnand %p4072_p0, %p4068_p11 }
 0x5ab   : > { %4076 = shalt.err (!%p4073_p1)
}
 0x5ac   : > { %3900 = dma.vmem_to_hbm [thread:$0]  (%p4212_p6), %s3509_s14, 128, %s6494_s17, %s3495_s21  }
 0x5ad PF: > { %s3520_s22 = sand.u32 1, %s4099_s30   ;;  %p3903_p2 = pnand %p3575_p9, %p4216_p8 }
 0x5ae   : > { %s3521_s23 = scalar_lea.sflag [#allocation4], %s3520_s22 }
 0x5af   : > { %p3904_p3 = pneg %p3903_p2 }
 0x5b1   : > { %4094 = dma.done.wait (%p3904_p3), %s3521_s23, 128  }
 0x5b2   : > { %4096 = vsyncadd (%p3904_p3), %s3521_s23, 4294967168  ;;  %p19_p4 = scmp.ge.s32.totalorder %s4197_s15, 4   ;;  %s6788_s30 = smov %s4103_s10 }
 0x5b3   : > { %s6789_s10 = smov %s4107_s11  ;;  %s6790_s11 = smov %s4210_s18 }
 0x5b4   : > { %s6791_s12 = smov %s4197_s15  ;;  %21 = sbr.rel (!%p19_p4) target bundleno = 3 (0x3), region = 134 }
 0x5b9   :  { %3526 = vsyncpa [#allocation4], 1 }
 0x5ba   :  { %3528 = vsyncpa [#allocation4 + $0x1], 1 }

</bundles_post_ra>
